<compile_context>
chip_gen: v7x
topology: tpu7x:2x2x1
jax: 0.10.0
libtpu: 0.0.40
codegen_flags: <defaults>
</compile_context>

<pallas_src>
import functools

import jax
import jax.numpy as jnp
from jax import lax
from jax.experimental import pallas as pl
from jax.experimental.pallas import tpu as pltpu

DIM_X = 256 * 256 * 1   # 65536
DIM_H = 32
DIM_OUT = 5


def _baseline_kernel(x_ref, w1_ref, b1_ref, w2_ref, b2_ref, o_ref, acc_ref):
    k = pl.program_id(1)

    @pl.when(k == 0)
    def _():
        acc_ref[...] = jnp.zeros_like(acc_ref)

    # fc1 partial product over this K-tile.
    #   x tile : (bm, tk)            w1 tile: (DIM_H, tk)  (torch layout,
    #   lane-dense; contraction on both operands' last dim -> (bm, DIM_H)).
    # f32 accumulation on the MXU regardless of streaming dtype.
    acc_ref[...] += lax.dot_general(
        x_ref[...],
        w1_ref[...],
        dimension_numbers=(((1,), (1,)), ((), ())),
        preferred_element_type=jnp.float32,
    )

    @pl.when(k == pl.num_programs(1) - 1)
    def _():
        # bias + ReLU, then fused fc2 (W2 in torch layout (DIM_OUT, DIM_H),
        # contracted on its last dim) + bias.
        h = jnp.maximum(acc_ref[...] + b1_ref[...], 0.0)
        out = lax.dot_general(
            h,
            w2_ref[...],
            dimension_numbers=(((1,), (1,)), ((), ())),
            preferred_element_type=jnp.float32,
        )
        o_ref[...] = (out + b2_ref[...]).astype(o_ref.dtype)


@functools.partial(jax.jit, static_argnames=("tk", "bm_cap", "stream_bf16"))
def baseline_model_forward(x, w1, b1, w2, b2, *, tk=32768, bm_cap=64,
                           stream_bf16=False):
    """Forward pass of BaselineModel.

    x : (B, 1, 256, 256) or (B, 65536) float32
    w1: (32, 65536)  float32   (torch nn.Linear layout: (out, in))
    b1: (32,)        float32
    w2: (5, 32)      float32   (torch layout)
    b2: (5,)         float32
    returns (B, 5) float32
    """
    assert DIM_X % tk == 0, "tk must divide 65536"

    x2d = x.reshape(-1, DIM_X)                      # x.view(-1, 256*256*1)
    B = x2d.shape[0]
    b1_2d = b1.reshape(1, DIM_H)
    b2_2d = b2.reshape(1, DIM_OUT)

    if stream_bf16:
        # bf16 streaming of the two big operands; f32 accumulation in-kernel.
        x2d = x2d.astype(jnp.bfloat16)
        w1 = w1.astype(jnp.bfloat16)

    # Batch tile: full B when small (block == full dim satisfies the (8,128)
    # rule), otherwise a multiple-of-8 cap so the x double-buffer stays small.
    bm = B if B <= bm_cap else bm_cap
    grid = (pl.cdiv(B, bm), DIM_X // tk)

    bytes_per_x = 2 if stream_bf16 else 4
    cost = pl.CostEstimate(
        flops=2 * B * DIM_X * DIM_H + 2 * B * DIM_H * DIM_OUT,
        transcendentals=0,
        bytes_accessed=(DIM_H * DIM_X + B * DIM_X) * bytes_per_x
        + (DIM_H + DIM_OUT * DIM_H + DIM_OUT + B * DIM_OUT) * 4,
    )

    out = pl.pallas_call(
        _baseline_kernel,
        out_shape=jax.ShapeDtypeStruct((B, DIM_OUT), jnp.float32),
        grid_spec=pltpu.PrefetchScalarGridSpec(
            num_scalar_prefetch=0,
            grid=grid,
            in_specs=[
                pl.BlockSpec((bm, tk), lambda i, k: (i, k)),          # x tile
                pl.BlockSpec((DIM_H, tk), lambda i, k: (0, k)),       # W1 K-tile (lane-dense)
                pl.BlockSpec((1, DIM_H), lambda i, k: (0, 0)),        # b1 (full)
                pl.BlockSpec((DIM_OUT, DIM_H), lambda i, k: (0, 0)),  # W2 (full)
                pl.BlockSpec((1, DIM_OUT), lambda i, k: (0, 0)),      # b2 (full)
            ],
            out_specs=pl.BlockSpec((bm, DIM_OUT), lambda i, k: (i, 0)),
            scratch_shapes=[pltpu.VMEM((bm, DIM_H), jnp.float32)],
        ),
        compiler_params=pltpu.CompilerParams(
            dimension_semantics=("parallel", "arbitrary"),
            vmem_limit_bytes=32 * 1024 * 1024,
        ),
        cost_estimate=cost,
    )(x2d, w1, b1_2d, w2, b2_2d)

    # torch does x.squeeze(1); output is (B, 5) so dim 1 (size 5) is a no-op.
    return out


if __name__ == "__main__":
    key = jax.random.PRNGKey(0)
    k_x, k_w1, k_b1, k_w2, k_b2 = jax.random.split(key, 5)

    B = 2
    # Input consistent with the flatten: (B, 1, 256, 256) NCHW image.
    x = jax.random.normal(k_x, (B, 1, 256, 256), dtype=jnp.float32)

    # Deterministic parameter init in the *torch* layout
    # (same scale rule as nn.Linear: U(-1/sqrt(in), 1/sqrt(in))).
    s1 = 1.0 / jnp.sqrt(jnp.float32(DIM_X))
    s2 = 1.0 / jnp.sqrt(jnp.float32(DIM_H))
    w1 = jax.random.uniform(k_w1, (DIM_H, DIM_X), jnp.float32, -s1, s1)   # (32, 65536)
    b1 = jax.random.uniform(k_b1, (DIM_H,), jnp.float32, -s1, s1)
    w2 = jax.random.uniform(k_w2, (DIM_OUT, DIM_H), jnp.float32, -s2, s2)  # (5, 32)
    b2 = jax.random.uniform(k_b2, (DIM_OUT,), jnp.float32, -s2, s2)

    # Reference in plain JAX (torch semantics: x @ W.T + b).
    x2d = x.reshape(-1, DIM_X)
    ref = jnp.maximum(x2d @ w1.T + b1, 0.0) @ w2.T + b2

    # f32 path (default): bit-tight vs the f32 reference.
    out = jax.block_until_ready(baseline_model_forward(x, w1, b1, w2, b2))
    assert out.shape == (B, DIM_OUT)
    assert jnp.allclose(out, ref, atol=1e-4, rtol=1e-4)

    # bf16-streaming fast path: halves the W1 HBM stream, f32 accumulation;
    # relaxed tolerance vs the f32 reference.
    out_bf16 = jax.block_until_ready(
        baseline_model_forward(x, w1, b1, w2, b2, stream_bf16=True))
    assert out_bf16.shape == (B, DIM_OUT)
    assert jnp.allclose(out_bf16, ref, atol=5e-2, rtol=5e-2)

    print("KERNEL_OK")
</pallas_src>

<mosaic_0001>
module attributes {stable_mosaic.version = 11 : i64} {
  func.func @_baseline_kernel(%arg0: i32, %arg1: i32, %arg2: memref<2x32768xf32, #tpu.memory_space<vmem>>, %arg3: memref<32x32768xf32, #tpu.memory_space<vmem>>, %arg4: memref<1x32xf32, #tpu.memory_space<vmem>>, %arg5: memref<5x32xf32, #tpu.memory_space<vmem>>, %arg6: memref<1x5xf32, #tpu.memory_space<vmem>>, %arg7: memref<2x5xf32, #tpu.memory_space<vmem>>, %arg8: memref<2x32xf32, #tpu.memory_space<vmem>>) attributes {dimension_semantics = [#tpu.dimension_semantics<parallel>, #tpu.dimension_semantics<arbitrary>], iteration_bounds = array<i64: 1, 2>, scalar_prefetch = 0 : i64, scratch_operands = 1 : i64, tpu.core_type = #tpu.core_type<tc>, window_params = [{transform_indices = @transform_0, window_bounds = array<i64: 2, 32768>}, {transform_indices = @transform_1, window_bounds = array<i64: 32, 32768>}, {pipeline_mode = #tpu.pipeline_mode<synchronous>, transform_indices = @transform_2, window_bounds = array<i64: 1, 32>}, {pipeline_mode = #tpu.pipeline_mode<synchronous>, transform_indices = @transform_3, window_bounds = array<i64: 5, 32>}, {pipeline_mode = #tpu.pipeline_mode<synchronous>, transform_indices = @transform_4, window_bounds = array<i64: 1, 5>}, {transform_indices = @transform_5, window_bounds = array<i64: 2, 5>}]} {
    %c0_i32 = arith.constant 0 : i32
    %0 = arith.cmpi eq, %arg1, %c0_i32 : i32
    %1 = arith.extui %0 : i1 to i32
    %c0_i32_0 = arith.constant 0 : i32
    %2 = arith.cmpi ne, %1, %c0_i32_0 : i32
    scf.if %2 {
      %cst_9 = arith.constant 0.000000e+00 : f32
      %12 = vector.broadcast %cst_9 : f32 to vector<2x32xf32>
      %c0_10 = arith.constant 0 : index
      %c0_11 = arith.constant 0 : index
      %13 = vector.load %arg8[%c0_10, %c0_11] : memref<2x32xf32, #tpu.memory_space<vmem>>, vector<2x32xf32>
      tpu.vector_store %arg8[%c0_10, %c0_11], %12 {strides = array<i32>} : memref<2x32xf32, #tpu.memory_space<vmem>>, vector<2x32xf32>,
    } else {
    }
    %c0 = arith.constant 0 : index
    %c0_1 = arith.constant 0 : index
    %3 = vector.load %arg8[%c0, %c0_1] : memref<2x32xf32, #tpu.memory_space<vmem>>, vector<2x32xf32>
    %c0_2 = arith.constant 0 : index
    %c0_3 = arith.constant 0 : index
    %4 = vector.load %arg2[%c0_2, %c0_3] : memref<2x32768xf32, #tpu.memory_space<vmem>>, vector<2x32768xf32>
    %c0_4 = arith.constant 0 : index
    %c0_5 = arith.constant 0 : index
    %5 = vector.load %arg3[%c0_4, %c0_5] : memref<32x32768xf32, #tpu.memory_space<vmem>>, vector<32x32768xf32>
    %cst = arith.constant dense<0.000000e+00> : vector<2x32xf32>
    %6 = tpu.matmul %4, %5, %cst {dimension_numbers = #tpu.dot_dimension_numbers<[1], [1], [0], [0], [0, 0, 1, 0], [], []>} : vector<2x32768xf32>, vector<32x32768xf32>, vector<2x32xf32> -> vector<2x32xf32>
    %7 = arith.addf %3, %6 : vector<2x32xf32>
    %c0_6 = arith.constant 0 : index
    %c0_7 = arith.constant 0 : index
    %8 = vector.load %arg8[%c0_6, %c0_7] : memref<2x32xf32, #tpu.memory_space<vmem>>, vector<2x32xf32>
    tpu.vector_store %arg8[%c0_6, %c0_7], %7 {strides = array<i32>} : memref<2x32xf32, #tpu.memory_space<vmem>>, vector<2x32xf32>,
    %c1_i32 = arith.constant 1 : i32
    %9 = arith.cmpi eq, %arg1, %c1_i32 : i32
    %10 = arith.extui %9 : i1 to i32
    %c0_i32_8 = arith.constant 0 : i32
    %11 = arith.cmpi ne, %10, %c0_i32_8 : i32
    scf.if %11 {
      %c0_9 = arith.constant 0 : index
      %c0_10 = arith.constant 0 : index
      %12 = vector.load %arg8[%c0_9, %c0_10] : memref<2x32xf32, #tpu.memory_space<vmem>>, vector<2x32xf32>
      %c0_11 = arith.constant 0 : index
      %c0_12 = arith.constant 0 : index
      %13 = vector.load %arg4[%c0_11, %c0_12] : memref<1x32xf32, #tpu.memory_space<vmem>>, vector<1x32xf32>
      %14 = vector.broadcast %13 : vector<1x32xf32> to vector<2x32xf32>
      %15 = arith.addf %12, %14 : vector<2x32xf32>
      %cst_13 = arith.constant 0.000000e+00 : f32
      %16 = vector.broadcast %cst_13 : f32 to vector<2x32xf32>
      %17 = arith.maximumf %15, %16 : vector<2x32xf32>
      %c0_14 = arith.constant 0 : index
      %c0_15 = arith.constant 0 : index
      %18 = vector.load %arg5[%c0_14, %c0_15] : memref<5x32xf32, #tpu.memory_space<vmem>>, vector<5x32xf32>
      %cst_16 = arith.constant dense<0.000000e+00> : vector<2x5xf32>
      %19 = tpu.matmul %17, %18, %cst_16 {dimension_numbers = #tpu.dot_dimension_numbers<[1], [1], [0], [0], [0, 0, 1, 0], [], []>} : vector<2x32xf32>, vector<5x32xf32>, vector<2x5xf32> -> vector<2x5xf32>
      %c0_17 = arith.constant 0 : index
      %c0_18 = arith.constant 0 : index
      %20 = vector.load %arg6[%c0_17, %c0_18] : memref<1x5xf32, #tpu.memory_space<vmem>>, vector<1x5xf32>
      %21 = vector.broadcast %20 : vector<1x5xf32> to vector<2x5xf32>
      %22 = arith.addf %19, %21 : vector<2x5xf32>
      %c0_19 = arith.constant 0 : index
      %c0_20 = arith.constant 0 : index
      %23 = vector.load %arg7[%c0_19, %c0_20] : memref<2x5xf32, #tpu.memory_space<vmem>>, vector<2x5xf32>
      tpu.vector_store %arg7[%c0_19, %c0_20], %22 {strides = array<i32>} : memref<2x5xf32, #tpu.memory_space<vmem>>, vector<2x5xf32>,
    } else {
    }
    return
  }
  func.func @transform_0(%arg0: i32, %arg1: i32) -> (i32, i32) {
    %c0_i32 = arith.constant 0 : i32
    return %arg0, %arg1 : i32, i32
  }
  func.func @transform_1(%arg0: i32, %arg1: i32) -> (i32, i32) {
    %c0_i32 = arith.constant 0 : i32
    %c0_i32_0 = arith.constant 0 : i32
    return %c0_i32, %arg1 : i32, i32
  }
  func.func @transform_2(%arg0: i32, %arg1: i32) -> (i32, i32) {
    %c0_i32 = arith.constant 0 : i32
    %c0_i32_0 = arith.constant 0 : i32
    %c0_i32_1 = arith.constant 0 : i32
    return %c0_i32, %c0_i32_0 : i32, i32
  }
  func.func @transform_3(%arg0: i32, %arg1: i32) -> (i32, i32) {
    %c0_i32 = arith.constant 0 : i32
    %c0_i32_0 = arith.constant 0 : i32
    %c0_i32_1 = arith.constant 0 : i32
    return %c0_i32, %c0_i32_0 : i32, i32
  }
  func.func @transform_4(%arg0: i32, %arg1: i32) -> (i32, i32) {
    %c0_i32 = arith.constant 0 : i32
    %c0_i32_0 = arith.constant 0 : i32
    %c0_i32_1 = arith.constant 0 : i32
    return %c0_i32, %c0_i32_0 : i32, i32
  }
  func.func @transform_5(%arg0: i32, %arg1: i32) -> (i32, i32) {
    %c0_i32 = arith.constant 0 : i32
    %c0_i32_0 = arith.constant 0 : i32
    return %arg0, %c0_i32 : i32, i32
  }
}

</mosaic_0001>

<bundles_post_ra>
// kernel: baseline_model_forward.1
= control target key start
LH: loop header
LB: loop body
LE: loop exit
PB: predicated region body
PF: predicated region fallthrough
CT: control target
= control target key end

     0   :  { %10 = vsyncpa [#allocation4], 0  ;;  %s14941_s0 = inlined_call_operand.vmem [shape: f32[2,65536], index: 0, kind: input, shape index: {}]   ;;  %s14942_s1 = inlined_call_operand.hbm [shape: f32[32,65536], index: 1, kind: input, shape index: {}]   ;;  %s14943_s2 = inlined_call_operand.hbm [shape: f32[1,32], index: 2, kind: input, shape index: {}]   ;;  %s14944_s3 = inlined_call_operand.hbm [shape: f32[5,32], index: 3, kind: input, shape index: {}]   ;;  %s14945_s4 = inlined_call_operand.hbm [shape: f32[1,5], index: 4, kind: input, shape index: {}]   ;;  %s14946_s5 = inlined_call_operand.hbm [shape: f32[2,5], index: 5, kind: output, shape index: {}]  }
   0x1   :  { %12 = vsyncpa [#allocation4 + $0x1], 0 }
   0x2   :  { %13 = vsyncpa [#allocation7], 0 }
   0x3   :  { %14 = vsyncpa [#allocation10], 0 }
   0x4   :  { %15 = vsyncpa [#allocation5], 0  ;;  %s13475_s18 = smov 0   ;;  %s13477_s19 = smov 0  }
   0x5   :  { %s13479_s20 = smov 0   ;;  %s13481_s21 = smov 0  }
   0x6   :  { %s13483_s22 = smov 0   ;;  %s13485_s23 = smov 0  }
   0x7 LB: > { %s12007_s24 = sadd.s32 4294967295, %s13431_s23   ;;  %p75_p0 = scmp.ne.s32.totalorder %s13419_s20, %s13415_s19  ;;  %s13431_s23 = sphi %s13485_s23, %s21_s23   ;;  %s13427_s22 = sphi %s13483_s22, %s14968_s22   ;;  %s13423_s21 = sphi %s13481_s21, %s14967_s21   ;;  %s13419_s20 = sphi %s13479_s20, %s14966_s20   ;;  %s13415_s19 = sphi %s13477_s19, %s14965_s19   ;;  %s13411_s18 = sphi %s13475_s18, %s14964_s18  }
   0x8   : > { %p76_p1 = scmp.eq.s32.totalorder %s13431_s23, 0  ;;  %p81_p2 = scmp.ne.s32.totalorder %s13415_s19, %s13411_s18 }
   0x9   : > { %p13510_p3 = scmp.eq.s32.totalorder %s12007_s24, 0  ;;  %p12008_p4 = scmp.ge.s32.totalorder %s13431_s23, 1 }
   0xa   : > { %p77_p5 = por %p76_p1, %p75_p0  ;;  %p181_p6 = scmp.lt.s32.totalorder %s13431_s23, 3 }
   0xb   : > { %s14952_s25 = scalar_select %p13510_p3, 1, 0 }
   0xc   : > { %p13518_p7 = por %p13510_p3, %p81_p2  ;;  %p13522_p8 = pnand %p12008_p4, %p181_p6 }
   0xd   : > { %s13433_s28 = smov [#allocation6]   ;;  %p13100_p10 = scmp.lt.s32.totalorder %s13431_s23, 2 }
   0xe   : > { %s14953_s26 = scalar_select %p13518_p7, 1, 0 }
   0xf   : > { %s14954_s27 = scalar_select %p13522_p8, 1, 0 }
  0x10   : > { %s194_s29 = sshll.u32 %s13433_s28, 4  ;;  %p13083_p9 = pneg %p13522_p8  ;;  %s195_s29 = int_to_ptr.vmem [resolvable:$true] %s194_s29 }
  0x11   : > { %s13434_s6 = smov [#allocation8]   ;;  %p13535_p12 = pnand %p13100_p10, %p77_p5 }
  0x12   : > { %p13531_p11 = pnand %p13083_p9, %p13510_p3  ;;  %s205_s7 = sshll.u32 %s13434_s6, 4  ;;  %s13539_s7 = int_to_ptr.vmem [resolvable:$true] %s205_s7 }
  0x13   : > { %s14956_s8 = scalar_select %p13535_p12, 1, 0 }
  0x14   : > { %s13229_s11 = scalar_lea.hbm %s14943_s2, 16  ;;  %p13549_p0 = pneg %p13531_p11 }
  0x15   : > { %p13230_p13 = scmp.ne.s32.totalorder %s14943_s2, %s13229_s11  ;;  %p13236_p4 = scmp.lt.u32.totalorder %s13229_s11, %s14943_s2 }
  0x17   : > { %p13232_p1 = pnand %p13549_p0, %p13230_p13 }
  0x19   : > { %p13233_p2 = pneg %p13232_p1 }
  0x1b   : > { %p13238_p5 = pnand %p13236_p4, %p13233_p2 }
  0x1d   : > { %13241 = shalt.err (!%p13238_p5)
}
  0x1e   : > { %s13242_s17 = scalar_lea.vmem %s195_s29, 16  ;;  %s13249_s18 = scalar_lea.vmem %s195_s29, 32 }
  0x1f   : > { %p13243_p6 = scmp.ne.s32.totalorder %s195_s29, %s13242_s17  ;;  %p13250_p3 = scmp.lt.s32.totalorder %s195_s29, %s195_s29 }
  0x20   : > { %p13251_p7 = scmp.lt.s32.totalorder %s13249_s18, %s13242_s17 }
  0x21   : > { %p13245_p9 = pnand %p13243_p6, %p13549_p0 }
  0x22   : > { %p13252_p8 = por %p13251_p7, %p13250_p3 }
  0x23   : > { %p13246_p10 = pneg %p13245_p9 }
  0x25   : > { %p13253_p12 = pnand %p13252_p8, %p13246_p10 }
  0x27   : > { %13256 = shalt.err (!%p13253_p12)
}
  0x28   : > { %13086 = dma.hbm_to_vmem [thread:$0]  (!%p13531_p11), %s14943_s2, 16, %s195_s29, [#allocation7]  }
  0x29   : > { %s13435_s9 = smov [#allocation9]   ;;  %s13257_s13 = scalar_lea.hbm %s14944_s3, 128 }
  0x2a   : > { %s216_s10 = sshll.u32 %s13435_s9, 4  ;;  %p13258_p13 = scmp.ne.s32.totalorder %s14944_s3, %s13257_s13  ;;  %s217_s10 = int_to_ptr.vmem [resolvable:$true] %s216_s10 }
  0x2b   : > { %p13264_p8 = scmp.lt.u32.totalorder %s13257_s13, %s14944_s3 }
  0x2c   : > { %p13260_p3 = pnand %p13258_p13, %p13549_p0 }
  0x2e   : > { %p13261_p7 = pneg %p13260_p3 }
  0x30   : > { %p13266_p12 = pnand %p13264_p8, %p13261_p7 }
  0x32   : > { %13269 = shalt.err (!%p13266_p12)
}
  0x33   : > { %s13270_s29 = scalar_lea.vmem %s13539_s7, 128  ;;  %p13278_p5 = scmp.lt.s32.totalorder %s13539_s7, %s13539_s7 }
  0x34   : > { %p13271_p1 = scmp.ne.s32.totalorder %s13539_s7, %s13270_s29  ;;  %p13279_p6 = scmp.lt.s32.totalorder %s13270_s29, %s13270_s29 }
  0x36   : > { %p13273_p2 = pnand %p13271_p1, %p13549_p0  ;;  %p13280_p9 = por %p13279_p6, %p13278_p5 }
  0x38   : > { %p13274_p4 = pneg %p13273_p2 }
  0x3a   : > { %p13281_p10 = pnand %p13280_p9, %p13274_p4 }
  0x3c   : > { %13284 = shalt.err (!%p13281_p10)
}
  0x3d   : > { %13089 = dma.hbm_to_vmem [thread:$0]  (!%p13531_p11), %s14944_s3, 128, %s13539_s7, [#allocation7]  }
  0x3e   : > { %s13285_s12 = scalar_lea.hbm %s14945_s4, 16 }
  0x3f   : > { %p13286_p13 = scmp.ne.s32.totalorder %s14945_s4, %s13285_s12  ;;  %p13292_p8 = scmp.lt.u32.totalorder %s13285_s12, %s14945_s4 }
  0x41   : > { %p13288_p3 = pnand %p13286_p13, %p13549_p0 }
  0x43   : > { %p13289_p7 = pneg %p13288_p3 }
  0x45   : > { %p13294_p12 = pnand %p13292_p8, %p13289_p7 }
  0x47   : > { %13297 = shalt.err (!%p13294_p12)
}
  0x48   : > { %s13298_s18 = scalar_lea.vmem %s217_s10, 16  ;;  %s13305_s7 = scalar_lea.vmem %s217_s10, 32 }
  0x49   : > { %p13299_p1 = scmp.ne.s32.totalorder %s217_s10, %s13298_s18  ;;  %p13306_p5 = scmp.lt.s32.totalorder %s217_s10, %s217_s10 }
  0x4a   : > { %p13307_p6 = scmp.lt.s32.totalorder %s13305_s7, %s13298_s18 }
  0x4b   : > { %p13301_p2 = pnand %p13299_p1, %p13549_p0 }
  0x4c   : > { %p13308_p9 = por %p13307_p6, %p13306_p5 }
  0x4d   : > { %p13302_p4 = pneg %p13301_p2 }
  0x4f   : > { %p13309_p10 = pnand %p13308_p9, %p13302_p4 }
  0x51   : > { %13312 = shalt.err (!%p13309_p10)
}
  0x52   : > { %13092 = dma.hbm_to_vmem [thread:$0]  (!%p13531_p11), %s14945_s4, 16, %s217_s10, [#allocation10]  }
  0x53   : > { %s68_s14 = sadd.s32 1, %s13419_s20  ;;  %s30_s6 = sadd.s32 1, %s13427_s22 }
  0x54   : > { %s240_s9 = sand.u32 1, %s13419_s20   ;;  %p31_p0 = scmp.ge.s32.totalorder %s30_s6, 2 }
  0x55   : > { %s12013_s11 = sshll.u32 %s240_s9, 13  ;;  %s12033_s12 = sshll.u32 %s13427_s22, 15 }
  0x56   : > { %s14970_s6 = smov (%p31_p0, %s30_s6), 0  ;;  %s13615_s15 = scalar_lea.hbm %s14942_s1, %s12033_s12 }
  0x57   : > { %s65_s10 = ssub.s32 %s13427_s22, %s14970_s6  ;;  %s244_s16 = scalar_lea.vmem [#allocation3], %s12013_s11 }
  0x58   : > { %s251_s17 = sshll.u32 %s244_s16, 4  ;;  %p66_p11 = scmp.eq.s32.totalorder %s65_s10, 0  ;;  %s13619_s17 = int_to_ptr.vmem [resolvable:$true] %s251_s17 }
  0x59   : > { %s13624_s7 = scalar_lea.sflag [#allocation4], %s240_s9  ;;  %s13313_s29 = scalar_lea.hbm %s13615_s15, 131072 }
  0x5a   : > { %s13622_s18 = scalar_select %p66_p11, %s13419_s20, %s68_s14  }
  0x5b   : > { %p13314_p13 = scmp.ne.s32.totalorder %s13615_s15, %s13313_s29  ;;  %p14958_p3 = scmp.ne.s32.totalorder %s14956_s8, 0 }
  0x5c   : > { %s13318_s11 = scalar_lea.hbm %s14942_s1, 262144  ;;  %p13319_p1 = scmp.lt.u32.totalorder %s13615_s15, %s14942_s1 }
  0x5d   : > { %p13315_p7 = pneg %p14958_p3  ;;  %p13320_p2 = scmp.lt.u32.totalorder %s13318_s11, %s13313_s29 }
  0x5e   : > { %p13322_p5 = scmp.lt.u32.totalorder %s13313_s29, %s13615_s15 }
  0x5f   : > { %p13316_p8 = pnand %p13315_p7, %p13314_p13  ;;  %p13321_p4 = por %p13320_p2, %p13319_p1 }
  0x61   : > { %p13317_p12 = pneg %p13316_p8  ;;  %p13323_p6 = por %p13322_p5, %p13321_p4 }
  0x63   : > { %p13324_p9 = pnand %p13323_p6, %p13317_p12 }
  0x65   : > { %13327 = shalt.err (!%p13324_p9)
}
  0x66   : > { %s13328_s14 = scalar_lea.vmem %s13619_s17, 131072  ;;  %s13436_s9 = smov [#allocation3]  }
  0x67   : > { %p13329_p10 = scmp.ne.s32.totalorder %s13619_s17, %s13328_s14  ;;  %s13333_s10 = sshll.u32 %s13436_s9, 4  ;;  %s13334_s10 = int_to_ptr.vmem [resolvable:$false] %s13333_s10 }
  0x68   : > { %s13335_s16 = scalar_lea.vmem %s13334_s10, 262144  ;;  %p13336_p13 = scmp.lt.s32.totalorder %s13619_s17, %s13334_s10 }
  0x69   : > { %p13331_p0 = pnand %p13329_p10, %p13315_p7  ;;  %p13337_p8 = scmp.lt.s32.totalorder %s13335_s16, %s13328_s14 }
  0x6b   : > { %p13332_p11 = pneg %p13331_p0  ;;  %p13338_p1 = por %p13337_p8, %p13336_p13 }
  0x6d   : > { %p13339_p2 = pnand %p13338_p1, %p13332_p11 }
  0x6f   : > { %13342 = shalt.err (!%p13339_p2)
}
  0x70   : > { %s13437_s29 = smov 65536   ;;  %s13438_s28 = smov 32768  }
  0x71   : > { %s13439_s12 = smov 2048   ;;  %p14959_p7 = scmp.ne.s32.totalorder %s14954_s27, 0 }
  0x72   : > { %13096 = dma.hbm_to_vmem [thread:$0]  (!%p14958_p3), %s13615_s15, 131072, %s13619_s17, %s13624_s7, %s13437_s29, %s13438_s28, %s13439_s12  }
  0x73   : > { %263 = sbr.rel (%p14959_p7) target bundleno = 1635 (0x663), region = 40  ;;  %s265_s11 = sand.u32 (!%p14959_p7), 1, %s13415_s19  }
  0x74   : > { %s12017_s30 = sshll.u32 (!%p14959_p7), %s265_s11, 13  ;;  %s266_s13 = scalar_lea.sflag (!%p14959_p7), [#allocation4], %s265_s11 }
  0x75   : > { %s13655_s14 = scalar_lea.vmem (!%p14959_p7), [#allocation3], %s12017_s30  ;;  %p14960_p12 = scmp.ne.s32.totalorder (!%p14959_p7), %s14953_s26, 0 }
  0x7a   : > { %13394 = dma.done.wait (%p14960_p12), %s266_s13, 131072  }
  0x7b   : > { %13396 = vsyncadd (%p14960_p12), %s266_s13, 4294836224  ;;  %p14961_p4 = scmp.ne.s32.totalorder %s14952_s25, 0 }
  0x7d   : > { %13398 = dma.done.wait (%p14961_p4), [#allocation7], 144  }
  0x7e   : > { %13400 = vsyncadd (%p14961_p4), [#allocation7], 4294967152 }
  0x7f   : > { %13402 = dma.done.wait (%p14961_p4), [#allocation10], 16  }
  0x80   : > { %13404 = vsyncadd (%p14961_p4), [#allocation10], 4294967280  ;;  %s12021_s27 = sshll.u32 %s13423_s21, 8  ;;  %p12023_p5 = scmp.ne.s32.totalorder %s13423_s21, 0 }
  0x81   : > { %p315_p3 = scmp.lt.s32.totalorder %s12021_s27, 511  ;;  %vm327_vm0 = vcmask (!%p12023_p5), 254976   ;;  %v13440_v0 = vmov (!%p12023_p5), 0.0  }
  0x82   : > { %326 = sbr.rel (%p12023_p5) target bundleno = 137 (0x89), region = 60  ;;  %328 = vst.msk [vmem:[#allocation2] sm:$0x3] (!%p12023_p5), %vm327_vm0, %v13440_v0 }
  0x83   : > { %s14972_s27 = smov (!%p315_p3, %s12021_s27), 511 }
  0x84   : > { %s12022_s8 = sshll.u32 %s14972_s27, 1 }
  0x85   : > { %s13673_s17 = scalar_lea.vmem %s14941_s0, %s12022_s8 }
  0x89 PF: > { %v395_v1 = vld [vmem:[%s13655_s14 + $0x8] sm:$0xff]  ;;  %v394_v3 = vld [vmem:[%s13655_s14] sm:$0xff]  ;;  %v1486_v4 = vlaneseq  ;;  %v397_v7 = vld [vmem:[%s13655_s14 + $0x18] sm:$0xff]  ;;  %v13441_v9 = vmov 1983009808   ;;  %vm11787_vm1 = vcmask 254976  }
  0x8a   : > { %v651_v2 = vld [vmem:[%s13655_s14 + $0x808] sm:$0xff]  ;;  %v650_v6 = vld [vmem:[%s13655_s14 + $0x800] sm:$0xff]  ;;  %v653_v8 = vld [vmem:[%s13655_s14 + $0x818] sm:$0xff]  ;;  %v1484_v10 = vunpack.c.l.s4 %v13441_v9  ;;  %p12024_p6 = scmp.ne.s32.totalorder %s13423_s21, 1 }
  0x8b   : > { %v12041_v5 = vpack.c.bf16 %v651_v2, %v395_v1  ;;  %v12043_v11 = vpack.c.bf16 %v650_v6, %v394_v3  ;;  %v12049_v12 = vpack.c.bf16 %v653_v8, %v397_v7  ;;  %v396_v13 = vld [vmem:[%s13655_s14 + $0x10] sm:$0xff]  ;;  %v907_v15 = vld [vmem:[%s13655_s14 + $0x1008] sm:$0xff]  ;;  %v1487_v16 = vshrl.u32 %v1486_v4, 7  ;;  %v906_v21 = vld [vmem:[%s13655_s14 + $0x1000] sm:$0xff] }
  0x8c   : > { %v652_v14 = vld [vmem:[%s13655_s14 + $0x810] sm:$0xff]  ;;  %v1163_v18 = vld [vmem:[%s13655_s14 + $0x1808] sm:$0xff]  ;;  %v1485_v19 = vunpack.c.0.s8 %v1484_v10  ;;  %v909_v22 = vld [vmem:[%s13655_s14 + $0x1018] sm:$0xff]  ;;  %vm11811_vm2 = vcmask (!%p12024_p6), 261120   ;;  %vm13443_vm3 = vmmov (!%p12024_p6), 0   ;;  %vm11888_vm4 = vcmask (!%p12024_p6), 33792  }
  0x8d   : > { %12042 = vmatprep.subr.bf16.mxu0 %v12041_v5  ;;  %v12051_v17 = vpack.c.bf16 %v652_v14, %v396_v13  ;;  %12050 = vmatprep.subr.bf16.mxu1 %v12049_v12  ;;  %v12045_v20 = vpack.c.bf16 %v1163_v18, %v907_v15  ;;  %v1165_v23 = vld [vmem:[%s13655_s14 + $0x1818] sm:$0xff]  ;;  %v1162_v24 = vld [vmem:[%s13655_s14 + $0x1800] sm:$0xff]  ;;  %v908_v26 = vld [vmem:[%s13655_s14 + $0x1010] sm:$0xff] }
  0x8e   : > { %12044 = vmatpush1.bf16.xpose.msra.mxu0 %v12043_v11  ;;  %v12053_v25 = vpack.c.bf16 %v1165_v23, %v909_v22  ;;  %v330_v27 = vld [vmem:[%s13673_s17] sm:$0xff]  ;;  %v13692_v28 = vsub.s32 %v1485_v19, %v1487_v16  ;;  %v1164_v29 = vld [vmem:[%s13655_s14 + $0x1810] sm:$0xff]  ;;  %v399_v31 = vld [vmem:[%s13655_s14 + $0x28] sm:$0xff]  ;;  %v12047_v36 = vpack.c.bf16 %v1162_v24, %v906_v21 }
  0x8f   : > { %12052 = vmatpush1.bf16.xpose.msra.mxu1 %v12051_v17  ;;  %12046 = vmatprep.subr.bf16.mxu0 %v12045_v20  ;;  %v1482_v30 = vcombine.high %v330_v27, %v330_v27  ;;  %v655_v32 = vld [vmem:[%s13655_s14 + $0x828] sm:$0xff]  ;;  %v401_v34 = vld [vmem:[%s13655_s14 + $0x38] sm:$0xff]  ;;  %v12055_v38 = vpack.c.bf16 %v1164_v29, %v908_v26  ;;  %v398_v45 = vld [vmem:[%s13655_s14 + $0x20] sm:$0xff] }
  0x90   : > { %12054 = vmatprep.subr.bf16.mxu1 %v12053_v25  ;;  %v1489_v33 = vrot.slane %v330_v27, %v13692_v28  ;;  %v657_v35 = vld [vmem:[%s13655_s14 + $0x838] sm:$0xff]  ;;  %v12057_v40 = vpack.c.bf16 %v655_v32, %v399_v31  ;;  %v331_v43 = vld [vmem:[%s13673_s17 + $0x8] sm:$0xff]  ;;  %v400_v47 = vld [vmem:[%s13655_s14 + $0x30] sm:$0xff] }
  0x91   : > { %v1496_v37 = vrot.slane %v1482_v30, %v13692_v28  ;;  %v12065_v42 = vpack.c.bf16 %v657_v35, %v401_v34  ;;  %v1499_v44 = vcombine.high %v331_v43, %v331_v43  ;;  %v654_v46 = vld [vmem:[%s13655_s14 + $0x820] sm:$0xff]  ;;  %v656_v48 = vld [vmem:[%s13655_s14 + $0x830] sm:$0xff]  ;;  %v911_v49 = vld [vmem:[%s13655_s14 + $0x1028] sm:$0xff]  ;;  %v1506_v51 = vrot.slane %v331_v43, %v13692_v28 }
  0x92   : > { %v1497_v39 = vcombine.high %v1489_v33, %v1489_v33  ;;  %v1167_v50 = vld [vmem:[%s13655_s14 + $0x1828] sm:$0xff]  ;;  %v913_v52 = vld [vmem:[%s13655_s14 + $0x1038] sm:$0xff]  ;;  %v12059_v55 = vpack.c.bf16 %v654_v46, %v398_v45  ;;  %v12067_v56 = vpack.c.bf16 %v656_v48, %v400_v47  ;;  %v910_v61 = vld [vmem:[%s13655_s14 + $0x1020] sm:$0xff] }
  0x93   : > { %v1498_v41 = vcombine.high %v1496_v37, %v1496_v37  ;;  %v1169_v53 = vld [vmem:[%s13655_s14 + $0x1838] sm:$0xff]  ;;  %v1513_v54 = vrot.slane %v1499_v44, %v13692_v28  ;;  %v12061_v57 = vpack.c.bf16 %v1167_v50, %v911_v49  ;;  %v1514_v59 = vcombine.high %v1506_v51, %v1506_v51  ;;  %v1166_v62 = vld [vmem:[%s13655_s14 + $0x1820] sm:$0xff]  ;;  %v912_v63 = vld [vmem:[%s13655_s14 + $0x1030] sm:$0xff] }
  0x94   : > { %2890 = vmatprep.mubr.f32.mxu0 %v1497_v39  ;;  %v12069_v58 = vpack.c.bf16 %v1169_v53, %v913_v52  ;;  %v1168_v0 = vld [vmem:[%s13655_s14 + $0x1830] sm:$0xff]  ;;  %v403_v1 = vld [vmem:[%s13655_s14 + $0x48] sm:$0xff]  ;;  %v405_v3 = vld [vmem:[%s13655_s14 + $0x58] sm:$0xff]  ;;  %v12063_v5 = vpack.c.bf16 %v1166_v62, %v910_v61 }
  0x95   : > { %2960 = vmatprep.mubr.f32.mxu1 %v1498_v41  ;;  %v1515_v60 = vcombine.high %v1513_v54, %v1513_v54  ;;  %v659_v2 = vld [vmem:[%s13655_s14 + $0x848] sm:$0xff]  ;;  %v661_v4 = vld [vmem:[%s13655_s14 + $0x858] sm:$0xff]  ;;  %v12071_v7 = vpack.c.bf16 %v1168_v0, %v912_v63  ;;  %v402_v11 = vld [vmem:[%s13655_s14 + $0x40] sm:$0xff] }
  0x96   : > { %12048 = vmatpush1.bf16.xpose.msra.mxu0 %v12047_v36  ;;  %v332_v6 = vld [vmem:[%s13673_s17 + $0x10] sm:$0xff]  ;;  %v12073_v8 = vpack.c.bf16 %v659_v2, %v403_v1  ;;  %v12081_v9 = vpack.c.bf16 %v661_v4, %v405_v3  ;;  %v658_v12 = vld [vmem:[%s13655_s14 + $0x840] sm:$0xff]  ;;  %v917_v18 = vld [vmem:[%s13655_s14 + $0x1058] sm:$0xff] }
  0x97   : > { %12056 = vmatpush1.bf16.xpose.msra.mxu1 %v12055_v38  ;;  %12058 = vmatprep.subr.bf16.mxu0 %v12057_v40  ;;  %v1516_v10 = vcombine.high %v332_v6, %v332_v6  ;;  %v404_v13 = vld [vmem:[%s13655_s14 + $0x50] sm:$0xff]  ;;  %v915_v15 = vld [vmem:[%s13655_s14 + $0x1048] sm:$0xff]  ;;  %v1523_v17 = vrot.slane %v332_v6, %v13692_v28  ;;  %v1173_v19 = vld [vmem:[%s13655_s14 + $0x1858] sm:$0xff]  ;;  %v12075_v21 = vpack.c.bf16 %v658_v12, %v402_v11 }
  0x98   : > { %12066 = vmatprep.subr.bf16.mxu1 %v12065_v42  ;;  %v660_v14 = vld [vmem:[%s13655_s14 + $0x850] sm:$0xff]  ;;  %v1171_v16 = vld [vmem:[%s13655_s14 + $0x1848] sm:$0xff]  ;;  %v12085_v24 = vpack.c.bf16 %v1173_v19, %v917_v18  ;;  %v914_v27 = vld [vmem:[%s13655_s14 + $0x1040] sm:$0xff] }
  0x99   : > { %v1530_v20 = vrot.slane %v1516_v10, %v13692_v28  ;;  %v12083_v22 = vpack.c.bf16 %v660_v14, %v404_v13  ;;  %v12077_v23 = vpack.c.bf16 %v1171_v16, %v915_v15  ;;  %v1531_v25 = vcombine.high %v1523_v17, %v1523_v17  ;;  %v1170_v29 = vld [vmem:[%s13655_s14 + $0x1840] sm:$0xff]  ;;  %v916_v30 = vld [vmem:[%s13655_s14 + $0x1050] sm:$0xff]  ;;  %v407_v32 = vld [vmem:[%s13655_s14 + $0x68] sm:$0xff] }
  0x9a   : > { %v1172_v31 = vld [vmem:[%s13655_s14 + $0x1850] sm:$0xff]  ;;  %v409_v34 = vld [vmem:[%s13655_s14 + $0x78] sm:$0xff]  ;;  %v12079_v36 = vpack.c.bf16 %v1170_v29, %v914_v27  ;;  %v406_v42 = vld [vmem:[%s13655_s14 + $0x60] sm:$0xff] }
  0x9b   : > { %v1532_v26 = vcombine.high %v1530_v20, %v1530_v20  ;;  %v665_v35 = vld [vmem:[%s13655_s14 + $0x878] sm:$0xff]  ;;  %v12087_v38 = vpack.c.bf16 %v1172_v31, %v916_v30  ;;  %v662_v43 = vld [vmem:[%s13655_s14 + $0x860] sm:$0xff]  ;;  %v408_v44 = vld [vmem:[%s13655_s14 + $0x70] sm:$0xff] }
  0x9c   : > { %v12097_v40 = vpack.c.bf16 %v665_v35, %v409_v34  ;;  %v664_v45 = vld [vmem:[%s13655_s14 + $0x870] sm:$0xff]  ;;  %v919_v46 = vld [vmem:[%s13655_s14 + $0x1068] sm:$0xff]  ;;  %v921_v49 = vld [vmem:[%s13655_s14 + $0x1078] sm:$0xff]  ;;  %v12091_v52 = vpack.c.bf16 %v662_v43, %v406_v42 }
  0x9d   : > { %2891 = vmatmul.mubr.f32.vlgmr.msra.gmra.mrb[0].mxu0 %v1489_v33  ;;  %v663_v33 = vld [vmem:[%s13655_s14 + $0x868] sm:$0xff]  ;;  %v1177_v50 = vld [vmem:[%s13655_s14 + $0x1878] sm:$0xff]  ;;  %v12099_v53 = vpack.c.bf16 %v664_v45, %v408_v44  ;;  %v1176_v61 = vld [vmem:[%s13655_s14 + $0x1870] sm:$0xff] }
  0x9e   : > { %2961 = vmatmul.mubr.f32.vlgmr.msra.gmra.mrb[0].mxu1 %v1496_v37  ;;  %12060 = vmatpush1.bf16.xpose.msra.mxu0 %v12059_v55  ;;  %v333_v37 = vld [vmem:[%s13673_s17 + $0x18] sm:$0xff]  ;;  %v12089_v39 = vpack.c.bf16 %v663_v33, %v407_v32  ;;  %v1175_v47 = vld [vmem:[%s13655_s14 + $0x1868] sm:$0xff]  ;;  %v12101_v55 = vpack.c.bf16 %v1177_v50, %v921_v49  ;;  %v334_v3 = vld [vmem:[%s13673_s17 + $0x20] sm:$0xff] }
  0x9f   : > { %12068 = vmatpush1.bf16.xpose.msra.mxu1 %v12067_v56  ;;  %12062 = vmatprep.subr.bf16.mxu0 %v12061_v57  ;;  %v1533_v41 = vcombine.high %v333_v37, %v333_v37  ;;  %v1540_v48 = vrot.slane %v333_v37, %v13692_v28  ;;  %v411_v62 = vld [vmem:[%s13655_s14 + $0x88] sm:$0xff]  ;;  %v413_v0 = vld [vmem:[%s13655_s14 + $0x98] sm:$0xff]  ;;  %v412_v10 = vld [vmem:[%s13655_s14 + $0x90] sm:$0xff]  ;;  %v1557_v14 = vrot.slane %v334_v3, %v13692_v28 }
  0xa0   : > { %12070 = vmatprep.subr.bf16.mxu1 %v12069_v58  ;;  %3030 = vmatprep.mubr.f32.mxu0 %v1514_v59  ;;  %v918_v58 = vld [vmem:[%s13655_s14 + $0x1060] sm:$0xff]  ;;  %v667_v63 = vld [vmem:[%s13655_s14 + $0x888] sm:$0xff]  ;;  %v669_v1 = vld [vmem:[%s13655_s14 + $0x898] sm:$0xff] }
  0xa1   : > { %3100 = vmatprep.mubr.f32.mxu1 %v1515_v60  ;;  %v1548_v56 = vcombine.high %v1540_v48, %v1540_v48  ;;  %v1174_v59 = vld [vmem:[%s13655_s14 + $0x1860] sm:$0xff]  ;;  %v920_v60 = vld [vmem:[%s13655_s14 + $0x1070] sm:$0xff]  ;;  %v12113_v6 = vpack.c.bf16 %v669_v1, %v413_v0  ;;  %v923_v12 = vld [vmem:[%s13655_s14 + $0x1088] sm:$0xff] }
  0xa2   : > { %v12095_v2 = vpack.c.bf16 %v1174_v59, %v918_v58  ;;  %v12103_v4 = vpack.c.bf16 %v1176_v61, %v920_v60  ;;  %v668_v11 = vld [vmem:[%s13655_s14 + $0x890] sm:$0xff]  ;;  %v1179_v13 = vld [vmem:[%s13655_s14 + $0x1888] sm:$0xff]  ;;  %v925_v15 = vld [vmem:[%s13655_s14 + $0x1098] sm:$0xff] }
  0xa3   : > { %v1181_v16 = vld [vmem:[%s13655_s14 + $0x1898] sm:$0xff]  ;;  %v12115_v19 = vpack.c.bf16 %v668_v11, %v412_v10  ;;  %v1180_v27 = vld [vmem:[%s13655_s14 + $0x1890] sm:$0xff]  ;;  %v415_v29 = vld [vmem:[%s13655_s14 + $0xa8] sm:$0xff] }
  0xa4   : > { %v671_v30 = vld [vmem:[%s13655_s14 + $0x8a8] sm:$0xff]  ;;  %v417_v31 = vld [vmem:[%s13655_s14 + $0xb8] sm:$0xff]  ;;  %v672_v42 = vld [vmem:[%s13655_s14 + $0x8b0] sm:$0xff] }
  0xa5   : > { %v673_v32 = vld [vmem:[%s13655_s14 + $0x8b8] sm:$0xff]  ;;  %v335_v34 = vld [vmem:[%s13673_s17 + $0x28] sm:$0xff]  ;;  %v1184_v58 = vld [vmem:[%s13655_s14 + $0x18b0] sm:$0xff] }
  0xa6   : > { %12064 = vmatpush1.bf16.xpose.msra.mxu0 %v12063_v5  ;;  %v12105_v5 = vpack.c.bf16 %v667_v63, %v411_v62  ;;  %v12129_v37 = vpack.c.bf16 %v673_v32, %v417_v31  ;;  %v927_v43 = vld [vmem:[%s13655_s14 + $0x10a8] sm:$0xff]  ;;  %v1574_v45 = vrot.slane %v335_v34, %v13692_v28  ;;  %v421_v61 = vld [vmem:[%s13655_s14 + $0xd8] sm:$0xff] }
  0xa7   : > { %12072 = vmatpush1.bf16.xpose.msra.mxu1 %v12071_v7  ;;  %12074 = vmatprep.subr.bf16.mxu0 %v12073_v8  ;;  %v1550_v7 = vcombine.high %v334_v3, %v334_v3  ;;  %v410_v8 = vld [vmem:[%s13655_s14 + $0x80] sm:$0xff]  ;;  %v1183_v44 = vld [vmem:[%s13655_s14 + $0x18a8] sm:$0xff]  ;;  %v677_v62 = vld [vmem:[%s13655_s14 + $0x8d8] sm:$0xff] }
  0xa8   : > { %12082 = vmatprep.subr.bf16.mxu1 %v12081_v9  ;;  %v666_v9 = vld [vmem:[%s13655_s14 + $0x880] sm:$0xff]  ;;  %v419_v59 = vld [vmem:[%s13655_s14 + $0xc8] sm:$0xff]  ;;  %v12145_v3 = vpack.c.bf16 %v677_v62, %v421_v61  ;;  %v337_v31 = vld [vmem:[%s13673_s17 + $0x38] sm:$0xff] }
  0xa9   : > { %v12107_v18 = vpack.c.bf16 %v666_v9, %v410_v8  ;;  %v675_v60 = vld [vmem:[%s13655_s14 + $0x8c8] sm:$0xff]  ;;  %v676_v8 = vld [vmem:[%s13655_s14 + $0x8d0] sm:$0xff]  ;;  %v338_v61 = vld [vmem:[%s13673_s17 + $0x40] sm:$0xff] }
  0xaa   : > { %v336_v0 = vld [vmem:[%s13673_s17 + $0x30] sm:$0xff] }
  0xab   : > { %v931_v9 = vld [vmem:[%s13655_s14 + $0x10c8] sm:$0xff]  ;;  %v1591_v11 = vrot.slane %v336_v0, %v13692_v28 }
  0xac   : > { %v1187_v10 = vld [vmem:[%s13655_s14 + $0x18c8] sm:$0xff] }
  0xad   : > { %3031 = vmatmul.mubr.f32.vlgmr.msra.gmra.mrb[2].mxu0 %v1506_v51  ;;  %v1547_v51 = vrot.slane %v1533_v41, %v13692_v28  ;;  %v416_v41 = vld [vmem:[%s13655_s14 + $0xb0] sm:$0xff] }
  0xae   : > { %12076 = vmatpush1.bf16.xpose.msra.mxu0 %v12075_v21  ;;  %3101 = vmatmul.mubr.f32.vlgmr.msra.gmra.mrb[2].mxu1 %v1513_v54  ;;  %v12093_v54 = vpack.c.bf16 %v1175_v47, %v919_v46  ;;  %v12117_v21 = vpack.c.bf16 %v1181_v16, %v925_v15  ;;  %v929_v46 = vld [vmem:[%s13655_s14 + $0x10b8] sm:$0xff]  ;;  %v12131_v50 = vpack.c.bf16 %v672_v42, %v416_v41  ;;  %v1191_v41 = vld [vmem:[%s13655_s14 + $0x18e8] sm:$0xff] }
  0xaf   : > { %12084 = vmatpush1.bf16.xpose.msra.mxu1 %v12083_v22  ;;  %12078 = vmatprep.subr.bf16.mxu0 %v12077_v23  ;;  %v1549_v57 = vcombine.high %v1547_v51, %v1547_v51  ;;  %v1565_v22 = vcombine.high %v1557_v14, %v1557_v14  ;;  %v1185_v47 = vld [vmem:[%s13655_s14 + $0x18b8] sm:$0xff]  ;;  %v1608_v42 = vrot.slane %v337_v31, %v13692_v28 }
  0xb0   : > { %12086 = vmatprep.subr.bf16.mxu1 %v12085_v24  ;;  %3170 = vmatprep.mubr.f32.mxu0 %v1531_v25  ;;  %v922_v24 = vld [vmem:[%s13655_s14 + $0x1080] sm:$0xff] }
  0xb1   : > { %3240 = vmatprep.mubr.f32.mxu1 %v1532_v26  ;;  %v1178_v25 = vld [vmem:[%s13655_s14 + $0x1880] sm:$0xff]  ;;  %v924_v26 = vld [vmem:[%s13655_s14 + $0x1090] sm:$0xff] }
  0xb2   : > { %v12111_v33 = vpack.c.bf16 %v1178_v25, %v922_v24  ;;  %v12119_v35 = vpack.c.bf16 %v1180_v27, %v924_v26  ;;  %v1188_v24 = vld [vmem:[%s13655_s14 + $0x18d0] sm:$0xff]  ;;  %v423_v25 = vld [vmem:[%s13655_s14 + $0xe8] sm:$0xff]  ;;  %v425_v27 = vld [vmem:[%s13655_s14 + $0xf8] sm:$0xff] }
  0xb3   : > { %v679_v26 = vld [vmem:[%s13655_s14 + $0x8e8] sm:$0xff] }
  0xb6   : > { %12080 = vmatpush1.bf16.xpose.msra.mxu0 %v12079_v36  ;;  %v12121_v36 = vpack.c.bf16 %v671_v30, %v415_v29  ;;  %v681_v29 = vld [vmem:[%s13655_s14 + $0x8f8] sm:$0xff] }
  0xb7   : > { %12088 = vmatpush1.bf16.xpose.msra.mxu1 %v12087_v38  ;;  %12090 = vmatprep.subr.bf16.mxu0 %v12089_v39  ;;  %v1567_v38 = vcombine.high %v335_v34, %v335_v34  ;;  %v414_v39 = vld [vmem:[%s13655_s14 + $0xa0] sm:$0xff]  ;;  %v12161_v34 = vpack.c.bf16 %v681_v29, %v425_v27 }
  0xb8   : > { %12098 = vmatprep.subr.bf16.mxu1 %v12097_v40  ;;  %v670_v40 = vld [vmem:[%s13655_s14 + $0x8a0] sm:$0xff] }
  0xb9   : > { %v12123_v49 = vpack.c.bf16 %v670_v40, %v414_v39  ;;  %v680_v39 = vld [vmem:[%s13655_s14 + $0x8f0] sm:$0xff]  ;;  %v935_v40 = vld [vmem:[%s13655_s14 + $0x10e8] sm:$0xff] }
  0xba   : > { %v339_v27 = vld [vmem:[%s13673_s17 + $0x48] sm:$0xff] }
  0xbd   : > { %3171 = vmatmul.mubr.f32.vlgmr.msra.gmra.mrb[4].mxu0 %v1523_v17  ;;  %v1564_v17 = vrot.slane %v1550_v7, %v13692_v28  ;;  %v420_v7 = vld [vmem:[%s13655_s14 + $0xd0] sm:$0xff] }
  0xbe   : > { %12092 = vmatpush1.bf16.xpose.msra.mxu0 %v12091_v52  ;;  %3241 = vmatmul.mubr.f32.vlgmr.msra.gmra.mrb[4].mxu1 %v1530_v20  ;;  %v12109_v20 = vpack.c.bf16 %v1179_v13, %v923_v12  ;;  %v12133_v52 = vpack.c.bf16 %v1185_v47, %v929_v46  ;;  %v933_v12 = vld [vmem:[%s13655_s14 + $0x10d8] sm:$0xff]  ;;  %v12147_v16 = vpack.c.bf16 %v676_v8, %v420_v7  ;;  %v1195_v7 = vld [vmem:[%s13655_s14 + $0x1908] sm:$0xff] }
  0xbf   : > { %12100 = vmatpush1.bf16.xpose.msra.mxu1 %v12099_v53  ;;  %12094 = vmatprep.subr.bf16.mxu0 %v12093_v54  ;;  %v1566_v23 = vcombine.high %v1564_v17, %v1564_v17  ;;  %v1582_v53 = vcombine.high %v1574_v45, %v1574_v45  ;;  %v1189_v13 = vld [vmem:[%s13655_s14 + $0x18d8] sm:$0xff]  ;;  %v1625_v8 = vrot.slane %v338_v61, %v13692_v28 }
  0xc0   : > { %12102 = vmatprep.subr.bf16.mxu1 %v12101_v55  ;;  %3310 = vmatprep.mubr.f32.mxu0 %v1548_v56  ;;  %v926_v55 = vld [vmem:[%s13655_s14 + $0x10a0] sm:$0xff] }
  0xc1   : > { %3380 = vmatprep.mubr.f32.mxu1 %v1549_v57  ;;  %v1182_v56 = vld [vmem:[%s13655_s14 + $0x18a0] sm:$0xff]  ;;  %v928_v57 = vld [vmem:[%s13655_s14 + $0x10b0] sm:$0xff] }
  0xc2   : > { %v12127_v63 = vpack.c.bf16 %v1182_v56, %v926_v55  ;;  %v12135_v1 = vpack.c.bf16 %v1184_v58, %v928_v57  ;;  %v1192_v55 = vld [vmem:[%s13655_s14 + $0x18f0] sm:$0xff]  ;;  %v427_v56 = vld [vmem:[%s13655_s14 + $0x108] sm:$0xff]  ;;  %v429_v58 = vld [vmem:[%s13655_s14 + $0x118] sm:$0xff] }
  0xc3   : > { %v683_v57 = vld [vmem:[%s13655_s14 + $0x908] sm:$0xff] }
  0xc6   : > { %12096 = vmatpush1.bf16.xpose.msra.mxu0 %v12095_v2  ;;  %v12137_v2 = vpack.c.bf16 %v675_v60, %v419_v59  ;;  %v685_v59 = vld [vmem:[%s13655_s14 + $0x918] sm:$0xff] }
  0xc7   : > { %12104 = vmatpush1.bf16.xpose.msra.mxu1 %v12103_v4  ;;  %12106 = vmatprep.subr.bf16.mxu0 %v12105_v5  ;;  %v1584_v4 = vcombine.high %v336_v0, %v336_v0  ;;  %v418_v5 = vld [vmem:[%s13655_s14 + $0xc0] sm:$0xff]  ;;  %v12177_v0 = vpack.c.bf16 %v685_v59, %v429_v58  ;;  %v340_v58 = vld [vmem:[%s13673_s17 + $0x50] sm:$0xff] }
  0xc8   : > { %12114 = vmatprep.subr.bf16.mxu1 %v12113_v6  ;;  %v674_v6 = vld [vmem:[%s13655_s14 + $0x8c0] sm:$0xff] }
  0xc9   : > { %v12139_v15 = vpack.c.bf16 %v674_v6, %v418_v5  ;;  %v684_v5 = vld [vmem:[%s13655_s14 + $0x910] sm:$0xff]  ;;  %v939_v6 = vld [vmem:[%s13655_s14 + $0x1108] sm:$0xff] }
  0xcd   : > { %3311 = vmatmul.mubr.f32.vlgmr.msra.gmra.mrb[6].mxu0 %v1540_v48  ;;  %v1581_v48 = vrot.slane %v1567_v38, %v13692_v28  ;;  %v424_v38 = vld [vmem:[%s13655_s14 + $0xf0] sm:$0xff] }
  0xce   : > { %12108 = vmatpush1.bf16.xpose.msra.mxu0 %v12107_v18  ;;  %3381 = vmatmul.mubr.f32.vlgmr.msra.gmra.mrb[6].mxu1 %v1547_v51  ;;  %v12125_v51 = vpack.c.bf16 %v1183_v44, %v927_v43  ;;  %v12149_v18 = vpack.c.bf16 %v1189_v13, %v933_v12  ;;  %v937_v43 = vld [vmem:[%s13655_s14 + $0x10f8] sm:$0xff]  ;;  %v12163_v47 = vpack.c.bf16 %v680_v39, %v424_v38  ;;  %v1199_v38 = vld [vmem:[%s13655_s14 + $0x1928] sm:$0xff] }
  0xcf   : > { %12116 = vmatpush1.bf16.xpose.msra.mxu1 %v12115_v19  ;;  %12110 = vmatprep.subr.bf16.mxu0 %v12109_v20  ;;  %v1583_v54 = vcombine.high %v1581_v48, %v1581_v48  ;;  %v1599_v19 = vcombine.high %v1591_v11, %v1591_v11  ;;  %v1193_v44 = vld [vmem:[%s13655_s14 + $0x18f8] sm:$0xff]  ;;  %v1642_v39 = vrot.slane %v339_v27, %v13692_v28 }
  0xd0   : > { %12118 = vmatprep.subr.bf16.mxu1 %v12117_v21  ;;  %3450 = vmatprep.mubr.f32.mxu0 %v1565_v22  ;;  %v930_v21 = vld [vmem:[%s13655_s14 + $0x10c0] sm:$0xff] }
  0xd1   : > { %3520 = vmatprep.mubr.f32.mxu1 %v1566_v23  ;;  %v1186_v22 = vld [vmem:[%s13655_s14 + $0x18c0] sm:$0xff]  ;;  %v932_v23 = vld [vmem:[%s13655_s14 + $0x10d0] sm:$0xff] }
  0xd2   : > { %v12143_v30 = vpack.c.bf16 %v1186_v22, %v930_v21  ;;  %v12151_v32 = vpack.c.bf16 %v1188_v24, %v932_v23  ;;  %v1196_v21 = vld [vmem:[%s13655_s14 + $0x1910] sm:$0xff]  ;;  %v431_v22 = vld [vmem:[%s13655_s14 + $0x128] sm:$0xff]  ;;  %v433_v24 = vld [vmem:[%s13655_s14 + $0x138] sm:$0xff] }
  0xd3   : > { %v687_v23 = vld [vmem:[%s13655_s14 + $0x928] sm:$0xff] }
  0xd6   : > { %12112 = vmatpush1.bf16.xpose.msra.mxu0 %v12111_v33  ;;  %v12153_v33 = vpack.c.bf16 %v679_v26, %v423_v25  ;;  %v689_v25 = vld [vmem:[%s13655_s14 + $0x938] sm:$0xff] }
  0xd7   : > { %12120 = vmatpush1.bf16.xpose.msra.mxu1 %v12119_v35  ;;  %12122 = vmatprep.subr.bf16.mxu0 %v12121_v36  ;;  %v1601_v35 = vcombine.high %v337_v31, %v337_v31  ;;  %v422_v36 = vld [vmem:[%s13655_s14 + $0xe0] sm:$0xff]  ;;  %v12193_v31 = vpack.c.bf16 %v689_v25, %v433_v24  ;;  %v341_v24 = vld [vmem:[%s13673_s17 + $0x58] sm:$0xff] }
  0xd8   : > { %12130 = vmatprep.subr.bf16.mxu1 %v12129_v37  ;;  %v678_v37 = vld [vmem:[%s13655_s14 + $0x8e0] sm:$0xff] }
  0xd9   : > { %v12155_v46 = vpack.c.bf16 %v678_v37, %v422_v36  ;;  %v688_v36 = vld [vmem:[%s13655_s14 + $0x930] sm:$0xff]  ;;  %v943_v37 = vld [vmem:[%s13655_s14 + $0x1128] sm:$0xff] }
  0xdd   : > { %3451 = vmatmul.mubr.f32.vlgmr.msra.gmra.mrb[8].mxu0 %v1557_v14  ;;  %v1598_v14 = vrot.slane %v1584_v4, %v13692_v28  ;;  %v428_v4 = vld [vmem:[%s13655_s14 + $0x110] sm:$0xff] }
  0xde   : > { %12124 = vmatpush1.bf16.xpose.msra.mxu0 %v12123_v49  ;;  %3521 = vmatmul.mubr.f32.vlgmr.msra.gmra.mrb[8].mxu1 %v1564_v17  ;;  %v12141_v17 = vpack.c.bf16 %v1187_v10, %v931_v9  ;;  %v12165_v49 = vpack.c.bf16 %v1193_v44, %v937_v43  ;;  %v941_v9 = vld [vmem:[%s13655_s14 + $0x1118] sm:$0xff]  ;;  %v12179_v13 = vpack.c.bf16 %v684_v5, %v428_v4  ;;  %v1203_v4 = vld [vmem:[%s13655_s14 + $0x1948] sm:$0xff] }
  0xdf   : > { %12132 = vmatpush1.bf16.xpose.msra.mxu1 %v12131_v50  ;;  %12126 = vmatprep.subr.bf16.mxu0 %v12125_v51  ;;  %v1600_v20 = vcombine.high %v1598_v14, %v1598_v14  ;;  %v1616_v50 = vcombine.high %v1608_v42, %v1608_v42  ;;  %v1197_v10 = vld [vmem:[%s13655_s14 + $0x1918] sm:$0xff]  ;;  %v1659_v5 = vrot.slane %v340_v58, %v13692_v28 }
  0xe0   : > { %12134 = vmatprep.subr.bf16.mxu1 %v12133_v52  ;;  %3590 = vmatprep.mubr.f32.mxu0 %v1582_v53  ;;  %v934_v52 = vld [vmem:[%s13655_s14 + $0x10e0] sm:$0xff] }
  0xe1   : > { %3660 = vmatprep.mubr.f32.mxu1 %v1583_v54  ;;  %v1190_v53 = vld [vmem:[%s13655_s14 + $0x18e0] sm:$0xff]  ;;  %v936_v54 = vld [vmem:[%s13655_s14 + $0x10f0] sm:$0xff] }
  0xe2   : > { %v12159_v60 = vpack.c.bf16 %v1190_v53, %v934_v52  ;;  %v12167_v62 = vpack.c.bf16 %v1192_v55, %v936_v54  ;;  %v1200_v52 = vld [vmem:[%s13655_s14 + $0x1930] sm:$0xff]  ;;  %v435_v53 = vld [vmem:[%s13655_s14 + $0x148] sm:$0xff]  ;;  %v437_v55 = vld [vmem:[%s13655_s14 + $0x158] sm:$0xff] }
  0xe3   : > { %v691_v54 = vld [vmem:[%s13655_s14 + $0x948] sm:$0xff] }
  0xe6   : > { %12128 = vmatpush1.bf16.xpose.msra.mxu0 %v12127_v63  ;;  %v12169_v63 = vpack.c.bf16 %v683_v57, %v427_v56  ;;  %v693_v56 = vld [vmem:[%s13655_s14 + $0x958] sm:$0xff] }
  0xe7   : > { %12136 = vmatpush1.bf16.xpose.msra.mxu1 %v12135_v1  ;;  %12138 = vmatprep.subr.bf16.mxu0 %v12137_v2  ;;  %v1618_v1 = vcombine.high %v338_v61, %v338_v61  ;;  %v426_v2 = vld [vmem:[%s13655_s14 + $0x100] sm:$0xff]  ;;  %v12209_v61 = vpack.c.bf16 %v693_v56, %v437_v55 }
  0xe8   : > { %12146 = vmatprep.subr.bf16.mxu1 %v12145_v3  ;;  %v682_v3 = vld [vmem:[%s13655_s14 + $0x900] sm:$0xff] }
  0xe9   : > { %v12171_v12 = vpack.c.bf16 %v682_v3, %v426_v2  ;;  %v692_v2 = vld [vmem:[%s13655_s14 + $0x950] sm:$0xff]  ;;  %v947_v3 = vld [vmem:[%s13655_s14 + $0x1148] sm:$0xff]  ;;  %v342_v55 = vld [vmem:[%s13673_s17 + $0x60] sm:$0xff] }
  0xed   : > { %3591 = vmatmul.mubr.f32.vlgmr.msra.gmra.mrb[10].mxu0 %v1574_v45  ;;  %v1615_v45 = vrot.slane %v1601_v35, %v13692_v28  ;;  %v432_v35 = vld [vmem:[%s13655_s14 + $0x130] sm:$0xff] }
  0xee   : > { %12140 = vmatpush1.bf16.xpose.msra.mxu0 %v12139_v15  ;;  %3661 = vmatmul.mubr.f32.vlgmr.msra.gmra.mrb[10].mxu1 %v1581_v48  ;;  %v12157_v48 = vpack.c.bf16 %v1191_v41, %v935_v40  ;;  %v12181_v15 = vpack.c.bf16 %v1197_v10, %v941_v9  ;;  %v945_v40 = vld [vmem:[%s13655_s14 + $0x1138] sm:$0xff]  ;;  %v12195_v44 = vpack.c.bf16 %v688_v36, %v432_v35  ;;  %v1207_v35 = vld [vmem:[%s13655_s14 + $0x1968] sm:$0xff] }
  0xef   : > { %12148 = vmatpush1.bf16.xpose.msra.mxu1 %v12147_v16  ;;  %12142 = vmatprep.subr.bf16.mxu0 %v12141_v17  ;;  %v1617_v51 = vcombine.high %v1615_v45, %v1615_v45  ;;  %v1633_v16 = vcombine.high %v1625_v8, %v1625_v8  ;;  %v1201_v41 = vld [vmem:[%s13655_s14 + $0x1938] sm:$0xff]  ;;  %v1676_v36 = vrot.slane %v341_v24, %v13692_v28 }
  0xf0   : > { %12150 = vmatprep.subr.bf16.mxu1 %v12149_v18  ;;  %3730 = vmatprep.mubr.f32.mxu0 %v1599_v19  ;;  %v938_v18 = vld [vmem:[%s13655_s14 + $0x1100] sm:$0xff] }
  0xf1   : > { %3800 = vmatprep.mubr.f32.mxu1 %v1600_v20  ;;  %v1194_v19 = vld [vmem:[%s13655_s14 + $0x1900] sm:$0xff]  ;;  %v940_v20 = vld [vmem:[%s13655_s14 + $0x1110] sm:$0xff] }
  0xf2   : > { %v12175_v26 = vpack.c.bf16 %v1194_v19, %v938_v18  ;;  %v12183_v29 = vpack.c.bf16 %v1196_v21, %v940_v20  ;;  %v1204_v18 = vld [vmem:[%s13655_s14 + $0x1950] sm:$0xff]  ;;  %v439_v19 = vld [vmem:[%s13655_s14 + $0x168] sm:$0xff]  ;;  %v441_v21 = vld [vmem:[%s13655_s14 + $0x178] sm:$0xff] }
  0xf3   : > { %v695_v20 = vld [vmem:[%s13655_s14 + $0x968] sm:$0xff] }
  0xf6   : > { %12144 = vmatpush1.bf16.xpose.msra.mxu0 %v12143_v30  ;;  %v12185_v30 = vpack.c.bf16 %v687_v23, %v431_v22  ;;  %v697_v22 = vld [vmem:[%s13655_s14 + $0x978] sm:$0xff] }
  0xf7   : > { %12152 = vmatpush1.bf16.xpose.msra.mxu1 %v12151_v32  ;;  %12154 = vmatprep.subr.bf16.mxu0 %v12153_v33  ;;  %v1635_v32 = vcombine.high %v339_v27, %v339_v27  ;;  %v430_v33 = vld [vmem:[%s13655_s14 + $0x120] sm:$0xff]  ;;  %v12225_v27 = vpack.c.bf16 %v697_v22, %v441_v21 }
  0xf8   : > { %12162 = vmatprep.subr.bf16.mxu1 %v12161_v34  ;;  %v686_v34 = vld [vmem:[%s13655_s14 + $0x920] sm:$0xff] }
  0xf9   : > { %v12187_v43 = vpack.c.bf16 %v686_v34, %v430_v33  ;;  %v696_v33 = vld [vmem:[%s13655_s14 + $0x970] sm:$0xff]  ;;  %v951_v34 = vld [vmem:[%s13655_s14 + $0x1168] sm:$0xff] }
  0xfa   : > { %v343_v21 = vld [vmem:[%s13673_s17 + $0x68] sm:$0xff] }
  0xfd   : > { %3731 = vmatmul.mubr.f32.vlgmr.msra.gmra.mrb[12].mxu0 %v1591_v11  ;;  %v1632_v11 = vrot.slane %v1618_v1, %v13692_v28  ;;  %v436_v1 = vld [vmem:[%s13655_s14 + $0x150] sm:$0xff] }
  0xfe   : > { %12156 = vmatpush1.bf16.xpose.msra.mxu0 %v12155_v46  ;;  %3801 = vmatmul.mubr.f32.vlgmr.msra.gmra.mrb[12].mxu1 %v1598_v14  ;;  %v12173_v14 = vpack.c.bf16 %v1195_v7, %v939_v6  ;;  %v12197_v46 = vpack.c.bf16 %v1201_v41, %v945_v40  ;;  %v949_v6 = vld [vmem:[%s13655_s14 + $0x1158] sm:$0xff]  ;;  %v12211_v10 = vpack.c.bf16 %v692_v2, %v436_v1  ;;  %v1211_v1 = vld [vmem:[%s13655_s14 + $0x1988] sm:$0xff] }
  0xff   : > { %12164 = vmatpush1.bf16.xpose.msra.mxu1 %v12163_v47  ;;  %12158 = vmatprep.subr.bf16.mxu0 %v12157_v48  ;;  %v1634_v17 = vcombine.high %v1632_v11, %v1632_v11  ;;  %v1650_v47 = vcombine.high %v1642_v39, %v1642_v39  ;;  %v1205_v7 = vld [vmem:[%s13655_s14 + $0x1958] sm:$0xff]  ;;  %v1693_v2 = vrot.slane %v342_v55, %v13692_v28 }
 0x100   : > { %12166 = vmatprep.subr.bf16.mxu1 %v12165_v49  ;;  %3870 = vmatprep.mubr.f32.mxu0 %v1616_v50  ;;  %v942_v49 = vld [vmem:[%s13655_s14 + $0x1120] sm:$0xff] }
 0x101   : > { %3940 = vmatprep.mubr.f32.mxu1 %v1617_v51  ;;  %v1198_v50 = vld [vmem:[%s13655_s14 + $0x1920] sm:$0xff]  ;;  %v944_v51 = vld [vmem:[%s13655_s14 + $0x1130] sm:$0xff] }
 0x102   : > { %v12191_v57 = vpack.c.bf16 %v1198_v50, %v942_v49  ;;  %v12199_v59 = vpack.c.bf16 %v1200_v52, %v944_v51  ;;  %v1208_v49 = vld [vmem:[%s13655_s14 + $0x1970] sm:$0xff]  ;;  %v443_v50 = vld [vmem:[%s13655_s14 + $0x188] sm:$0xff]  ;;  %v445_v52 = vld [vmem:[%s13655_s14 + $0x198] sm:$0xff] }
 0x103   : > { %v699_v51 = vld [vmem:[%s13655_s14 + $0x988] sm:$0xff] }
 0x106   : > { %12160 = vmatpush1.bf16.xpose.msra.mxu0 %v12159_v60  ;;  %v12201_v60 = vpack.c.bf16 %v691_v54, %v435_v53  ;;  %v701_v53 = vld [vmem:[%s13655_s14 + $0x998] sm:$0xff] }
 0x107   : > { %12168 = vmatpush1.bf16.xpose.msra.mxu1 %v12167_v62  ;;  %12170 = vmatprep.subr.bf16.mxu0 %v12169_v63  ;;  %v1652_v62 = vcombine.high %v340_v58, %v340_v58  ;;  %v434_v63 = vld [vmem:[%s13655_s14 + $0x140] sm:$0xff]  ;;  %v12241_v58 = vpack.c.bf16 %v701_v53, %v445_v52  ;;  %v344_v52 = vld [vmem:[%s13673_s17 + $0x70] sm:$0xff] }
 0x108   : > { %12178 = vmatprep.subr.bf16.mxu1 %v12177_v0  ;;  %v690_v0 = vld [vmem:[%s13655_s14 + $0x940] sm:$0xff] }
 0x109   : > { %v12203_v9 = vpack.c.bf16 %v690_v0, %v434_v63  ;;  %v700_v63 = vld [vmem:[%s13655_s14 + $0x990] sm:$0xff]  ;;  %v955_v0 = vld [vmem:[%s13655_s14 + $0x1188] sm:$0xff] }
 0x10d   : > { %3871 = vmatmul.mubr.f32.vlgmr.msra.gmra.mrb[14].mxu0 %v1608_v42  ;;  %v1649_v42 = vrot.slane %v1635_v32, %v13692_v28  ;;  %v440_v32 = vld [vmem:[%s13655_s14 + $0x170] sm:$0xff] }
 0x10e   : > { %12172 = vmatpush1.bf16.xpose.msra.mxu0 %v12171_v12  ;;  %3941 = vmatmul.mubr.f32.vlgmr.msra.gmra.mrb[14].mxu1 %v1615_v45  ;;  %v12189_v45 = vpack.c.bf16 %v1199_v38, %v943_v37  ;;  %v12213_v12 = vpack.c.bf16 %v1205_v7, %v949_v6  ;;  %v953_v37 = vld [vmem:[%s13655_s14 + $0x1178] sm:$0xff]  ;;  %v12227_v41 = vpack.c.bf16 %v696_v33, %v440_v32  ;;  %v1215_v32 = vld [vmem:[%s13655_s14 + $0x19a8] sm:$0xff] }
 0x10f   : > { %12180 = vmatpush1.bf16.xpose.msra.mxu1 %v12179_v13  ;;  %12174 = vmatprep.subr.bf16.mxu0 %v12173_v14  ;;  %v1651_v48 = vcombine.high %v1649_v42, %v1649_v42  ;;  %v1667_v13 = vcombine.high %v1659_v5, %v1659_v5  ;;  %v1209_v38 = vld [vmem:[%s13655_s14 + $0x1978] sm:$0xff]  ;;  %v1710_v33 = vrot.slane %v343_v21, %v13692_v28 }
 0x110   : > { %12182 = vmatprep.subr.bf16.mxu1 %v12181_v15  ;;  %4010 = vmatprep.mubr.f32.mxu0 %v1633_v16  ;;  %v946_v15 = vld [vmem:[%s13655_s14 + $0x1140] sm:$0xff] }
 0x111   : > { %4080 = vmatprep.mubr.f32.mxu1 %v1634_v17  ;;  %v1202_v16 = vld [vmem:[%s13655_s14 + $0x1940] sm:$0xff]  ;;  %v948_v17 = vld [vmem:[%s13655_s14 + $0x1150] sm:$0xff] }
 0x112   : > { %v12207_v23 = vpack.c.bf16 %v1202_v16, %v946_v15  ;;  %v12215_v25 = vpack.c.bf16 %v1204_v18, %v948_v17  ;;  %v1212_v15 = vld [vmem:[%s13655_s14 + $0x1990] sm:$0xff]  ;;  %v447_v16 = vld [vmem:[%s13655_s14 + $0x1a8] sm:$0xff]  ;;  %v449_v18 = vld [vmem:[%s13655_s14 + $0x1b8] sm:$0xff] }
 0x113   : > { %v703_v17 = vld [vmem:[%s13655_s14 + $0x9a8] sm:$0xff] }
 0x116   : > { %12176 = vmatpush1.bf16.xpose.msra.mxu0 %v12175_v26  ;;  %v12217_v26 = vpack.c.bf16 %v695_v20, %v439_v19  ;;  %v705_v19 = vld [vmem:[%s13655_s14 + $0x9b8] sm:$0xff] }
 0x117   : > { %12184 = vmatpush1.bf16.xpose.msra.mxu1 %v12183_v29  ;;  %12186 = vmatprep.subr.bf16.mxu0 %v12185_v30  ;;  %v1669_v29 = vcombine.high %v341_v24, %v341_v24  ;;  %v438_v30 = vld [vmem:[%s13655_s14 + $0x160] sm:$0xff]  ;;  %v12257_v24 = vpack.c.bf16 %v705_v19, %v449_v18  ;;  %v457_v18 = vld [vmem:[%s13655_s14 + $0x1f8] sm:$0xff] }
 0x118   : > { %12194 = vmatprep.subr.bf16.mxu1 %v12193_v31  ;;  %v694_v31 = vld [vmem:[%s13655_s14 + $0x960] sm:$0xff]  ;;  %v713_v19 = vld [vmem:[%s13655_s14 + $0x9f8] sm:$0xff] }
 0x119   : > { %v12219_v40 = vpack.c.bf16 %v694_v31, %v438_v30  ;;  %v704_v30 = vld [vmem:[%s13655_s14 + $0x9b0] sm:$0xff]  ;;  %v959_v31 = vld [vmem:[%s13655_s14 + $0x11a8] sm:$0xff] }
 0x11d   : > { %4011 = vmatmul.mubr.f32.vlgmr.msra.gmra.mrb[16].mxu0 %v1625_v8  ;;  %v1666_v8 = vrot.slane %v1652_v62, %v13692_v28  ;;  %v444_v62 = vld [vmem:[%s13655_s14 + $0x190] sm:$0xff] }
 0x11e   : > { %12188 = vmatpush1.bf16.xpose.msra.mxu0 %v12187_v43  ;;  %4081 = vmatmul.mubr.f32.vlgmr.msra.gmra.mrb[16].mxu1 %v1632_v11  ;;  %v12205_v11 = vpack.c.bf16 %v1203_v4, %v947_v3  ;;  %v12229_v43 = vpack.c.bf16 %v1209_v38, %v953_v37  ;;  %v957_v3 = vld [vmem:[%s13655_s14 + $0x1198] sm:$0xff]  ;;  %v12243_v7 = vpack.c.bf16 %v700_v63, %v444_v62  ;;  %v1219_v62 = vld [vmem:[%s13655_s14 + $0x19c8] sm:$0xff] }
 0x11f   : > { %12196 = vmatpush1.bf16.xpose.msra.mxu1 %v12195_v44  ;;  %12190 = vmatprep.subr.bf16.mxu0 %v12189_v45  ;;  %v1668_v14 = vcombine.high %v1666_v8, %v1666_v8  ;;  %v1684_v44 = vcombine.high %v1676_v36, %v1676_v36  ;;  %v1213_v4 = vld [vmem:[%s13655_s14 + $0x1998] sm:$0xff]  ;;  %v1727_v63 = vrot.slane %v344_v52, %v13692_v28 }
 0x120   : > { %12198 = vmatprep.subr.bf16.mxu1 %v12197_v46  ;;  %4150 = vmatprep.mubr.f32.mxu0 %v1650_v47  ;;  %v950_v46 = vld [vmem:[%s13655_s14 + $0x1160] sm:$0xff] }
 0x121   : > { %4220 = vmatprep.mubr.f32.mxu1 %v1651_v48  ;;  %v1206_v47 = vld [vmem:[%s13655_s14 + $0x1960] sm:$0xff]  ;;  %v952_v48 = vld [vmem:[%s13655_s14 + $0x1170] sm:$0xff] }
 0x122   : > { %v12223_v54 = vpack.c.bf16 %v1206_v47, %v950_v46  ;;  %v12231_v56 = vpack.c.bf16 %v1208_v49, %v952_v48  ;;  %v1216_v46 = vld [vmem:[%s13655_s14 + $0x19b0] sm:$0xff]  ;;  %v451_v47 = vld [vmem:[%s13655_s14 + $0x1c8] sm:$0xff]  ;;  %v453_v49 = vld [vmem:[%s13655_s14 + $0x1d8] sm:$0xff] }
 0x123   : > { %v707_v48 = vld [vmem:[%s13655_s14 + $0x9c8] sm:$0xff] }
 0x126   : > { %12192 = vmatpush1.bf16.xpose.msra.mxu0 %v12191_v57  ;;  %v12233_v57 = vpack.c.bf16 %v699_v51, %v443_v50  ;;  %v709_v50 = vld [vmem:[%s13655_s14 + $0x9d8] sm:$0xff] }
 0x127   : > { %12200 = vmatpush1.bf16.xpose.msra.mxu1 %v12199_v59  ;;  %12202 = vmatprep.subr.bf16.mxu0 %v12201_v60  ;;  %v1686_v59 = vcombine.high %v342_v55, %v342_v55  ;;  %v442_v60 = vld [vmem:[%s13655_s14 + $0x180] sm:$0xff]  ;;  %v12273_v55 = vpack.c.bf16 %v709_v50, %v453_v49  ;;  %v1224_v49 = vld [vmem:[%s13655_s14 + $0x19f0] sm:$0xff]  ;;  %v459_v50 = vld [vmem:[%s13655_s14 + $0x208] sm:$0xff] }
 0x128   : > { %12210 = vmatprep.subr.bf16.mxu1 %v12209_v61  ;;  %v698_v61 = vld [vmem:[%s13655_s14 + $0x980] sm:$0xff] }
 0x129   : > { %v12235_v6 = vpack.c.bf16 %v698_v61, %v442_v60  ;;  %v708_v60 = vld [vmem:[%s13655_s14 + $0x9d0] sm:$0xff]  ;;  %v963_v61 = vld [vmem:[%s13655_s14 + $0x11c8] sm:$0xff] }
 0x12d   : > { %4151 = vmatmul.mubr.f32.vlgmr.msra.gmra.mrb[18].mxu0 %v1642_v39  ;;  %v1683_v39 = vrot.slane %v1669_v29, %v13692_v28  ;;  %v448_v29 = vld [vmem:[%s13655_s14 + $0x1b0] sm:$0xff] }
 0x12e   : > { %12204 = vmatpush1.bf16.xpose.msra.mxu0 %v12203_v9  ;;  %4221 = vmatmul.mubr.f32.vlgmr.msra.gmra.mrb[18].mxu1 %v1649_v42  ;;  %v12221_v42 = vpack.c.bf16 %v1207_v35, %v951_v34  ;;  %v12245_v9 = vpack.c.bf16 %v1213_v4, %v957_v3  ;;  %v961_v34 = vld [vmem:[%s13655_s14 + $0x11b8] sm:$0xff]  ;;  %v12259_v38 = vpack.c.bf16 %v704_v30, %v448_v29  ;;  %v454_v29 = vld [vmem:[%s13655_s14 + $0x1e0] sm:$0xff] }
 0x12f   : > { %12212 = vmatpush1.bf16.xpose.msra.mxu1 %v12211_v10  ;;  %12206 = vmatprep.subr.bf16.mxu0 %v12205_v11  ;;  %v1685_v45 = vcombine.high %v1683_v39, %v1683_v39  ;;  %v1701_v10 = vcombine.high %v1693_v2, %v1693_v2  ;;  %v1217_v35 = vld [vmem:[%s13655_s14 + $0x19b8] sm:$0xff]  ;;  %v710_v30 = vld [vmem:[%s13655_s14 + $0x9e0] sm:$0xff] }
 0x130   : > { %12214 = vmatprep.subr.bf16.mxu1 %v12213_v12  ;;  %4290 = vmatprep.mubr.f32.mxu0 %v1667_v13  ;;  %v954_v12 = vld [vmem:[%s13655_s14 + $0x1180] sm:$0xff] }
 0x131   : > { %4360 = vmatprep.mubr.f32.mxu1 %v1668_v14  ;;  %v1210_v13 = vld [vmem:[%s13655_s14 + $0x1980] sm:$0xff]  ;;  %v956_v14 = vld [vmem:[%s13655_s14 + $0x1190] sm:$0xff] }
 0x132   : > { %v12239_v20 = vpack.c.bf16 %v1210_v13, %v954_v12  ;;  %v12247_v22 = vpack.c.bf16 %v1212_v15, %v956_v14  ;;  %v1220_v13 = vld [vmem:[%s13655_s14 + $0x19d0] sm:$0xff]  ;;  %v455_v14 = vld [vmem:[%s13655_s14 + $0x1e8] sm:$0xff] }
 0x133   : > { %v711_v15 = vld [vmem:[%s13655_s14 + $0x9e8] sm:$0xff] }
 0x136   : > { %12208 = vmatpush1.bf16.xpose.msra.mxu0 %v12207_v23  ;;  %v12249_v23 = vpack.c.bf16 %v703_v17, %v447_v16 }
 0x137   : > { %12216 = vmatpush1.bf16.xpose.msra.mxu1 %v12215_v25  ;;  %12218 = vmatprep.subr.bf16.mxu0 %v12217_v26  ;;  %v1703_v25 = vcombine.high %v343_v21, %v343_v21  ;;  %v446_v26 = vld [vmem:[%s13655_s14 + $0x1a0] sm:$0xff] }
 0x138   : > { %12226 = vmatprep.subr.bf16.mxu1 %v12225_v27  ;;  %v702_v27 = vld [vmem:[%s13655_s14 + $0x9a0] sm:$0xff] }
 0x139   : > { %v12251_v37 = vpack.c.bf16 %v702_v27, %v446_v26  ;;  %v12289_v26 = vpack.c.bf16 %v713_v19, %v457_v18  ;;  %v1226_v18 = vld [vmem:[%s13655_s14 + $0x1a00] sm:$0xff]  ;;  %v972_v19 = vld [vmem:[%s13655_s14 + $0x1210] sm:$0xff] }
 0x13d   : > { %4291 = vmatmul.mubr.f32.vlgmr.msra.gmra.mrb[20].mxu0 %v1659_v5  ;;  %v1700_v5 = vrot.slane %v1686_v59, %v13692_v28  ;;  %v452_v59 = vld [vmem:[%s13655_s14 + $0x1d0] sm:$0xff] }
 0x13e   : > { %12220 = vmatpush1.bf16.xpose.msra.mxu0 %v12219_v40  ;;  %4361 = vmatmul.mubr.f32.vlgmr.msra.gmra.mrb[20].mxu1 %v1666_v8  ;;  %v12237_v8 = vpack.c.bf16 %v1211_v1, %v955_v0  ;;  %v12261_v40 = vpack.c.bf16 %v1217_v35, %v961_v34  ;;  %v965_v0 = vld [vmem:[%s13655_s14 + $0x11d8] sm:$0xff]  ;;  %v12275_v4 = vpack.c.bf16 %v708_v60, %v452_v59  ;;  %v1223_v34 = vld [vmem:[%s13655_s14 + $0x19e8] sm:$0xff] }
 0x13f   : > { %12228 = vmatpush1.bf16.xpose.msra.mxu1 %v12227_v41  ;;  %12222 = vmatprep.subr.bf16.mxu0 %v12221_v42  ;;  %v1702_v11 = vcombine.high %v1700_v5, %v1700_v5  ;;  %v1718_v41 = vcombine.high %v1710_v33, %v1710_v33  ;;  %v1221_v1 = vld [vmem:[%s13655_s14 + $0x19d8] sm:$0xff] }
 0x140   : > { %12230 = vmatprep.subr.bf16.mxu1 %v12229_v43  ;;  %4430 = vmatprep.mubr.f32.mxu0 %v1684_v44  ;;  %v958_v43 = vld [vmem:[%s13655_s14 + $0x11a0] sm:$0xff] }
 0x141   : > { %4500 = vmatprep.mubr.f32.mxu1 %v1685_v45  ;;  %v1214_v44 = vld [vmem:[%s13655_s14 + $0x19a0] sm:$0xff]  ;;  %v960_v45 = vld [vmem:[%s13655_s14 + $0x11b0] sm:$0xff] }
 0x142   : > { %v12255_v51 = vpack.c.bf16 %v1214_v44, %v958_v43  ;;  %v12263_v53 = vpack.c.bf16 %v1216_v46, %v960_v45  ;;  %v966_v45 = vld [vmem:[%s13655_s14 + $0x11e0] sm:$0xff] }
 0x143   : > { %v1222_v46 = vld [vmem:[%s13655_s14 + $0x19e0] sm:$0xff] }
 0x144   : > { %v346_v59 = vld [vmem:[%s13673_s17 + $0x80] sm:$0xff] }
 0x146   : > { %12224 = vmatpush1.bf16.xpose.msra.mxu0 %v12223_v54  ;;  %v12265_v54 = vpack.c.bf16 %v707_v48, %v451_v47  ;;  %v968_v47 = vld [vmem:[%s13655_s14 + $0x11f0] sm:$0xff] }
 0x147   : > { %12232 = vmatpush1.bf16.xpose.msra.mxu1 %v12231_v56  ;;  %12234 = vmatprep.subr.bf16.mxu0 %v12233_v57  ;;  %v1720_v56 = vcombine.high %v344_v52, %v344_v52  ;;  %v450_v57 = vld [vmem:[%s13655_s14 + $0x1c0] sm:$0xff] }
 0x148   : > { %12242 = vmatprep.subr.bf16.mxu1 %v12241_v58  ;;  %v706_v58 = vld [vmem:[%s13655_s14 + $0x9c0] sm:$0xff] }
 0x149   : > { %v12267_v3 = vpack.c.bf16 %v706_v58, %v450_v57  ;;  %v12287_v58 = vpack.c.bf16 %v1222_v46, %v966_v45  ;;  %v977_v45 = vld [vmem:[%s13655_s14 + $0x1238] sm:$0xff] }
 0x14a   : > { %v1233_v46 = vld [vmem:[%s13655_s14 + $0x1a38] sm:$0xff] }
 0x14d   : > { %4431 = vmatmul.mubr.f32.vlgmr.msra.gmra.mrb[22].mxu0 %v1676_v36  ;;  %v1717_v36 = vrot.slane %v1703_v25, %v13692_v28  ;;  %v12281_v25 = vpack.c.bf16 %v711_v15, %v455_v14 }
 0x14e   : > { %12236 = vmatpush1.bf16.xpose.msra.mxu0 %v12235_v6  ;;  %4501 = vmatmul.mubr.f32.vlgmr.msra.gmra.mrb[22].mxu1 %v1683_v39  ;;  %v12253_v39 = vpack.c.bf16 %v1215_v32, %v959_v31  ;;  %v12277_v6 = vpack.c.bf16 %v1221_v1, %v965_v0  ;;  %v456_v31 = vld [vmem:[%s13655_s14 + $0x1f0] sm:$0xff]  ;;  %v1754_v0 = vcombine.high %v346_v59, %v346_v59  ;;  %v458_v1 = vld [vmem:[%s13655_s14 + $0x200] sm:$0xff] }
 0x14f   : > { %12244 = vmatpush1.bf16.xpose.msra.mxu1 %v12243_v7  ;;  %12238 = vmatprep.subr.bf16.mxu0 %v12237_v8  ;;  %v1719_v42 = vcombine.high %v1717_v36, %v1717_v36  ;;  %v1735_v7 = vcombine.high %v1727_v63, %v1727_v63  ;;  %v712_v32 = vld [vmem:[%s13655_s14 + $0x9f0] sm:$0xff] }
 0x150   : > { %12246 = vmatprep.subr.bf16.mxu1 %v12245_v9  ;;  %4570 = vmatprep.mubr.f32.mxu0 %v1701_v10  ;;  %v962_v9 = vld [vmem:[%s13655_s14 + $0x11c0] sm:$0xff] }
 0x151   : > { %4640 = vmatprep.mubr.f32.mxu1 %v1702_v11  ;;  %v1218_v10 = vld [vmem:[%s13655_s14 + $0x19c0] sm:$0xff]  ;;  %v964_v11 = vld [vmem:[%s13655_s14 + $0x11d0] sm:$0xff] }
 0x156   : > { %12240 = vmatpush1.bf16.xpose.msra.mxu0 %v12239_v20 }
 0x157   : > { %12248 = vmatpush1.bf16.xpose.msra.mxu1 %v12247_v22  ;;  %12250 = vmatprep.subr.bf16.mxu0 %v12249_v23  ;;  %v12271_v22 = vpack.c.bf16 %v1218_v10, %v962_v9  ;;  %v345_v23 = vld [vmem:[%s13673_s17 + $0x78] sm:$0xff]  ;;  %v1768_v10 = vrot.slane %v1754_v0, %v13692_v28 }
 0x158   : > { %12258 = vmatprep.subr.bf16.mxu1 %v12257_v24  ;;  %v12279_v24 = vpack.c.bf16 %v1220_v13, %v964_v11  ;;  %v1737_v27 = vcombine.high %v345_v23, %v345_v23  ;;  %v1744_v35 = vrot.slane %v345_v23, %v13692_v28  ;;  %v1229_v9 = vld [vmem:[%s13655_s14 + $0x1a18] sm:$0xff]  ;;  %v719_v23 = vld [vmem:[%s13655_s14 + $0xa28] sm:$0xff] }
 0x159   : > { %v469_v0 = vld [vmem:[%s13655_s14 + $0x258] sm:$0xff] }
 0x15a   : > { %v1752_v43 = vcombine.high %v1744_v35, %v1744_v35 }
 0x15d   : > { %4571 = vmatmul.mubr.f32.vlgmr.msra.gmra.mrb[24].mxu0 %v1693_v2  ;;  %v1734_v2 = vrot.slane %v1720_v56, %v13692_v28  ;;  %v717_v56 = vld [vmem:[%s13655_s14 + $0xa18] sm:$0xff] }
 0x15e   : > { %12252 = vmatpush1.bf16.xpose.msra.mxu0 %v12251_v37  ;;  %4641 = vmatmul.mubr.f32.vlgmr.msra.gmra.mrb[24].mxu1 %v1700_v5  ;;  %v12269_v5 = vpack.c.bf16 %v1219_v62, %v963_v61  ;;  %v1225_v37 = vld [vmem:[%s13655_s14 + $0x19f8] sm:$0xff]  ;;  %v12295_v61 = vpack.c.bf16 %v1224_v49, %v968_v47 }
 0x15f   : > { %12260 = vmatpush1.bf16.xpose.msra.mxu1 %v12259_v38  ;;  %12254 = vmatprep.subr.bf16.mxu0 %v12253_v39  ;;  %v1736_v8 = vcombine.high %v1734_v2, %v1734_v2  ;;  %v1751_v38 = vrot.slane %v1737_v27, %v13692_v28  ;;  %v12283_v39 = vpack.c.bf16 %v710_v30, %v454_v29  ;;  %v465_v27 = vld [vmem:[%s13655_s14 + $0x238] sm:$0xff] }
 0x160   : > { %12262 = vmatprep.subr.bf16.mxu1 %v12261_v40  ;;  %4710 = vmatprep.mubr.f32.mxu0 %v1718_v41  ;;  %v12291_v40 = vpack.c.bf16 %v712_v32, %v456_v31  ;;  %v721_v29 = vld [vmem:[%s13655_s14 + $0xa38] sm:$0xff]  ;;  %v347_v32 = vld [vmem:[%s13673_s17 + $0x88] sm:$0xff] }
 0x161   : > { %4780 = vmatprep.mubr.f32.mxu1 %v1719_v42  ;;  %v1753_v44 = vcombine.high %v1751_v38, %v1751_v38 }
 0x166   : > { %12256 = vmatpush1.bf16.xpose.msra.mxu0 %v12255_v51  ;;  %v715_v51 = vld [vmem:[%s13655_s14 + $0xa08] sm:$0xff] }
 0x167   : > { %12264 = vmatpush1.bf16.xpose.msra.mxu1 %v12263_v53  ;;  %12266 = vmatprep.subr.bf16.mxu0 %v12265_v54  ;;  %v12297_v62 = vpack.c.bf16 %v715_v51, %v459_v50  ;;  %v12325_v51 = vpack.c.bf16 %v1233_v46, %v977_v45 }
 0x168   : > { %12274 = vmatprep.subr.bf16.mxu1 %v12273_v55  ;;  %v461_v55 = vld [vmem:[%s13655_s14 + $0x218] sm:$0xff] }
 0x16d   : > { %4711 = vmatmul.mubr.f32.vlgmr.msra.gmra.mrb[26].mxu0 %v1710_v33  ;;  %v967_v33 = vld [vmem:[%s13655_s14 + $0x11e8] sm:$0xff] }
 0x16e   : > { %12268 = vmatpush1.bf16.xpose.msra.mxu0 %v12267_v3  ;;  %4781 = vmatmul.mubr.f32.vlgmr.msra.gmra.mrb[26].mxu1 %v1717_v36  ;;  %v969_v36 = vld [vmem:[%s13655_s14 + $0x11f8] sm:$0xff]  ;;  %v12285_v41 = vpack.c.bf16 %v1223_v34, %v967_v33  ;;  %v460_v3 = vld [vmem:[%s13655_s14 + $0x210] sm:$0xff] }
 0x16f   : > { %12276 = vmatpush1.bf16.xpose.msra.mxu1 %v12275_v4  ;;  %12270 = vmatprep.subr.bf16.mxu0 %v12269_v5  ;;  %v12293_v42 = vpack.c.bf16 %v1225_v37, %v969_v36  ;;  %v716_v4 = vld [vmem:[%s13655_s14 + $0xa10] sm:$0xff]  ;;  %v971_v5 = vld [vmem:[%s13655_s14 + $0x1208] sm:$0xff]  ;;  %v12321_v36 = vpack.c.bf16 %v721_v29, %v465_v27  ;;  %v1771_v37 = vcombine.high %v347_v32, %v347_v32  ;;  %v1234_v27 = vld [vmem:[%s13655_s14 + $0x1a40] sm:$0xff] }
 0x170   : > { %v2892_v12 = vpop.f32.mrb[0].mxu0  ;;  %12278 = vmatprep.subr.bf16.mxu1 %v12277_v6  ;;  %4850 = vmatprep.mubr.f32.mxu0 %v1735_v7  ;;  %v1227_v6 = vld [vmem:[%s13655_s14 + $0x1a08] sm:$0xff]  ;;  %v1761_v7 = vrot.slane %v346_v59, %v13692_v28  ;;  %v980_v29 = vld [vmem:[%s13655_s14 + $0x1250] sm:$0xff] }
 0x171   : > { %v2894_v16 = vpop.f32.mrb[1].mxu0  ;;  %v2962_v17 = vpop.f32.mrb[0].mxu1  ;;  %4920 = vmatprep.mubr.f32.mxu1 %v1736_v8  ;;  %v973_v8 = vld [vmem:[%s13655_s14 + $0x1218] sm:$0xff]  ;;  %v12301_v13 = vpack.c.bf16 %v1227_v6, %v971_v5  ;;  %v1785_v47 = vrot.slane %v1771_v37, %v13692_v28  ;;  %v467_v59 = vld [vmem:[%s13655_s14 + $0x248] sm:$0xff] }
 0x172   : > { %v2963_v20 = vadd.f32 %v2962_v17, %v2892_v12  ;;  %v2964_v21 = vpop.f32.mrb[1].mxu1  ;;  %v12307_v12 = vpack.c.bf16 %v716_v4, %v460_v3  ;;  %v12309_v14 = vpack.c.bf16 %v1229_v9, %v973_v8  ;;  %v1769_v15 = vcombine.high %v1761_v7, %v1761_v7  ;;  %v970_v17 = vld [vmem:[%s13655_s14 + $0x1200] sm:$0xff]  ;;  %v348_v4 = vld [vmem:[%s13673_s17 + $0x90] sm:$0xff]  ;;  %v473_v37 = vld [vmem:[%s13655_s14 + $0x278] sm:$0xff] }
 0x173   : > { %v1770_v16 = vcombine.high %v1768_v10, %v1768_v10  ;;  %v1228_v21 = vld [vmem:[%s13655_s14 + $0x1a10] sm:$0xff]  ;;  %v12303_v31 = vpack.c.bf16 %v1226_v18, %v970_v17  ;;  %v1788_v9 = vcombine.high %v348_v4, %v348_v4  ;;  %v981_v17 = vld [vmem:[%s13655_s14 + $0x1258] sm:$0xff] }
 0x174   : > { %v12311_v34 = vpack.c.bf16 %v1228_v21, %v972_v19  ;;  %v1237_v18 = vld [vmem:[%s13655_s14 + $0x1a58] sm:$0xff] }
 0x175   : > { %v1802_v19 = vrot.slane %v1788_v9, %v13692_v28  ;;  %v477_v9 = vld [vmem:[%s13655_s14 + $0x298] sm:$0xff] }
 0x176   : > { %12272 = vmatpush1.bf16.xpose.msra.mxu0 %v12271_v22  ;;  %v463_v22 = vld [vmem:[%s13655_s14 + $0x228] sm:$0xff] }
 0x177   : > { %12280 = vmatpush1.bf16.xpose.msra.mxu1 %v12279_v24  ;;  %12282 = vmatprep.subr.bf16.mxu0 %v12281_v25 }
 0x178   : > { %12290 = vmatprep.subr.bf16.mxu1 %v12289_v26 }
 0x17d   : > { %4851 = vmatmul.mubr.f32.vlgmr.msra.gmra.mrb[28].mxu0 %v1727_v63  ;;  %v12305_v63 = vpack.c.bf16 %v717_v56, %v461_v55  ;;  %v1230_v55 = vld [vmem:[%s13655_s14 + $0x1a20] sm:$0xff]  ;;  %v976_v56 = vld [vmem:[%s13655_s14 + $0x1230] sm:$0xff] }
 0x17e   : > { %12284 = vmatpush1.bf16.xpose.msra.mxu0 %v12283_v39  ;;  %4921 = vmatmul.mubr.f32.vlgmr.msra.gmra.mrb[28].mxu1 %v1734_v2  ;;  %v714_v2 = vld [vmem:[%s13655_s14 + $0xa00] sm:$0xff] }
 0x17f   : > { %12292 = vmatpush1.bf16.xpose.msra.mxu1 %v12291_v40  ;;  %12286 = vmatprep.subr.bf16.mxu0 %v12285_v41  ;;  %v12299_v11 = vpack.c.bf16 %v714_v2, %v458_v1  ;;  %v718_v39 = vld [vmem:[%s13655_s14 + $0xa20] sm:$0xff]  ;;  %v464_v40 = vld [vmem:[%s13655_s14 + $0x230] sm:$0xff]  ;;  %v725_v1 = vld [vmem:[%s13655_s14 + $0xa58] sm:$0xff] }
 0x180   : > { %v3032_v48 = vpop.f32.mrb[2].mxu0  ;;  %12294 = vmatprep.subr.bf16.mxu1 %v12293_v42  ;;  %4990 = vmatprep.mubr.f32.mxu0 %v1752_v43  ;;  %v720_v41 = vld [vmem:[%s13655_s14 + $0xa30] sm:$0xff]  ;;  %v975_v42 = vld [vmem:[%s13655_s14 + $0x1228] sm:$0xff]  ;;  %v12337_v8 = vpack.c.bf16 %v725_v1, %v469_v0  ;;  %v1238_v0 = vld [vmem:[%s13655_s14 + $0x1a60] sm:$0xff] }
 0x181   : > { %v3033_v52 = vadd.f32 %v3032_v48, %v2963_v20  ;;  %v3034_v53 = vpop.f32.mrb[3].mxu0  ;;  %v3102_v54 = vpop.f32.mrb[2].mxu1  ;;  %5060 = vmatprep.mubr.f32.mxu1 %v1753_v44  ;;  %v1231_v43 = vld [vmem:[%s13655_s14 + $0x1a28] sm:$0xff]  ;;  %v1778_v44 = vrot.slane %v347_v32, %v13692_v28  ;;  %v12323_v49 = vpack.c.bf16 %v720_v41, %v464_v40  ;;  %v349_v41 = vld [vmem:[%s13673_s17 + $0x98] sm:$0xff] }
 0x182   : > { %v3104_v57 = vpop.f32.mrb[3].mxu1  ;;  %v12317_v50 = vpack.c.bf16 %v1231_v43, %v975_v42  ;;  %v1787_v53 = vcombine.high %v1785_v47, %v1785_v47  ;;  %v471_v32 = vld [vmem:[%s13655_s14 + $0x268] sm:$0xff]  ;;  %v1805_v46 = vcombine.high %v349_v41, %v349_v41  ;;  %v984_v1 = vld [vmem:[%s13655_s14 + $0x1270] sm:$0xff] }
 0x183   : > { %v3103_v60 = vadd.f32 %v3102_v54, %v3033_v52  ;;  %v1786_v52 = vcombine.high %v1778_v44, %v1778_v44  ;;  %v974_v54 = vld [vmem:[%s13655_s14 + $0x1220] sm:$0xff] }
 0x184   : > { %v12319_v3 = vpack.c.bf16 %v1230_v55, %v974_v54  ;;  %v985_v54 = vld [vmem:[%s13655_s14 + $0x1278] sm:$0xff] }
 0x185   : > { %v1241_v55 = vld [vmem:[%s13655_s14 + $0x1a78] sm:$0xff] }
 0x186   : > { %12288 = vmatpush1.bf16.xpose.msra.mxu0 %v12287_v58  ;;  %v1232_v58 = vld [vmem:[%s13655_s14 + $0x1a30] sm:$0xff] }
 0x187   : > { %12296 = vmatpush1.bf16.xpose.msra.mxu1 %v12295_v61  ;;  %12298 = vmatprep.subr.bf16.mxu0 %v12297_v62  ;;  %v12327_v6 = vpack.c.bf16 %v1232_v58, %v976_v56  ;;  %v1819_v56 = vrot.slane %v1805_v46, %v13692_v28  ;;  %v481_v46 = vld [vmem:[%s13655_s14 + $0x2b8] sm:$0xff] }
 0x188   : > { %12306 = vmatprep.subr.bf16.mxu1 %v12305_v63 }
 0x18d   : > { %4991 = vmatmul.mubr.f32.vlgmr.msra.gmra.mrb[30].mxu0 %v1744_v35  ;;  %v12313_v35 = vpack.c.bf16 %v719_v23, %v463_v22  ;;  %v12341_v23 = vpack.c.bf16 %v1237_v18, %v981_v17 }
 0x18e   : > { %12300 = vmatpush1.bf16.xpose.msra.mxu0 %v12299_v11  ;;  %5061 = vmatmul.mubr.f32.vlgmr.msra.gmra.mrb[30].mxu1 %v1751_v38  ;;  %v462_v38 = vld [vmem:[%s13655_s14 + $0x220] sm:$0xff] }
 0x18f   : > { %12308 = vmatpush1.bf16.xpose.msra.mxu1 %v12307_v12  ;;  %12302 = vmatprep.subr.bf16.mxu0 %v12301_v13  ;;  %v12315_v48 = vpack.c.bf16 %v718_v39, %v462_v38  ;;  %v722_v11 = vld [vmem:[%s13655_s14 + $0xa40] sm:$0xff]  ;;  %v468_v12 = vld [vmem:[%s13655_s14 + $0x250] sm:$0xff]  ;;  %v729_v38 = vld [vmem:[%s13655_s14 + $0xa78] sm:$0xff] }
 0x190   : > { %v3172_v20 = vpop.f32.mrb[4].mxu0  ;;  %12310 = vmatprep.subr.bf16.mxu1 %v12309_v14  ;;  %5130 = vmatprep.mubr.f32.mxu0 %v1769_v15  ;;  %v724_v13 = vld [vmem:[%s13655_s14 + $0xa50] sm:$0xff]  ;;  %v979_v14 = vld [vmem:[%s13655_s14 + $0x1248] sm:$0xff]  ;;  %v12353_v45 = vpack.c.bf16 %v729_v38, %v473_v37  ;;  %v1242_v37 = vld [vmem:[%s13655_s14 + $0x1a80] sm:$0xff] }
 0x191   : > { %v3173_v24 = vadd.f32 %v3172_v20, %v3103_v60  ;;  %v3174_v25 = vpop.f32.mrb[5].mxu0  ;;  %v3242_v26 = vpop.f32.mrb[4].mxu1  ;;  %5200 = vmatprep.mubr.f32.mxu1 %v1770_v16  ;;  %v723_v60 = vld [vmem:[%s13655_s14 + $0xa48] sm:$0xff]  ;;  %v1795_v16 = vrot.slane %v348_v4, %v13692_v28  ;;  %v12339_v21 = vpack.c.bf16 %v724_v13, %v468_v12  ;;  %v350_v13 = vld [vmem:[%s13673_s17 + $0xa0] sm:$0xff]  ;;  %v988_v38 = vld [vmem:[%s13655_s14 + $0x1290] sm:$0xff] }
 0x192   : > { %v3244_v30 = vpop.f32.mrb[5].mxu1  ;;  %v1235_v15 = vld [vmem:[%s13655_s14 + $0x1a48] sm:$0xff]  ;;  %v1804_v25 = vcombine.high %v1802_v19, %v1802_v19  ;;  %v1822_v18 = vcombine.high %v350_v13, %v350_v13 }
 0x193   : > { %v3243_v33 = vadd.f32 %v3242_v26, %v3173_v24  ;;  %v12333_v22 = vpack.c.bf16 %v1235_v15, %v979_v14  ;;  %v1803_v24 = vcombine.high %v1795_v16, %v1795_v16  ;;  %v978_v26 = vld [vmem:[%s13655_s14 + $0x1240] sm:$0xff]  ;;  %v475_v4 = vld [vmem:[%s13655_s14 + $0x288] sm:$0xff] }
 0x194   : > { %v12335_v40 = vpack.c.bf16 %v1234_v27, %v978_v26  ;;  %v989_v26 = vld [vmem:[%s13655_s14 + $0x1298] sm:$0xff] }
 0x195   : > { %v1245_v27 = vld [vmem:[%s13655_s14 + $0x1a98] sm:$0xff] }
 0x196   : > { %12304 = vmatpush1.bf16.xpose.msra.mxu0 %v12303_v31  ;;  %v1236_v31 = vld [vmem:[%s13655_s14 + $0x1a50] sm:$0xff] }
 0x197   : > { %12312 = vmatpush1.bf16.xpose.msra.mxu1 %v12311_v34  ;;  %12314 = vmatprep.subr.bf16.mxu0 %v12313_v35  ;;  %v12343_v43 = vpack.c.bf16 %v1236_v31, %v980_v29  ;;  %v1836_v29 = vrot.slane %v1822_v18, %v13692_v28  ;;  %v485_v18 = vld [vmem:[%s13655_s14 + $0x2d8] sm:$0xff] }
 0x198   : > { %12322 = vmatprep.subr.bf16.mxu1 %v12321_v36 }
 0x19d   : > { %5131 = vmatmul.mubr.f32.vlgmr.msra.gmra.mrb[32].mxu0 %v1761_v7  ;;  %v12329_v7 = vpack.c.bf16 %v723_v60, %v467_v59  ;;  %v12357_v60 = vpack.c.bf16 %v1241_v55, %v985_v54 }
 0x19e   : > { %12316 = vmatpush1.bf16.xpose.msra.mxu0 %v12315_v48  ;;  %5201 = vmatmul.mubr.f32.vlgmr.msra.gmra.mrb[32].mxu1 %v1768_v10  ;;  %v466_v10 = vld [vmem:[%s13655_s14 + $0x240] sm:$0xff] }
 0x19f   : > { %12324 = vmatpush1.bf16.xpose.msra.mxu1 %v12323_v49  ;;  %12318 = vmatprep.subr.bf16.mxu0 %v12317_v50  ;;  %v12331_v20 = vpack.c.bf16 %v722_v11, %v466_v10  ;;  %v726_v48 = vld [vmem:[%s13655_s14 + $0xa60] sm:$0xff]  ;;  %v472_v49 = vld [vmem:[%s13655_s14 + $0x270] sm:$0xff]  ;;  %v733_v10 = vld [vmem:[%s13655_s14 + $0xa98] sm:$0xff] }
 0x1a0   : > { %v3312_v57 = vpop.f32.mrb[6].mxu0  ;;  %12326 = vmatprep.subr.bf16.mxu1 %v12325_v51  ;;  %5270 = vmatprep.mubr.f32.mxu0 %v1786_v52  ;;  %v728_v50 = vld [vmem:[%s13655_s14 + $0xa70] sm:$0xff]  ;;  %v983_v51 = vld [vmem:[%s13655_s14 + $0x1268] sm:$0xff]  ;;  %v12369_v17 = vpack.c.bf16 %v733_v10, %v477_v9  ;;  %v1246_v9 = vld [vmem:[%s13655_s14 + $0x1aa0] sm:$0xff] }
 0x1a1   : > { %v3313_v61 = vadd.f32 %v3312_v57, %v3243_v33  ;;  %v3314_v62 = vpop.f32.mrb[7].mxu0  ;;  %v3382_v63 = vpop.f32.mrb[6].mxu1  ;;  %5340 = vmatprep.mubr.f32.mxu1 %v1787_v53  ;;  %v727_v33 = vld [vmem:[%s13655_s14 + $0xa68] sm:$0xff]  ;;  %v1812_v53 = vrot.slane %v349_v41, %v13692_v28  ;;  %v12355_v58 = vpack.c.bf16 %v728_v50, %v472_v49  ;;  %v992_v10 = vld [vmem:[%s13655_s14 + $0x12b0] sm:$0xff] }
 0x1a2   : > { %v3384_v2 = vpop.f32.mrb[7].mxu1  ;;  %v1239_v52 = vld [vmem:[%s13655_s14 + $0x1a68] sm:$0xff]  ;;  %v1821_v62 = vcombine.high %v1819_v56, %v1819_v56 }
 0x1a3   : > { %v3383_v5 = vadd.f32 %v3382_v63, %v3313_v61  ;;  %v12349_v59 = vpack.c.bf16 %v1239_v52, %v983_v51  ;;  %v1820_v61 = vcombine.high %v1812_v53, %v1812_v53  ;;  %v982_v63 = vld [vmem:[%s13655_s14 + $0x1260] sm:$0xff]  ;;  %v479_v41 = vld [vmem:[%s13655_s14 + $0x2a8] sm:$0xff] }
 0x1a4   : > { %v12351_v12 = vpack.c.bf16 %v1238_v0, %v982_v63  ;;  %v351_v50 = vld [vmem:[%s13673_s17 + $0xa8] sm:$0xff]  ;;  %v993_v63 = vld [vmem:[%s13655_s14 + $0x12b8] sm:$0xff] }
 0x1a5   : > { %v1839_v55 = vcombine.high %v351_v50, %v351_v50  ;;  %v1249_v0 = vld [vmem:[%s13655_s14 + $0x1ab8] sm:$0xff] }
 0x1a6   : > { %12320 = vmatpush1.bf16.xpose.msra.mxu0 %v12319_v3  ;;  %v1240_v3 = vld [vmem:[%s13655_s14 + $0x1a70] sm:$0xff] }
 0x1a7   : > { %12328 = vmatpush1.bf16.xpose.msra.mxu1 %v12327_v6  ;;  %12330 = vmatprep.subr.bf16.mxu0 %v12329_v7  ;;  %v12359_v15 = vpack.c.bf16 %v1240_v3, %v984_v1  ;;  %v1853_v1 = vrot.slane %v1839_v55, %v13692_v28  ;;  %v489_v55 = vld [vmem:[%s13655_s14 + $0x2f8] sm:$0xff] }
 0x1a8   : > { %12338 = vmatprep.subr.bf16.mxu1 %v12337_v8 }
 0x1ad   : > { %5271 = vmatmul.mubr.f32.vlgmr.msra.gmra.mrb[34].mxu0 %v1778_v44  ;;  %v12345_v44 = vpack.c.bf16 %v727_v33, %v471_v32  ;;  %v12373_v33 = vpack.c.bf16 %v1245_v27, %v989_v26 }
 0x1ae   : > { %12332 = vmatpush1.bf16.xpose.msra.mxu0 %v12331_v20  ;;  %5341 = vmatmul.mubr.f32.vlgmr.msra.gmra.mrb[34].mxu1 %v1785_v47  ;;  %v470_v47 = vld [vmem:[%s13655_s14 + $0x260] sm:$0xff] }
 0x1af   : > { %12340 = vmatpush1.bf16.xpose.msra.mxu1 %v12339_v21  ;;  %12334 = vmatprep.subr.bf16.mxu0 %v12333_v22  ;;  %v12347_v57 = vpack.c.bf16 %v726_v48, %v470_v47  ;;  %v730_v20 = vld [vmem:[%s13655_s14 + $0xa80] sm:$0xff]  ;;  %v476_v21 = vld [vmem:[%s13655_s14 + $0x290] sm:$0xff]  ;;  %v737_v47 = vld [vmem:[%s13655_s14 + $0xab8] sm:$0xff] }
 0x1b0   : > { %v3452_v30 = vpop.f32.mrb[8].mxu0  ;;  %12342 = vmatprep.subr.bf16.mxu1 %v12341_v23  ;;  %5410 = vmatprep.mubr.f32.mxu0 %v1803_v24  ;;  %v732_v22 = vld [vmem:[%s13655_s14 + $0xa90] sm:$0xff]  ;;  %v987_v23 = vld [vmem:[%s13655_s14 + $0x1288] sm:$0xff]  ;;  %v12385_v54 = vpack.c.bf16 %v737_v47, %v481_v46  ;;  %v1250_v46 = vld [vmem:[%s13655_s14 + $0x1ac0] sm:$0xff] }
 0x1b1   : > { %v3453_v34 = vadd.f32 %v3452_v30, %v3383_v5  ;;  %v3454_v35 = vpop.f32.mrb[9].mxu0  ;;  %v3522_v36 = vpop.f32.mrb[8].mxu1  ;;  %5480 = vmatprep.mubr.f32.mxu1 %v1804_v25  ;;  %v731_v5 = vld [vmem:[%s13655_s14 + $0xa88] sm:$0xff]  ;;  %v1829_v25 = vrot.slane %v350_v13, %v13692_v28  ;;  %v12371_v31 = vpack.c.bf16 %v732_v22, %v476_v21  ;;  %v996_v47 = vld [vmem:[%s13655_s14 + $0x12d0] sm:$0xff] }
 0x1b2   : > { %v3524_v39 = vpop.f32.mrb[9].mxu1  ;;  %v1243_v24 = vld [vmem:[%s13655_s14 + $0x1a88] sm:$0xff]  ;;  %v1838_v35 = vcombine.high %v1836_v29, %v1836_v29 }
 0x1b3   : > { %v3523_v42 = vadd.f32 %v3522_v36, %v3453_v34  ;;  %v12365_v32 = vpack.c.bf16 %v1243_v24, %v987_v23  ;;  %v1837_v34 = vcombine.high %v1829_v25, %v1829_v25  ;;  %v986_v36 = vld [vmem:[%s13655_s14 + $0x1280] sm:$0xff]  ;;  %v483_v13 = vld [vmem:[%s13655_s14 + $0x2c8] sm:$0xff] }
 0x1b4   : > { %v12367_v49 = vpack.c.bf16 %v1242_v37, %v986_v36  ;;  %v352_v22 = vld [vmem:[%s13673_s17 + $0xb0] sm:$0xff]  ;;  %v997_v36 = vld [vmem:[%s13655_s14 + $0x12d8] sm:$0xff] }
 0x1b5   : > { %v1856_v27 = vcombine.high %v352_v22, %v352_v22  ;;  %v1253_v37 = vld [vmem:[%s13655_s14 + $0x1ad8] sm:$0xff] }
 0x1b6   : > { %12336 = vmatpush1.bf16.xpose.msra.mxu0 %v12335_v40  ;;  %v1244_v40 = vld [vmem:[%s13655_s14 + $0x1a90] sm:$0xff] }
 0x1b7   : > { %12344 = vmatpush1.bf16.xpose.msra.mxu1 %v12343_v43  ;;  %12346 = vmatprep.subr.bf16.mxu0 %v12345_v44  ;;  %v12375_v52 = vpack.c.bf16 %v1244_v40, %v988_v38  ;;  %v1870_v38 = vrot.slane %v1856_v27, %v13692_v28  ;;  %v493_v27 = vld [vmem:[%s13655_s14 + $0x318] sm:$0xff] }
 0x1b8   : > { %12354 = vmatprep.subr.bf16.mxu1 %v12353_v45 }
 0x1bd   : > { %5411 = vmatmul.mubr.f32.vlgmr.msra.gmra.mrb[36].mxu0 %v1795_v16  ;;  %v12361_v16 = vpack.c.bf16 %v731_v5, %v475_v4  ;;  %v12389_v5 = vpack.c.bf16 %v1249_v0, %v993_v63 }
 0x1be   : > { %12348 = vmatpush1.bf16.xpose.msra.mxu0 %v12347_v57  ;;  %5481 = vmatmul.mubr.f32.vlgmr.msra.gmra.mrb[36].mxu1 %v1802_v19  ;;  %v474_v19 = vld [vmem:[%s13655_s14 + $0x280] sm:$0xff] }
 0x1bf   : > { %12356 = vmatpush1.bf16.xpose.msra.mxu1 %v12355_v58  ;;  %12350 = vmatprep.subr.bf16.mxu0 %v12349_v59  ;;  %v12363_v30 = vpack.c.bf16 %v730_v20, %v474_v19  ;;  %v734_v57 = vld [vmem:[%s13655_s14 + $0xaa0] sm:$0xff]  ;;  %v480_v58 = vld [vmem:[%s13655_s14 + $0x2b0] sm:$0xff]  ;;  %v741_v19 = vld [vmem:[%s13655_s14 + $0xad8] sm:$0xff] }
 0x1c0   : > { %v3592_v2 = vpop.f32.mrb[10].mxu0  ;;  %12358 = vmatprep.subr.bf16.mxu1 %v12357_v60  ;;  %5550 = vmatprep.mubr.f32.mxu0 %v1820_v61  ;;  %v736_v59 = vld [vmem:[%s13655_s14 + $0xab0] sm:$0xff]  ;;  %v991_v60 = vld [vmem:[%s13655_s14 + $0x12a8] sm:$0xff]  ;;  %v12401_v26 = vpack.c.bf16 %v741_v19, %v485_v18  ;;  %v1254_v18 = vld [vmem:[%s13655_s14 + $0x1ae0] sm:$0xff] }
 0x1c1   : > { %v3593_v6 = vadd.f32 %v3592_v2, %v3523_v42  ;;  %v3594_v7 = vpop.f32.mrb[11].mxu0  ;;  %v3662_v8 = vpop.f32.mrb[10].mxu1  ;;  %5620 = vmatprep.mubr.f32.mxu1 %v1821_v62  ;;  %v735_v42 = vld [vmem:[%s13655_s14 + $0xaa8] sm:$0xff]  ;;  %v1846_v62 = vrot.slane %v351_v50, %v13692_v28  ;;  %v12387_v3 = vpack.c.bf16 %v736_v59, %v480_v58  ;;  %v353_v59 = vld [vmem:[%s13673_s17 + $0xb8] sm:$0xff] }
 0x1c2   : > { %v3664_v11 = vpop.f32.mrb[11].mxu1  ;;  %v1247_v61 = vld [vmem:[%s13655_s14 + $0x1aa8] sm:$0xff]  ;;  %v1855_v7 = vcombine.high %v1853_v1, %v1853_v1  ;;  %v1873_v0 = vcombine.high %v353_v59, %v353_v59  ;;  %v1000_v19 = vld [vmem:[%s13655_s14 + $0x12f0] sm:$0xff] }
 0x1c3   : > { %v3663_v14 = vadd.f32 %v3662_v8, %v3593_v6  ;;  %v12381_v4 = vpack.c.bf16 %v1247_v61, %v991_v60  ;;  %v1854_v6 = vcombine.high %v1846_v62, %v1846_v62  ;;  %v990_v8 = vld [vmem:[%s13655_s14 + $0x12a0] sm:$0xff]  ;;  %v487_v50 = vld [vmem:[%s13655_s14 + $0x2e8] sm:$0xff] }
 0x1c4   : > { %v12383_v21 = vpack.c.bf16 %v1246_v9, %v990_v8  ;;  %v1001_v8 = vld [vmem:[%s13655_s14 + $0x12f8] sm:$0xff] }
 0x1c5   : > { %v1257_v9 = vld [vmem:[%s13655_s14 + $0x1af8] sm:$0xff] }
 0x1c6   : > { %12352 = vmatpush1.bf16.xpose.msra.mxu0 %v12351_v12  ;;  %v1248_v12 = vld [vmem:[%s13655_s14 + $0x1ab0] sm:$0xff] }
 0x1c7   : > { %12360 = vmatpush1.bf16.xpose.msra.mxu1 %v12359_v15  ;;  %12362 = vmatprep.subr.bf16.mxu0 %v12361_v16  ;;  %v12391_v24 = vpack.c.bf16 %v1248_v12, %v992_v10  ;;  %v1887_v10 = vrot.slane %v1873_v0, %v13692_v28  ;;  %v497_v0 = vld [vmem:[%s13655_s14 + $0x338] sm:$0xff] }
 0x1c8   : > { %12370 = vmatprep.subr.bf16.mxu1 %v12369_v17 }
 0x1cd   : > { %5551 = vmatmul.mubr.f32.vlgmr.msra.gmra.mrb[38].mxu0 %v1812_v53  ;;  %v12377_v53 = vpack.c.bf16 %v735_v42, %v479_v41  ;;  %v12405_v42 = vpack.c.bf16 %v1253_v37, %v997_v36 }
 0x1ce   : > { %12364 = vmatpush1.bf16.xpose.msra.mxu0 %v12363_v30  ;;  %5621 = vmatmul.mubr.f32.vlgmr.msra.gmra.mrb[38].mxu1 %v1819_v56  ;;  %v478_v56 = vld [vmem:[%s13655_s14 + $0x2a0] sm:$0xff] }
 0x1cf   : > { %12372 = vmatpush1.bf16.xpose.msra.mxu1 %v12371_v31  ;;  %12366 = vmatprep.subr.bf16.mxu0 %v12365_v32  ;;  %v12379_v2 = vpack.c.bf16 %v734_v57, %v478_v56  ;;  %v738_v30 = vld [vmem:[%s13655_s14 + $0xac0] sm:$0xff]  ;;  %v484_v31 = vld [vmem:[%s13655_s14 + $0x2d0] sm:$0xff]  ;;  %v745_v56 = vld [vmem:[%s13655_s14 + $0xaf8] sm:$0xff] }
 0x1d0   : > { %v3732_v39 = vpop.f32.mrb[12].mxu0  ;;  %12374 = vmatprep.subr.bf16.mxu1 %v12373_v33  ;;  %5690 = vmatprep.mubr.f32.mxu0 %v1837_v34  ;;  %v740_v32 = vld [vmem:[%s13655_s14 + $0xad0] sm:$0xff]  ;;  %v995_v33 = vld [vmem:[%s13655_s14 + $0x12c8] sm:$0xff]  ;;  %v12417_v63 = vpack.c.bf16 %v745_v56, %v489_v55  ;;  %v1258_v55 = vld [vmem:[%s13655_s14 + $0x1b00] sm:$0xff] }
 0x1d1   : > { %v3733_v43 = vadd.f32 %v3732_v39, %v3663_v14  ;;  %v3734_v44 = vpop.f32.mrb[13].mxu0  ;;  %v3802_v45 = vpop.f32.mrb[12].mxu1  ;;  %5760 = vmatprep.mubr.f32.mxu1 %v1838_v35  ;;  %v739_v14 = vld [vmem:[%s13655_s14 + $0xac8] sm:$0xff]  ;;  %v1863_v35 = vrot.slane %v352_v22, %v13692_v28  ;;  %v12403_v40 = vpack.c.bf16 %v740_v32, %v484_v31  ;;  %v354_v32 = vld [vmem:[%s13673_s17 + $0xc0] sm:$0xff]  ;;  %v1004_v56 = vld [vmem:[%s13655_s14 + $0x1310] sm:$0xff] }
 0x1d2   : > { %v3804_v48 = vpop.f32.mrb[13].mxu1  ;;  %v1251_v34 = vld [vmem:[%s13655_s14 + $0x1ac8] sm:$0xff]  ;;  %v1872_v44 = vcombine.high %v1870_v38, %v1870_v38  ;;  %v1890_v37 = vcombine.high %v354_v32, %v354_v32 }
 0x1d3   : > { %v3803_v51 = vadd.f32 %v3802_v45, %v3733_v43  ;;  %v12397_v41 = vpack.c.bf16 %v1251_v34, %v995_v33  ;;  %v1871_v43 = vcombine.high %v1863_v35, %v1863_v35  ;;  %v994_v45 = vld [vmem:[%s13655_s14 + $0x12c0] sm:$0xff]  ;;  %v491_v22 = vld [vmem:[%s13655_s14 + $0x308] sm:$0xff] }
 0x1d4   : > { %v12399_v58 = vpack.c.bf16 %v1250_v46, %v994_v45  ;;  %v1005_v45 = vld [vmem:[%s13655_s14 + $0x1318] sm:$0xff] }
 0x1d5   : > { %v1261_v46 = vld [vmem:[%s13655_s14 + $0x1b18] sm:$0xff] }
 0x1d6   : > { %12368 = vmatpush1.bf16.xpose.msra.mxu0 %v12367_v49  ;;  %v1252_v49 = vld [vmem:[%s13655_s14 + $0x1ad0] sm:$0xff] }
 0x1d7   : > { %12376 = vmatpush1.bf16.xpose.msra.mxu1 %v12375_v52  ;;  %12378 = vmatprep.subr.bf16.mxu0 %v12377_v53  ;;  %v12407_v61 = vpack.c.bf16 %v1252_v49, %v996_v47  ;;  %v1904_v47 = vrot.slane %v1890_v37, %v13692_v28  ;;  %v501_v37 = vld [vmem:[%s13655_s14 + $0x358] sm:$0xff] }
 0x1d8   : > { %12386 = vmatprep.subr.bf16.mxu1 %v12385_v54 }
 0x1dd   : > { %5691 = vmatmul.mubr.f32.vlgmr.msra.gmra.mrb[40].mxu0 %v1829_v25  ;;  %v12393_v25 = vpack.c.bf16 %v739_v14, %v483_v13  ;;  %v12421_v14 = vpack.c.bf16 %v1257_v9, %v1001_v8 }
 0x1de   : > { %12380 = vmatpush1.bf16.xpose.msra.mxu0 %v12379_v2  ;;  %5761 = vmatmul.mubr.f32.vlgmr.msra.gmra.mrb[40].mxu1 %v1836_v29  ;;  %v482_v29 = vld [vmem:[%s13655_s14 + $0x2c0] sm:$0xff] }
 0x1df   : > { %12388 = vmatpush1.bf16.xpose.msra.mxu1 %v12387_v3  ;;  %12382 = vmatprep.subr.bf16.mxu0 %v12381_v4  ;;  %v12395_v39 = vpack.c.bf16 %v738_v30, %v482_v29  ;;  %v742_v2 = vld [vmem:[%s13655_s14 + $0xae0] sm:$0xff]  ;;  %v488_v3 = vld [vmem:[%s13655_s14 + $0x2f0] sm:$0xff]  ;;  %v749_v29 = vld [vmem:[%s13655_s14 + $0xb18] sm:$0xff] }
 0x1e0   : > { %v3872_v11 = vpop.f32.mrb[14].mxu0  ;;  %12390 = vmatprep.subr.bf16.mxu1 %v12389_v5  ;;  %5830 = vmatprep.mubr.f32.mxu0 %v1854_v6  ;;  %v744_v4 = vld [vmem:[%s13655_s14 + $0xaf0] sm:$0xff]  ;;  %v999_v5 = vld [vmem:[%s13655_s14 + $0x12e8] sm:$0xff]  ;;  %v12433_v36 = vpack.c.bf16 %v749_v29, %v493_v27  ;;  %v1262_v27 = vld [vmem:[%s13655_s14 + $0x1b20] sm:$0xff] }
 0x1e1   : > { %v3873_v15 = vadd.f32 %v3872_v11, %v3803_v51  ;;  %v3874_v16 = vpop.f32.mrb[15].mxu0  ;;  %v3942_v17 = vpop.f32.mrb[14].mxu1  ;;  %5900 = vmatprep.mubr.f32.mxu1 %v1855_v7  ;;  %v743_v51 = vld [vmem:[%s13655_s14 + $0xae8] sm:$0xff]  ;;  %v1880_v7 = vrot.slane %v353_v59, %v13692_v28  ;;  %v12419_v12 = vpack.c.bf16 %v744_v4, %v488_v3  ;;  %v1008_v29 = vld [vmem:[%s13655_s14 + $0x1330] sm:$0xff] }
 0x1e2   : > { %v3944_v20 = vpop.f32.mrb[15].mxu1  ;;  %v1255_v6 = vld [vmem:[%s13655_s14 + $0x1ae8] sm:$0xff]  ;;  %v1889_v16 = vcombine.high %v1887_v10, %v1887_v10 }
 0x1e3   : > { %v3943_v23 = vadd.f32 %v3942_v17, %v3873_v15  ;;  %v12413_v13 = vpack.c.bf16 %v1255_v6, %v999_v5  ;;  %v1888_v15 = vcombine.high %v1880_v7, %v1880_v7  ;;  %v998_v17 = vld [vmem:[%s13655_s14 + $0x12e0] sm:$0xff]  ;;  %v495_v59 = vld [vmem:[%s13655_s14 + $0x328] sm:$0xff] }
 0x1e4   : > { %v12415_v31 = vpack.c.bf16 %v1254_v18, %v998_v17  ;;  %v355_v4 = vld [vmem:[%s13673_s17 + $0xc8] sm:$0xff]  ;;  %v1009_v17 = vld [vmem:[%s13655_s14 + $0x1338] sm:$0xff] }
 0x1e5   : > { %v1907_v9 = vcombine.high %v355_v4, %v355_v4  ;;  %v1265_v18 = vld [vmem:[%s13655_s14 + $0x1b38] sm:$0xff] }
 0x1e6   : > { %12384 = vmatpush1.bf16.xpose.msra.mxu0 %v12383_v21  ;;  %v1256_v21 = vld [vmem:[%s13655_s14 + $0x1af0] sm:$0xff] }
 0x1e7   : > { %12392 = vmatpush1.bf16.xpose.msra.mxu1 %v12391_v24  ;;  %12394 = vmatprep.subr.bf16.mxu0 %v12393_v25  ;;  %v12423_v34 = vpack.c.bf16 %v1256_v21, %v1000_v19  ;;  %v1921_v19 = vrot.slane %v1907_v9, %v13692_v28  ;;  %v505_v9 = vld [vmem:[%s13655_s14 + $0x378] sm:$0xff] }
 0x1e8   : > { %12402 = vmatprep.subr.bf16.mxu1 %v12401_v26 }
 0x1ed   : > { %5831 = vmatmul.mubr.f32.vlgmr.msra.gmra.mrb[42].mxu0 %v1846_v62  ;;  %v12409_v62 = vpack.c.bf16 %v743_v51, %v487_v50  ;;  %v12437_v51 = vpack.c.bf16 %v1261_v46, %v1005_v45 }
 0x1ee   : > { %12396 = vmatpush1.bf16.xpose.msra.mxu0 %v12395_v39  ;;  %5901 = vmatmul.mubr.f32.vlgmr.msra.gmra.mrb[42].mxu1 %v1853_v1  ;;  %v486_v1 = vld [vmem:[%s13655_s14 + $0x2e0] sm:$0xff] }
 0x1ef   : > { %12404 = vmatpush1.bf16.xpose.msra.mxu1 %v12403_v40  ;;  %12398 = vmatprep.subr.bf16.mxu0 %v12397_v41  ;;  %v12411_v11 = vpack.c.bf16 %v742_v2, %v486_v1  ;;  %v746_v39 = vld [vmem:[%s13655_s14 + $0xb00] sm:$0xff]  ;;  %v492_v40 = vld [vmem:[%s13655_s14 + $0x310] sm:$0xff]  ;;  %v753_v1 = vld [vmem:[%s13655_s14 + $0xb38] sm:$0xff] }
 0x1f0   : > { %v4012_v48 = vpop.f32.mrb[16].mxu0  ;;  %12406 = vmatprep.subr.bf16.mxu1 %v12405_v42  ;;  %5970 = vmatprep.mubr.f32.mxu0 %v1871_v43  ;;  %v748_v41 = vld [vmem:[%s13655_s14 + $0xb10] sm:$0xff]  ;;  %v1003_v42 = vld [vmem:[%s13655_s14 + $0x1308] sm:$0xff]  ;;  %v12449_v8 = vpack.c.bf16 %v753_v1, %v497_v0  ;;  %v1266_v0 = vld [vmem:[%s13655_s14 + $0x1b40] sm:$0xff] }
 0x1f1   : > { %v4013_v52 = vadd.f32 %v4012_v48, %v3943_v23  ;;  %v4014_v53 = vpop.f32.mrb[17].mxu0  ;;  %v4082_v54 = vpop.f32.mrb[16].mxu1  ;;  %6040 = vmatprep.mubr.f32.mxu1 %v1872_v44  ;;  %v747_v23 = vld [vmem:[%s13655_s14 + $0xb08] sm:$0xff]  ;;  %v1897_v44 = vrot.slane %v354_v32, %v13692_v28  ;;  %v12435_v49 = vpack.c.bf16 %v748_v41, %v492_v40  ;;  %v1012_v1 = vld [vmem:[%s13655_s14 + $0x1350] sm:$0xff] }
 0x1f2   : > { %v4084_v57 = vpop.f32.mrb[17].mxu1  ;;  %v1259_v43 = vld [vmem:[%s13655_s14 + $0x1b08] sm:$0xff]  ;;  %v1906_v53 = vcombine.high %v1904_v47, %v1904_v47 }
 0x1f3   : > { %v4083_v60 = vadd.f32 %v4082_v54, %v4013_v52  ;;  %v12429_v50 = vpack.c.bf16 %v1259_v43, %v1003_v42  ;;  %v1905_v52 = vcombine.high %v1897_v44, %v1897_v44  ;;  %v1002_v54 = vld [vmem:[%s13655_s14 + $0x1300] sm:$0xff]  ;;  %v499_v32 = vld [vmem:[%s13655_s14 + $0x348] sm:$0xff] }
 0x1f4   : > { %v12431_v3 = vpack.c.bf16 %v1258_v55, %v1002_v54  ;;  %v356_v41 = vld [vmem:[%s13673_s17 + $0xd0] sm:$0xff]  ;;  %v1013_v54 = vld [vmem:[%s13655_s14 + $0x1358] sm:$0xff] }
 0x1f5   : > { %v1924_v46 = vcombine.high %v356_v41, %v356_v41  ;;  %v1269_v55 = vld [vmem:[%s13655_s14 + $0x1b58] sm:$0xff] }
 0x1f6   : > { %12400 = vmatpush1.bf16.xpose.msra.mxu0 %v12399_v58  ;;  %v1260_v58 = vld [vmem:[%s13655_s14 + $0x1b10] sm:$0xff] }
 0x1f7   : > { %12408 = vmatpush1.bf16.xpose.msra.mxu1 %v12407_v61  ;;  %12410 = vmatprep.subr.bf16.mxu0 %v12409_v62  ;;  %v12439_v6 = vpack.c.bf16 %v1260_v58, %v1004_v56  ;;  %v1938_v56 = vrot.slane %v1924_v46, %v13692_v28  ;;  %v509_v46 = vld [vmem:[%s13655_s14 + $0x398] sm:$0xff] }
 0x1f8   : > { %12418 = vmatprep.subr.bf16.mxu1 %v12417_v63 }
 0x1fd   : > { %5971 = vmatmul.mubr.f32.vlgmr.msra.gmra.mrb[44].mxu0 %v1863_v35  ;;  %v12425_v35 = vpack.c.bf16 %v747_v23, %v491_v22  ;;  %v12453_v23 = vpack.c.bf16 %v1265_v18, %v1009_v17 }
 0x1fe   : > { %12412 = vmatpush1.bf16.xpose.msra.mxu0 %v12411_v11  ;;  %6041 = vmatmul.mubr.f32.vlgmr.msra.gmra.mrb[44].mxu1 %v1870_v38  ;;  %v490_v38 = vld [vmem:[%s13655_s14 + $0x300] sm:$0xff] }
 0x1ff   : > { %12420 = vmatpush1.bf16.xpose.msra.mxu1 %v12419_v12  ;;  %12414 = vmatprep.subr.bf16.mxu0 %v12413_v13  ;;  %v12427_v48 = vpack.c.bf16 %v746_v39, %v490_v38  ;;  %v750_v11 = vld [vmem:[%s13655_s14 + $0xb20] sm:$0xff]  ;;  %v496_v12 = vld [vmem:[%s13655_s14 + $0x330] sm:$0xff]  ;;  %v757_v38 = vld [vmem:[%s13655_s14 + $0xb58] sm:$0xff] }
 0x200   : > { %v4152_v20 = vpop.f32.mrb[18].mxu0  ;;  %12422 = vmatprep.subr.bf16.mxu1 %v12421_v14  ;;  %6110 = vmatprep.mubr.f32.mxu0 %v1888_v15  ;;  %v752_v13 = vld [vmem:[%s13655_s14 + $0xb30] sm:$0xff]  ;;  %v1007_v14 = vld [vmem:[%s13655_s14 + $0x1328] sm:$0xff]  ;;  %v12465_v45 = vpack.c.bf16 %v757_v38, %v501_v37  ;;  %v1270_v37 = vld [vmem:[%s13655_s14 + $0x1b60] sm:$0xff] }
 0x201   : > { %v4153_v24 = vadd.f32 %v4152_v20, %v4083_v60  ;;  %v4154_v25 = vpop.f32.mrb[19].mxu0  ;;  %v4222_v26 = vpop.f32.mrb[18].mxu1  ;;  %6180 = vmatprep.mubr.f32.mxu1 %v1889_v16  ;;  %v751_v60 = vld [vmem:[%s13655_s14 + $0xb28] sm:$0xff]  ;;  %v1914_v16 = vrot.slane %v355_v4, %v13692_v28  ;;  %v12451_v21 = vpack.c.bf16 %v752_v13, %v496_v12  ;;  %v357_v13 = vld [vmem:[%s13673_s17 + $0xd8] sm:$0xff] }
 0x202   : > { %v4224_v30 = vpop.f32.mrb[19].mxu1  ;;  %v1263_v15 = vld [vmem:[%s13655_s14 + $0x1b28] sm:$0xff]  ;;  %v1923_v25 = vcombine.high %v1921_v19, %v1921_v19  ;;  %v1941_v18 = vcombine.high %v357_v13, %v357_v13  ;;  %v1016_v38 = vld [vmem:[%s13655_s14 + $0x1370] sm:$0xff] }
 0x203   : > { %v4223_v33 = vadd.f32 %v4222_v26, %v4153_v24  ;;  %v12445_v22 = vpack.c.bf16 %v1263_v15, %v1007_v14  ;;  %v1922_v24 = vcombine.high %v1914_v16, %v1914_v16  ;;  %v1006_v26 = vld [vmem:[%s13655_s14 + $0x1320] sm:$0xff]  ;;  %v503_v4 = vld [vmem:[%s13655_s14 + $0x368] sm:$0xff] }
 0x204   : > { %v12447_v40 = vpack.c.bf16 %v1262_v27, %v1006_v26  ;;  %v1017_v26 = vld [vmem:[%s13655_s14 + $0x1378] sm:$0xff] }
 0x205   : > { %v1273_v27 = vld [vmem:[%s13655_s14 + $0x1b78] sm:$0xff] }
 0x206   : > { %12416 = vmatpush1.bf16.xpose.msra.mxu0 %v12415_v31  ;;  %v1264_v31 = vld [vmem:[%s13655_s14 + $0x1b30] sm:$0xff] }
 0x207   : > { %12424 = vmatpush1.bf16.xpose.msra.mxu1 %v12423_v34  ;;  %12426 = vmatprep.subr.bf16.mxu0 %v12425_v35  ;;  %v12455_v43 = vpack.c.bf16 %v1264_v31, %v1008_v29  ;;  %v1955_v29 = vrot.slane %v1941_v18, %v13692_v28  ;;  %v513_v18 = vld [vmem:[%s13655_s14 + $0x3b8] sm:$0xff] }
 0x208   : > { %12434 = vmatprep.subr.bf16.mxu1 %v12433_v36 }
 0x20d   : > { %6111 = vmatmul.mubr.f32.vlgmr.msra.gmra.mrb[46].mxu0 %v1880_v7  ;;  %v12441_v7 = vpack.c.bf16 %v751_v60, %v495_v59  ;;  %v12469_v60 = vpack.c.bf16 %v1269_v55, %v1013_v54 }
 0x20e   : > { %12428 = vmatpush1.bf16.xpose.msra.mxu0 %v12427_v48  ;;  %6181 = vmatmul.mubr.f32.vlgmr.msra.gmra.mrb[46].mxu1 %v1887_v10  ;;  %v494_v10 = vld [vmem:[%s13655_s14 + $0x320] sm:$0xff] }
 0x20f   : > { %12436 = vmatpush1.bf16.xpose.msra.mxu1 %v12435_v49  ;;  %12430 = vmatprep.subr.bf16.mxu0 %v12429_v50  ;;  %v12443_v20 = vpack.c.bf16 %v750_v11, %v494_v10  ;;  %v754_v48 = vld [vmem:[%s13655_s14 + $0xb40] sm:$0xff]  ;;  %v500_v49 = vld [vmem:[%s13655_s14 + $0x350] sm:$0xff]  ;;  %v761_v10 = vld [vmem:[%s13655_s14 + $0xb78] sm:$0xff] }
 0x210   : > { %v4292_v57 = vpop.f32.mrb[20].mxu0  ;;  %12438 = vmatprep.subr.bf16.mxu1 %v12437_v51  ;;  %6250 = vmatprep.mubr.f32.mxu0 %v1905_v52  ;;  %v756_v50 = vld [vmem:[%s13655_s14 + $0xb50] sm:$0xff]  ;;  %v1011_v51 = vld [vmem:[%s13655_s14 + $0x1348] sm:$0xff]  ;;  %v12481_v17 = vpack.c.bf16 %v761_v10, %v505_v9  ;;  %v1274_v9 = vld [vmem:[%s13655_s14 + $0x1b80] sm:$0xff] }
 0x211   : > { %v4293_v61 = vadd.f32 %v4292_v57, %v4223_v33  ;;  %v4294_v62 = vpop.f32.mrb[21].mxu0  ;;  %v4362_v63 = vpop.f32.mrb[20].mxu1  ;;  %6320 = vmatprep.mubr.f32.mxu1 %v1906_v53  ;;  %v755_v33 = vld [vmem:[%s13655_s14 + $0xb48] sm:$0xff]  ;;  %v1931_v53 = vrot.slane %v356_v41, %v13692_v28  ;;  %v12467_v58 = vpack.c.bf16 %v756_v50, %v500_v49  ;;  %v358_v50 = vld [vmem:[%s13673_s17 + $0xe0] sm:$0xff]  ;;  %v1020_v10 = vld [vmem:[%s13655_s14 + $0x1390] sm:$0xff] }
 0x212   : > { %v4364_v2 = vpop.f32.mrb[21].mxu1  ;;  %v1267_v52 = vld [vmem:[%s13655_s14 + $0x1b48] sm:$0xff]  ;;  %v1940_v62 = vcombine.high %v1938_v56, %v1938_v56  ;;  %v1958_v55 = vcombine.high %v358_v50, %v358_v50 }
 0x213   : > { %v4363_v5 = vadd.f32 %v4362_v63, %v4293_v61  ;;  %v12461_v59 = vpack.c.bf16 %v1267_v52, %v1011_v51  ;;  %v1939_v61 = vcombine.high %v1931_v53, %v1931_v53  ;;  %v1010_v63 = vld [vmem:[%s13655_s14 + $0x1340] sm:$0xff]  ;;  %v507_v41 = vld [vmem:[%s13655_s14 + $0x388] sm:$0xff] }
 0x214   : > { %v12463_v12 = vpack.c.bf16 %v1266_v0, %v1010_v63  ;;  %v1021_v63 = vld [vmem:[%s13655_s14 + $0x1398] sm:$0xff] }
 0x215   : > { %v1277_v0 = vld [vmem:[%s13655_s14 + $0x1b98] sm:$0xff] }
 0x216   : > { %12432 = vmatpush1.bf16.xpose.msra.mxu0 %v12431_v3  ;;  %v1268_v3 = vld [vmem:[%s13655_s14 + $0x1b50] sm:$0xff] }
 0x217   : > { %12440 = vmatpush1.bf16.xpose.msra.mxu1 %v12439_v6  ;;  %12442 = vmatprep.subr.bf16.mxu0 %v12441_v7  ;;  %v12471_v15 = vpack.c.bf16 %v1268_v3, %v1012_v1  ;;  %v1972_v1 = vrot.slane %v1958_v55, %v13692_v28  ;;  %v517_v55 = vld [vmem:[%s13655_s14 + $0x3d8] sm:$0xff] }
 0x218   : > { %12450 = vmatprep.subr.bf16.mxu1 %v12449_v8 }
 0x21d   : > { %6251 = vmatmul.mubr.f32.vlgmr.msra.gmra.mrb[48].mxu0 %v1897_v44  ;;  %v12457_v44 = vpack.c.bf16 %v755_v33, %v499_v32  ;;  %v12485_v33 = vpack.c.bf16 %v1273_v27, %v1017_v26 }
 0x21e   : > { %12444 = vmatpush1.bf16.xpose.msra.mxu0 %v12443_v20  ;;  %6321 = vmatmul.mubr.f32.vlgmr.msra.gmra.mrb[48].mxu1 %v1904_v47  ;;  %v498_v47 = vld [vmem:[%s13655_s14 + $0x340] sm:$0xff] }
 0x21f   : > { %12452 = vmatpush1.bf16.xpose.msra.mxu1 %v12451_v21  ;;  %12446 = vmatprep.subr.bf16.mxu0 %v12445_v22  ;;  %v12459_v57 = vpack.c.bf16 %v754_v48, %v498_v47  ;;  %v758_v20 = vld [vmem:[%s13655_s14 + $0xb60] sm:$0xff]  ;;  %v504_v21 = vld [vmem:[%s13655_s14 + $0x370] sm:$0xff]  ;;  %v765_v47 = vld [vmem:[%s13655_s14 + $0xb98] sm:$0xff] }
 0x220   : > { %v4432_v30 = vpop.f32.mrb[22].mxu0  ;;  %12454 = vmatprep.subr.bf16.mxu1 %v12453_v23  ;;  %6390 = vmatprep.mubr.f32.mxu0 %v1922_v24  ;;  %v760_v22 = vld [vmem:[%s13655_s14 + $0xb70] sm:$0xff]  ;;  %v1015_v23 = vld [vmem:[%s13655_s14 + $0x1368] sm:$0xff]  ;;  %v12497_v54 = vpack.c.bf16 %v765_v47, %v509_v46  ;;  %v1278_v46 = vld [vmem:[%s13655_s14 + $0x1ba0] sm:$0xff] }
 0x221   : > { %v4433_v34 = vadd.f32 %v4432_v30, %v4363_v5  ;;  %v4434_v35 = vpop.f32.mrb[23].mxu0  ;;  %v4502_v36 = vpop.f32.mrb[22].mxu1  ;;  %6460 = vmatprep.mubr.f32.mxu1 %v1923_v25  ;;  %v759_v5 = vld [vmem:[%s13655_s14 + $0xb68] sm:$0xff]  ;;  %v1948_v25 = vrot.slane %v357_v13, %v13692_v28  ;;  %v12483_v31 = vpack.c.bf16 %v760_v22, %v504_v21  ;;  %v1024_v47 = vld [vmem:[%s13655_s14 + $0x13b0] sm:$0xff] }
 0x222   : > { %v4504_v39 = vpop.f32.mrb[23].mxu1  ;;  %v1271_v24 = vld [vmem:[%s13655_s14 + $0x1b68] sm:$0xff]  ;;  %v1957_v35 = vcombine.high %v1955_v29, %v1955_v29 }
 0x223   : > { %v4503_v42 = vadd.f32 %v4502_v36, %v4433_v34  ;;  %v12477_v32 = vpack.c.bf16 %v1271_v24, %v1015_v23  ;;  %v1956_v34 = vcombine.high %v1948_v25, %v1948_v25  ;;  %v1014_v36 = vld [vmem:[%s13655_s14 + $0x1360] sm:$0xff]  ;;  %v511_v13 = vld [vmem:[%s13655_s14 + $0x3a8] sm:$0xff] }
 0x224   : > { %v12479_v49 = vpack.c.bf16 %v1270_v37, %v1014_v36  ;;  %v359_v22 = vld [vmem:[%s13673_s17 + $0xe8] sm:$0xff]  ;;  %v1025_v36 = vld [vmem:[%s13655_s14 + $0x13b8] sm:$0xff] }
 0x225   : > { %v1975_v27 = vcombine.high %v359_v22, %v359_v22  ;;  %v1281_v37 = vld [vmem:[%s13655_s14 + $0x1bb8] sm:$0xff] }
 0x226   : > { %12448 = vmatpush1.bf16.xpose.msra.mxu0 %v12447_v40  ;;  %v1272_v40 = vld [vmem:[%s13655_s14 + $0x1b70] sm:$0xff] }
 0x227   : > { %12456 = vmatpush1.bf16.xpose.msra.mxu1 %v12455_v43  ;;  %12458 = vmatprep.subr.bf16.mxu0 %v12457_v44  ;;  %v12487_v52 = vpack.c.bf16 %v1272_v40, %v1016_v38  ;;  %v1989_v38 = vrot.slane %v1975_v27, %v13692_v28  ;;  %v521_v27 = vld [vmem:[%s13655_s14 + $0x3f8] sm:$0xff] }
 0x228   : > { %12466 = vmatprep.subr.bf16.mxu1 %v12465_v45 }
 0x22d   : > { %6391 = vmatmul.mubr.f32.vlgmr.msra.gmra.mrb[50].mxu0 %v1914_v16  ;;  %v12473_v16 = vpack.c.bf16 %v759_v5, %v503_v4  ;;  %v12501_v5 = vpack.c.bf16 %v1277_v0, %v1021_v63 }
 0x22e   : > { %12460 = vmatpush1.bf16.xpose.msra.mxu0 %v12459_v57  ;;  %6461 = vmatmul.mubr.f32.vlgmr.msra.gmra.mrb[50].mxu1 %v1921_v19  ;;  %v502_v19 = vld [vmem:[%s13655_s14 + $0x360] sm:$0xff] }
 0x22f   : > { %12468 = vmatpush1.bf16.xpose.msra.mxu1 %v12467_v58  ;;  %12462 = vmatprep.subr.bf16.mxu0 %v12461_v59  ;;  %v12475_v30 = vpack.c.bf16 %v758_v20, %v502_v19  ;;  %v762_v57 = vld [vmem:[%s13655_s14 + $0xb80] sm:$0xff]  ;;  %v508_v58 = vld [vmem:[%s13655_s14 + $0x390] sm:$0xff]  ;;  %v769_v19 = vld [vmem:[%s13655_s14 + $0xbb8] sm:$0xff] }
 0x230   : > { %v4572_v2 = vpop.f32.mrb[24].mxu0  ;;  %12470 = vmatprep.subr.bf16.mxu1 %v12469_v60  ;;  %6530 = vmatprep.mubr.f32.mxu0 %v1939_v61  ;;  %v764_v59 = vld [vmem:[%s13655_s14 + $0xb90] sm:$0xff]  ;;  %v1019_v60 = vld [vmem:[%s13655_s14 + $0x1388] sm:$0xff]  ;;  %v12513_v26 = vpack.c.bf16 %v769_v19, %v513_v18  ;;  %v1282_v18 = vld [vmem:[%s13655_s14 + $0x1bc0] sm:$0xff] }
 0x231   : > { %v4573_v6 = vadd.f32 %v4572_v2, %v4503_v42  ;;  %v4574_v7 = vpop.f32.mrb[25].mxu0  ;;  %v4642_v8 = vpop.f32.mrb[24].mxu1  ;;  %6600 = vmatprep.mubr.f32.mxu1 %v1940_v62  ;;  %v763_v42 = vld [vmem:[%s13655_s14 + $0xb88] sm:$0xff]  ;;  %v1965_v62 = vrot.slane %v358_v50, %v13692_v28  ;;  %v12499_v3 = vpack.c.bf16 %v764_v59, %v508_v58  ;;  %v1028_v19 = vld [vmem:[%s13655_s14 + $0x13d0] sm:$0xff] }
 0x232   : > { %v4644_v11 = vpop.f32.mrb[25].mxu1  ;;  %v1275_v61 = vld [vmem:[%s13655_s14 + $0x1b88] sm:$0xff]  ;;  %v1974_v7 = vcombine.high %v1972_v1, %v1972_v1 }
 0x233   : > { %v4643_v14 = vadd.f32 %v4642_v8, %v4573_v6  ;;  %v12493_v4 = vpack.c.bf16 %v1275_v61, %v1019_v60  ;;  %v1973_v6 = vcombine.high %v1965_v62, %v1965_v62  ;;  %v1018_v8 = vld [vmem:[%s13655_s14 + $0x1380] sm:$0xff]  ;;  %v515_v50 = vld [vmem:[%s13655_s14 + $0x3c8] sm:$0xff] }
 0x234   : > { %v12495_v21 = vpack.c.bf16 %v1274_v9, %v1018_v8  ;;  %v360_v59 = vld [vmem:[%s13673_s17 + $0xf0] sm:$0xff]  ;;  %v1029_v8 = vld [vmem:[%s13655_s14 + $0x13d8] sm:$0xff] }
 0x235   : > { %v1992_v0 = vcombine.high %v360_v59, %v360_v59  ;;  %v1285_v9 = vld [vmem:[%s13655_s14 + $0x1bd8] sm:$0xff] }
 0x236   : > { %12464 = vmatpush1.bf16.xpose.msra.mxu0 %v12463_v12  ;;  %v1276_v12 = vld [vmem:[%s13655_s14 + $0x1b90] sm:$0xff] }
 0x237   : > { %12472 = vmatpush1.bf16.xpose.msra.mxu1 %v12471_v15  ;;  %12474 = vmatprep.subr.bf16.mxu0 %v12473_v16  ;;  %v12503_v24 = vpack.c.bf16 %v1276_v12, %v1020_v10  ;;  %v2006_v10 = vrot.slane %v1992_v0, %v13692_v28  ;;  %v525_v0 = vld [vmem:[%s13655_s14 + $0x418] sm:$0xff] }
 0x238   : > { %12482 = vmatprep.subr.bf16.mxu1 %v12481_v17 }
 0x23d   : > { %6531 = vmatmul.mubr.f32.vlgmr.msra.gmra.mrb[52].mxu0 %v1931_v53  ;;  %v12489_v53 = vpack.c.bf16 %v763_v42, %v507_v41  ;;  %v12517_v42 = vpack.c.bf16 %v1281_v37, %v1025_v36 }
 0x23e   : > { %12476 = vmatpush1.bf16.xpose.msra.mxu0 %v12475_v30  ;;  %6601 = vmatmul.mubr.f32.vlgmr.msra.gmra.mrb[52].mxu1 %v1938_v56  ;;  %v506_v56 = vld [vmem:[%s13655_s14 + $0x380] sm:$0xff] }
 0x23f   : > { %12484 = vmatpush1.bf16.xpose.msra.mxu1 %v12483_v31  ;;  %12478 = vmatprep.subr.bf16.mxu0 %v12477_v32  ;;  %v12491_v2 = vpack.c.bf16 %v762_v57, %v506_v56  ;;  %v766_v30 = vld [vmem:[%s13655_s14 + $0xba0] sm:$0xff]  ;;  %v512_v31 = vld [vmem:[%s13655_s14 + $0x3b0] sm:$0xff]  ;;  %v773_v56 = vld [vmem:[%s13655_s14 + $0xbd8] sm:$0xff] }
 0x240   : > { %v4712_v39 = vpop.f32.mrb[26].mxu0  ;;  %12486 = vmatprep.subr.bf16.mxu1 %v12485_v33  ;;  %6670 = vmatprep.mubr.f32.mxu0 %v1956_v34  ;;  %v768_v32 = vld [vmem:[%s13655_s14 + $0xbb0] sm:$0xff]  ;;  %v1023_v33 = vld [vmem:[%s13655_s14 + $0x13a8] sm:$0xff]  ;;  %v12529_v63 = vpack.c.bf16 %v773_v56, %v517_v55  ;;  %v1286_v55 = vld [vmem:[%s13655_s14 + $0x1be0] sm:$0xff] }
 0x241   : > { %v4713_v43 = vadd.f32 %v4712_v39, %v4643_v14  ;;  %v4714_v44 = vpop.f32.mrb[27].mxu0  ;;  %v4782_v45 = vpop.f32.mrb[26].mxu1  ;;  %6740 = vmatprep.mubr.f32.mxu1 %v1957_v35  ;;  %v767_v14 = vld [vmem:[%s13655_s14 + $0xba8] sm:$0xff]  ;;  %v1982_v35 = vrot.slane %v359_v22, %v13692_v28  ;;  %v12515_v40 = vpack.c.bf16 %v768_v32, %v512_v31  ;;  %v361_v32 = vld [vmem:[%s13673_s17 + $0xf8] sm:$0xff] }
 0x242   : > { %v4784_v48 = vpop.f32.mrb[27].mxu1  ;;  %v1279_v34 = vld [vmem:[%s13655_s14 + $0x1ba8] sm:$0xff]  ;;  %v1991_v44 = vcombine.high %v1989_v38, %v1989_v38  ;;  %v2009_v37 = vcombine.high %v361_v32, %v361_v32  ;;  %v1032_v56 = vld [vmem:[%s13655_s14 + $0x13f0] sm:$0xff] }
 0x243   : > { %v4783_v51 = vadd.f32 %v4782_v45, %v4713_v43  ;;  %v12509_v41 = vpack.c.bf16 %v1279_v34, %v1023_v33  ;;  %v1990_v43 = vcombine.high %v1982_v35, %v1982_v35  ;;  %v1022_v45 = vld [vmem:[%s13655_s14 + $0x13a0] sm:$0xff]  ;;  %v519_v22 = vld [vmem:[%s13655_s14 + $0x3e8] sm:$0xff] }
 0x244   : > { %v12511_v58 = vpack.c.bf16 %v1278_v46, %v1022_v45  ;;  %v1033_v45 = vld [vmem:[%s13655_s14 + $0x13f8] sm:$0xff] }
 0x245   : > { %v1289_v46 = vld [vmem:[%s13655_s14 + $0x1bf8] sm:$0xff] }
 0x246   : > { %12480 = vmatpush1.bf16.xpose.msra.mxu0 %v12479_v49  ;;  %v1280_v49 = vld [vmem:[%s13655_s14 + $0x1bb0] sm:$0xff] }
 0x247   : > { %12488 = vmatpush1.bf16.xpose.msra.mxu1 %v12487_v52  ;;  %12490 = vmatprep.subr.bf16.mxu0 %v12489_v53  ;;  %v12519_v61 = vpack.c.bf16 %v1280_v49, %v1024_v47  ;;  %v2023_v47 = vrot.slane %v2009_v37, %v13692_v28  ;;  %v529_v37 = vld [vmem:[%s13655_s14 + $0x438] sm:$0xff] }
 0x248   : > { %12498 = vmatprep.subr.bf16.mxu1 %v12497_v54 }
 0x24d   : > { %6671 = vmatmul.mubr.f32.vlgmr.msra.gmra.mrb[54].mxu0 %v1948_v25  ;;  %v12505_v25 = vpack.c.bf16 %v767_v14, %v511_v13  ;;  %v12533_v14 = vpack.c.bf16 %v1285_v9, %v1029_v8 }
 0x24e   : > { %12492 = vmatpush1.bf16.xpose.msra.mxu0 %v12491_v2  ;;  %6741 = vmatmul.mubr.f32.vlgmr.msra.gmra.mrb[54].mxu1 %v1955_v29  ;;  %v510_v29 = vld [vmem:[%s13655_s14 + $0x3a0] sm:$0xff] }
 0x24f   : > { %12500 = vmatpush1.bf16.xpose.msra.mxu1 %v12499_v3  ;;  %12494 = vmatprep.subr.bf16.mxu0 %v12493_v4  ;;  %v12507_v39 = vpack.c.bf16 %v766_v30, %v510_v29  ;;  %v770_v2 = vld [vmem:[%s13655_s14 + $0xbc0] sm:$0xff]  ;;  %v516_v3 = vld [vmem:[%s13655_s14 + $0x3d0] sm:$0xff]  ;;  %v777_v29 = vld [vmem:[%s13655_s14 + $0xbf8] sm:$0xff] }
 0x250   : > { %v4852_v11 = vpop.f32.mrb[28].mxu0  ;;  %12502 = vmatprep.subr.bf16.mxu1 %v12501_v5  ;;  %6810 = vmatprep.mubr.f32.mxu0 %v1973_v6  ;;  %v772_v4 = vld [vmem:[%s13655_s14 + $0xbd0] sm:$0xff]  ;;  %v1027_v5 = vld [vmem:[%s13655_s14 + $0x13c8] sm:$0xff]  ;;  %v12545_v36 = vpack.c.bf16 %v777_v29, %v521_v27  ;;  %v1290_v27 = vld [vmem:[%s13655_s14 + $0x1c00] sm:$0xff] }
 0x251   : > { %v4853_v15 = vadd.f32 %v4852_v11, %v4783_v51  ;;  %v4854_v16 = vpop.f32.mrb[29].mxu0  ;;  %v4922_v17 = vpop.f32.mrb[28].mxu1  ;;  %6880 = vmatprep.mubr.f32.mxu1 %v1974_v7  ;;  %v771_v51 = vld [vmem:[%s13655_s14 + $0xbc8] sm:$0xff]  ;;  %v1999_v7 = vrot.slane %v360_v59, %v13692_v28  ;;  %v12531_v12 = vpack.c.bf16 %v772_v4, %v516_v3  ;;  %v362_v4 = vld [vmem:[%s13673_s17 + $0x100] sm:$0xff]  ;;  %v1036_v29 = vld [vmem:[%s13655_s14 + $0x1410] sm:$0xff] }
 0x252   : > { %v4924_v20 = vpop.f32.mrb[29].mxu1  ;;  %v1283_v6 = vld [vmem:[%s13655_s14 + $0x1bc8] sm:$0xff]  ;;  %v2008_v16 = vcombine.high %v2006_v10, %v2006_v10  ;;  %v2026_v9 = vcombine.high %v362_v4, %v362_v4 }
 0x253   : > { %v4923_v23 = vadd.f32 %v4922_v17, %v4853_v15  ;;  %v12525_v13 = vpack.c.bf16 %v1283_v6, %v1027_v5  ;;  %v2007_v15 = vcombine.high %v1999_v7, %v1999_v7  ;;  %v1026_v17 = vld [vmem:[%s13655_s14 + $0x13c0] sm:$0xff]  ;;  %v523_v59 = vld [vmem:[%s13655_s14 + $0x408] sm:$0xff] }
 0x254   : > { %v12527_v31 = vpack.c.bf16 %v1282_v18, %v1026_v17  ;;  %v1037_v17 = vld [vmem:[%s13655_s14 + $0x1418] sm:$0xff] }
 0x255   : > { %v1293_v18 = vld [vmem:[%s13655_s14 + $0x1c18] sm:$0xff] }
 0x256   : > { %12496 = vmatpush1.bf16.xpose.msra.mxu0 %v12495_v21  ;;  %v1284_v21 = vld [vmem:[%s13655_s14 + $0x1bd0] sm:$0xff] }
 0x257   : > { %12504 = vmatpush1.bf16.xpose.msra.mxu1 %v12503_v24  ;;  %12506 = vmatprep.subr.bf16.mxu0 %v12505_v25  ;;  %v12535_v34 = vpack.c.bf16 %v1284_v21, %v1028_v19  ;;  %v2040_v19 = vrot.slane %v2026_v9, %v13692_v28  ;;  %v533_v9 = vld [vmem:[%s13655_s14 + $0x458] sm:$0xff] }
 0x258   : > { %12514 = vmatprep.subr.bf16.mxu1 %v12513_v26 }
 0x25d   : > { %6811 = vmatmul.mubr.f32.vlgmr.msra.gmra.mrb[56].mxu0 %v1965_v62  ;;  %v12521_v62 = vpack.c.bf16 %v771_v51, %v515_v50  ;;  %v12549_v51 = vpack.c.bf16 %v1289_v46, %v1033_v45 }
 0x25e   : > { %12508 = vmatpush1.bf16.xpose.msra.mxu0 %v12507_v39  ;;  %6881 = vmatmul.mubr.f32.vlgmr.msra.gmra.mrb[56].mxu1 %v1972_v1  ;;  %v514_v1 = vld [vmem:[%s13655_s14 + $0x3c0] sm:$0xff] }
 0x25f   : > { %12516 = vmatpush1.bf16.xpose.msra.mxu1 %v12515_v40  ;;  %12510 = vmatprep.subr.bf16.mxu0 %v12509_v41  ;;  %v12523_v11 = vpack.c.bf16 %v770_v2, %v514_v1  ;;  %v774_v39 = vld [vmem:[%s13655_s14 + $0xbe0] sm:$0xff]  ;;  %v520_v40 = vld [vmem:[%s13655_s14 + $0x3f0] sm:$0xff]  ;;  %v781_v1 = vld [vmem:[%s13655_s14 + $0xc18] sm:$0xff] }
 0x260   : > { %v4992_v48 = vpop.f32.mrb[30].mxu0  ;;  %12518 = vmatprep.subr.bf16.mxu1 %v12517_v42  ;;  %6950 = vmatprep.mubr.f32.mxu0 %v1990_v43  ;;  %v776_v41 = vld [vmem:[%s13655_s14 + $0xbf0] sm:$0xff]  ;;  %v1031_v42 = vld [vmem:[%s13655_s14 + $0x13e8] sm:$0xff]  ;;  %v12561_v8 = vpack.c.bf16 %v781_v1, %v525_v0  ;;  %v1294_v0 = vld [vmem:[%s13655_s14 + $0x1c20] sm:$0xff] }
 0x261   : > { %v4993_v52 = vadd.f32 %v4992_v48, %v4923_v23  ;;  %v4994_v53 = vpop.f32.mrb[31].mxu0  ;;  %v5062_v54 = vpop.f32.mrb[30].mxu1  ;;  %7020 = vmatprep.mubr.f32.mxu1 %v1991_v44  ;;  %v775_v23 = vld [vmem:[%s13655_s14 + $0xbe8] sm:$0xff]  ;;  %v2016_v44 = vrot.slane %v361_v32, %v13692_v28  ;;  %v12547_v49 = vpack.c.bf16 %v776_v41, %v520_v40  ;;  %v1040_v1 = vld [vmem:[%s13655_s14 + $0x1430] sm:$0xff] }
 0x262   : > { %v5064_v57 = vpop.f32.mrb[31].mxu1  ;;  %v1287_v43 = vld [vmem:[%s13655_s14 + $0x1be8] sm:$0xff]  ;;  %v2025_v53 = vcombine.high %v2023_v47, %v2023_v47 }
 0x263   : > { %v5063_v60 = vadd.f32 %v5062_v54, %v4993_v52  ;;  %v12541_v50 = vpack.c.bf16 %v1287_v43, %v1031_v42  ;;  %v2024_v52 = vcombine.high %v2016_v44, %v2016_v44  ;;  %v1030_v54 = vld [vmem:[%s13655_s14 + $0x13e0] sm:$0xff]  ;;  %v527_v32 = vld [vmem:[%s13655_s14 + $0x428] sm:$0xff] }
 0x264   : > { %v12543_v3 = vpack.c.bf16 %v1286_v55, %v1030_v54  ;;  %v363_v41 = vld [vmem:[%s13673_s17 + $0x108] sm:$0xff]  ;;  %v1041_v54 = vld [vmem:[%s13655_s14 + $0x1438] sm:$0xff] }
 0x265   : > { %v2043_v46 = vcombine.high %v363_v41, %v363_v41  ;;  %v1297_v55 = vld [vmem:[%s13655_s14 + $0x1c38] sm:$0xff] }
 0x266   : > { %12512 = vmatpush1.bf16.xpose.msra.mxu0 %v12511_v58  ;;  %v1288_v58 = vld [vmem:[%s13655_s14 + $0x1bf0] sm:$0xff] }
 0x267   : > { %12520 = vmatpush1.bf16.xpose.msra.mxu1 %v12519_v61  ;;  %12522 = vmatprep.subr.bf16.mxu0 %v12521_v62  ;;  %v12551_v6 = vpack.c.bf16 %v1288_v58, %v1032_v56  ;;  %v2057_v56 = vrot.slane %v2043_v46, %v13692_v28  ;;  %v537_v46 = vld [vmem:[%s13655_s14 + $0x478] sm:$0xff] }
 0x268   : > { %12530 = vmatprep.subr.bf16.mxu1 %v12529_v63 }
 0x26d   : > { %6951 = vmatmul.mubr.f32.vlgmr.msra.gmra.mrb[58].mxu0 %v1982_v35  ;;  %v12537_v35 = vpack.c.bf16 %v775_v23, %v519_v22  ;;  %v12565_v23 = vpack.c.bf16 %v1293_v18, %v1037_v17 }
 0x26e   : > { %12524 = vmatpush1.bf16.xpose.msra.mxu0 %v12523_v11  ;;  %7021 = vmatmul.mubr.f32.vlgmr.msra.gmra.mrb[58].mxu1 %v1989_v38  ;;  %v518_v38 = vld [vmem:[%s13655_s14 + $0x3e0] sm:$0xff] }
 0x26f   : > { %12532 = vmatpush1.bf16.xpose.msra.mxu1 %v12531_v12  ;;  %12526 = vmatprep.subr.bf16.mxu0 %v12525_v13  ;;  %v12539_v48 = vpack.c.bf16 %v774_v39, %v518_v38  ;;  %v778_v11 = vld [vmem:[%s13655_s14 + $0xc00] sm:$0xff]  ;;  %v524_v12 = vld [vmem:[%s13655_s14 + $0x410] sm:$0xff]  ;;  %v785_v38 = vld [vmem:[%s13655_s14 + $0xc38] sm:$0xff] }
 0x270   : > { %v5132_v20 = vpop.f32.mrb[32].mxu0  ;;  %12534 = vmatprep.subr.bf16.mxu1 %v12533_v14  ;;  %7090 = vmatprep.mubr.f32.mxu0 %v2007_v15  ;;  %v780_v13 = vld [vmem:[%s13655_s14 + $0xc10] sm:$0xff]  ;;  %v1035_v14 = vld [vmem:[%s13655_s14 + $0x1408] sm:$0xff]  ;;  %v12577_v45 = vpack.c.bf16 %v785_v38, %v529_v37  ;;  %v1298_v37 = vld [vmem:[%s13655_s14 + $0x1c40] sm:$0xff] }
 0x271   : > { %v5133_v24 = vadd.f32 %v5132_v20, %v5063_v60  ;;  %v5134_v25 = vpop.f32.mrb[33].mxu0  ;;  %v5202_v26 = vpop.f32.mrb[32].mxu1  ;;  %7160 = vmatprep.mubr.f32.mxu1 %v2008_v16  ;;  %v779_v60 = vld [vmem:[%s13655_s14 + $0xc08] sm:$0xff]  ;;  %v2033_v16 = vrot.slane %v362_v4, %v13692_v28  ;;  %v12563_v21 = vpack.c.bf16 %v780_v13, %v524_v12  ;;  %v1044_v38 = vld [vmem:[%s13655_s14 + $0x1450] sm:$0xff] }
 0x272   : > { %v5204_v30 = vpop.f32.mrb[33].mxu1  ;;  %v1291_v15 = vld [vmem:[%s13655_s14 + $0x1c08] sm:$0xff]  ;;  %v2042_v25 = vcombine.high %v2040_v19, %v2040_v19 }
 0x273   : > { %v5203_v33 = vadd.f32 %v5202_v26, %v5133_v24  ;;  %v12557_v22 = vpack.c.bf16 %v1291_v15, %v1035_v14  ;;  %v2041_v24 = vcombine.high %v2033_v16, %v2033_v16  ;;  %v1034_v26 = vld [vmem:[%s13655_s14 + $0x1400] sm:$0xff]  ;;  %v531_v4 = vld [vmem:[%s13655_s14 + $0x448] sm:$0xff] }
 0x274   : > { %v12559_v40 = vpack.c.bf16 %v1290_v27, %v1034_v26  ;;  %v364_v13 = vld [vmem:[%s13673_s17 + $0x110] sm:$0xff]  ;;  %v1045_v26 = vld [vmem:[%s13655_s14 + $0x1458] sm:$0xff] }
 0x275   : > { %v2060_v18 = vcombine.high %v364_v13, %v364_v13  ;;  %v1301_v27 = vld [vmem:[%s13655_s14 + $0x1c58] sm:$0xff] }
 0x276   : > { %12528 = vmatpush1.bf16.xpose.msra.mxu0 %v12527_v31  ;;  %v1292_v31 = vld [vmem:[%s13655_s14 + $0x1c10] sm:$0xff] }
 0x277   : > { %12536 = vmatpush1.bf16.xpose.msra.mxu1 %v12535_v34  ;;  %12538 = vmatprep.subr.bf16.mxu0 %v12537_v35  ;;  %v12567_v43 = vpack.c.bf16 %v1292_v31, %v1036_v29  ;;  %v2074_v29 = vrot.slane %v2060_v18, %v13692_v28  ;;  %v541_v18 = vld [vmem:[%s13655_s14 + $0x498] sm:$0xff] }
 0x278   : > { %12546 = vmatprep.subr.bf16.mxu1 %v12545_v36 }
 0x27d   : > { %7091 = vmatmul.mubr.f32.vlgmr.msra.gmra.mrb[60].mxu0 %v1999_v7  ;;  %v12553_v7 = vpack.c.bf16 %v779_v60, %v523_v59  ;;  %v12581_v60 = vpack.c.bf16 %v1297_v55, %v1041_v54 }
 0x27e   : > { %12540 = vmatpush1.bf16.xpose.msra.mxu0 %v12539_v48  ;;  %7161 = vmatmul.mubr.f32.vlgmr.msra.gmra.mrb[60].mxu1 %v2006_v10  ;;  %v522_v10 = vld [vmem:[%s13655_s14 + $0x400] sm:$0xff] }
 0x27f   : > { %12548 = vmatpush1.bf16.xpose.msra.mxu1 %v12547_v49  ;;  %12542 = vmatprep.subr.bf16.mxu0 %v12541_v50  ;;  %v12555_v20 = vpack.c.bf16 %v778_v11, %v522_v10  ;;  %v782_v48 = vld [vmem:[%s13655_s14 + $0xc20] sm:$0xff]  ;;  %v528_v49 = vld [vmem:[%s13655_s14 + $0x430] sm:$0xff]  ;;  %v789_v10 = vld [vmem:[%s13655_s14 + $0xc58] sm:$0xff] }
 0x280   : > { %v5272_v57 = vpop.f32.mrb[34].mxu0  ;;  %12550 = vmatprep.subr.bf16.mxu1 %v12549_v51  ;;  %7230 = vmatprep.mubr.f32.mxu0 %v2024_v52  ;;  %v784_v50 = vld [vmem:[%s13655_s14 + $0xc30] sm:$0xff]  ;;  %v1039_v51 = vld [vmem:[%s13655_s14 + $0x1428] sm:$0xff]  ;;  %v12593_v17 = vpack.c.bf16 %v789_v10, %v533_v9  ;;  %v1302_v9 = vld [vmem:[%s13655_s14 + $0x1c60] sm:$0xff] }
 0x281   : > { %v5273_v61 = vadd.f32 %v5272_v57, %v5203_v33  ;;  %v5274_v62 = vpop.f32.mrb[35].mxu0  ;;  %v5342_v63 = vpop.f32.mrb[34].mxu1  ;;  %7300 = vmatprep.mubr.f32.mxu1 %v2025_v53  ;;  %v783_v33 = vld [vmem:[%s13655_s14 + $0xc28] sm:$0xff]  ;;  %v2050_v53 = vrot.slane %v363_v41, %v13692_v28  ;;  %v12579_v58 = vpack.c.bf16 %v784_v50, %v528_v49  ;;  %v365_v50 = vld [vmem:[%s13673_s17 + $0x118] sm:$0xff] }
 0x282   : > { %v5344_v2 = vpop.f32.mrb[35].mxu1  ;;  %v1295_v52 = vld [vmem:[%s13655_s14 + $0x1c28] sm:$0xff]  ;;  %v2059_v62 = vcombine.high %v2057_v56, %v2057_v56  ;;  %v2077_v55 = vcombine.high %v365_v50, %v365_v50  ;;  %v1048_v10 = vld [vmem:[%s13655_s14 + $0x1470] sm:$0xff] }
 0x283   : > { %v5343_v5 = vadd.f32 %v5342_v63, %v5273_v61  ;;  %v12573_v59 = vpack.c.bf16 %v1295_v52, %v1039_v51  ;;  %v2058_v61 = vcombine.high %v2050_v53, %v2050_v53  ;;  %v1038_v63 = vld [vmem:[%s13655_s14 + $0x1420] sm:$0xff]  ;;  %v535_v41 = vld [vmem:[%s13655_s14 + $0x468] sm:$0xff] }
 0x284   : > { %v12575_v12 = vpack.c.bf16 %v1294_v0, %v1038_v63  ;;  %v1049_v63 = vld [vmem:[%s13655_s14 + $0x1478] sm:$0xff] }
 0x285   : > { %v1305_v0 = vld [vmem:[%s13655_s14 + $0x1c78] sm:$0xff] }
 0x286   : > { %12544 = vmatpush1.bf16.xpose.msra.mxu0 %v12543_v3  ;;  %v1296_v3 = vld [vmem:[%s13655_s14 + $0x1c30] sm:$0xff] }
 0x287   : > { %12552 = vmatpush1.bf16.xpose.msra.mxu1 %v12551_v6  ;;  %12554 = vmatprep.subr.bf16.mxu0 %v12553_v7  ;;  %v12583_v15 = vpack.c.bf16 %v1296_v3, %v1040_v1  ;;  %v2091_v1 = vrot.slane %v2077_v55, %v13692_v28  ;;  %v545_v55 = vld [vmem:[%s13655_s14 + $0x4b8] sm:$0xff] }
 0x288   : > { %12562 = vmatprep.subr.bf16.mxu1 %v12561_v8 }
 0x28d   : > { %7231 = vmatmul.mubr.f32.vlgmr.msra.gmra.mrb[62].mxu0 %v2016_v44  ;;  %v12569_v44 = vpack.c.bf16 %v783_v33, %v527_v32  ;;  %v12597_v33 = vpack.c.bf16 %v1301_v27, %v1045_v26 }
 0x28e   : > { %12556 = vmatpush1.bf16.xpose.msra.mxu0 %v12555_v20  ;;  %7301 = vmatmul.mubr.f32.vlgmr.msra.gmra.mrb[62].mxu1 %v2023_v47  ;;  %v526_v47 = vld [vmem:[%s13655_s14 + $0x420] sm:$0xff] }
 0x28f   : > { %12564 = vmatpush1.bf16.xpose.msra.mxu1 %v12563_v21  ;;  %12558 = vmatprep.subr.bf16.mxu0 %v12557_v22  ;;  %v12571_v57 = vpack.c.bf16 %v782_v48, %v526_v47  ;;  %v786_v20 = vld [vmem:[%s13655_s14 + $0xc40] sm:$0xff]  ;;  %v532_v21 = vld [vmem:[%s13655_s14 + $0x450] sm:$0xff]  ;;  %v793_v47 = vld [vmem:[%s13655_s14 + $0xc78] sm:$0xff] }
 0x290   : > { %v5412_v30 = vpop.f32.mrb[36].mxu0  ;;  %12566 = vmatprep.subr.bf16.mxu1 %v12565_v23  ;;  %7370 = vmatprep.mubr.f32.mxu0 %v2041_v24  ;;  %v788_v22 = vld [vmem:[%s13655_s14 + $0xc50] sm:$0xff]  ;;  %v1043_v23 = vld [vmem:[%s13655_s14 + $0x1448] sm:$0xff]  ;;  %v12609_v54 = vpack.c.bf16 %v793_v47, %v537_v46  ;;  %v1306_v46 = vld [vmem:[%s13655_s14 + $0x1c80] sm:$0xff] }
 0x291   : > { %v5413_v34 = vadd.f32 %v5412_v30, %v5343_v5  ;;  %v5414_v35 = vpop.f32.mrb[37].mxu0  ;;  %v5482_v36 = vpop.f32.mrb[36].mxu1  ;;  %7440 = vmatprep.mubr.f32.mxu1 %v2042_v25  ;;  %v787_v5 = vld [vmem:[%s13655_s14 + $0xc48] sm:$0xff]  ;;  %v2067_v25 = vrot.slane %v364_v13, %v13692_v28  ;;  %v12595_v31 = vpack.c.bf16 %v788_v22, %v532_v21  ;;  %v366_v22 = vld [vmem:[%s13673_s17 + $0x120] sm:$0xff]  ;;  %v1052_v47 = vld [vmem:[%s13655_s14 + $0x1490] sm:$0xff] }
 0x292   : > { %v5484_v39 = vpop.f32.mrb[37].mxu1  ;;  %v1299_v24 = vld [vmem:[%s13655_s14 + $0x1c48] sm:$0xff]  ;;  %v2076_v35 = vcombine.high %v2074_v29, %v2074_v29  ;;  %v2094_v27 = vcombine.high %v366_v22, %v366_v22 }
 0x293   : > { %v5483_v42 = vadd.f32 %v5482_v36, %v5413_v34  ;;  %v12589_v32 = vpack.c.bf16 %v1299_v24, %v1043_v23  ;;  %v2075_v34 = vcombine.high %v2067_v25, %v2067_v25  ;;  %v1042_v36 = vld [vmem:[%s13655_s14 + $0x1440] sm:$0xff]  ;;  %v539_v13 = vld [vmem:[%s13655_s14 + $0x488] sm:$0xff] }
 0x294   : > { %v12591_v49 = vpack.c.bf16 %v1298_v37, %v1042_v36  ;;  %v1053_v36 = vld [vmem:[%s13655_s14 + $0x1498] sm:$0xff] }
 0x295   : > { %v1309_v37 = vld [vmem:[%s13655_s14 + $0x1c98] sm:$0xff] }
 0x296   : > { %12560 = vmatpush1.bf16.xpose.msra.mxu0 %v12559_v40  ;;  %v1300_v40 = vld [vmem:[%s13655_s14 + $0x1c50] sm:$0xff] }
 0x297   : > { %12568 = vmatpush1.bf16.xpose.msra.mxu1 %v12567_v43  ;;  %12570 = vmatprep.subr.bf16.mxu0 %v12569_v44  ;;  %v12599_v52 = vpack.c.bf16 %v1300_v40, %v1044_v38  ;;  %v2108_v38 = vrot.slane %v2094_v27, %v13692_v28  ;;  %v549_v27 = vld [vmem:[%s13655_s14 + $0x4d8] sm:$0xff] }
 0x298   : > { %12578 = vmatprep.subr.bf16.mxu1 %v12577_v45 }
 0x29d   : > { %7371 = vmatmul.mubr.f32.vlgmr.msra.gmra.mrb[64].mxu0 %v2033_v16  ;;  %v12585_v16 = vpack.c.bf16 %v787_v5, %v531_v4  ;;  %v12613_v5 = vpack.c.bf16 %v1305_v0, %v1049_v63 }
 0x29e   : > { %12572 = vmatpush1.bf16.xpose.msra.mxu0 %v12571_v57  ;;  %7441 = vmatmul.mubr.f32.vlgmr.msra.gmra.mrb[64].mxu1 %v2040_v19  ;;  %v530_v19 = vld [vmem:[%s13655_s14 + $0x440] sm:$0xff] }
 0x29f   : > { %12580 = vmatpush1.bf16.xpose.msra.mxu1 %v12579_v58  ;;  %12574 = vmatprep.subr.bf16.mxu0 %v12573_v59  ;;  %v12587_v30 = vpack.c.bf16 %v786_v20, %v530_v19  ;;  %v790_v57 = vld [vmem:[%s13655_s14 + $0xc60] sm:$0xff]  ;;  %v536_v58 = vld [vmem:[%s13655_s14 + $0x470] sm:$0xff]  ;;  %v797_v19 = vld [vmem:[%s13655_s14 + $0xc98] sm:$0xff] }
 0x2a0   : > { %v5552_v2 = vpop.f32.mrb[38].mxu0  ;;  %12582 = vmatprep.subr.bf16.mxu1 %v12581_v60  ;;  %7510 = vmatprep.mubr.f32.mxu0 %v2058_v61  ;;  %v792_v59 = vld [vmem:[%s13655_s14 + $0xc70] sm:$0xff]  ;;  %v1047_v60 = vld [vmem:[%s13655_s14 + $0x1468] sm:$0xff]  ;;  %v12625_v26 = vpack.c.bf16 %v797_v19, %v541_v18  ;;  %v1310_v18 = vld [vmem:[%s13655_s14 + $0x1ca0] sm:$0xff] }
 0x2a1   : > { %v5553_v6 = vadd.f32 %v5552_v2, %v5483_v42  ;;  %v5554_v7 = vpop.f32.mrb[39].mxu0  ;;  %v5622_v8 = vpop.f32.mrb[38].mxu1  ;;  %7580 = vmatprep.mubr.f32.mxu1 %v2059_v62  ;;  %v791_v42 = vld [vmem:[%s13655_s14 + $0xc68] sm:$0xff]  ;;  %v2084_v62 = vrot.slane %v365_v50, %v13692_v28  ;;  %v12611_v3 = vpack.c.bf16 %v792_v59, %v536_v58  ;;  %v1056_v19 = vld [vmem:[%s13655_s14 + $0x14b0] sm:$0xff] }
 0x2a2   : > { %v5624_v11 = vpop.f32.mrb[39].mxu1  ;;  %v1303_v61 = vld [vmem:[%s13655_s14 + $0x1c68] sm:$0xff]  ;;  %v2093_v7 = vcombine.high %v2091_v1, %v2091_v1 }
 0x2a3   : > { %v5623_v14 = vadd.f32 %v5622_v8, %v5553_v6  ;;  %v12605_v4 = vpack.c.bf16 %v1303_v61, %v1047_v60  ;;  %v2092_v6 = vcombine.high %v2084_v62, %v2084_v62  ;;  %v1046_v8 = vld [vmem:[%s13655_s14 + $0x1460] sm:$0xff]  ;;  %v543_v50 = vld [vmem:[%s13655_s14 + $0x4a8] sm:$0xff] }
 0x2a4   : > { %v12607_v21 = vpack.c.bf16 %v1302_v9, %v1046_v8  ;;  %v367_v59 = vld [vmem:[%s13673_s17 + $0x128] sm:$0xff]  ;;  %v1057_v8 = vld [vmem:[%s13655_s14 + $0x14b8] sm:$0xff] }
 0x2a5   : > { %v2111_v0 = vcombine.high %v367_v59, %v367_v59  ;;  %v1313_v9 = vld [vmem:[%s13655_s14 + $0x1cb8] sm:$0xff] }
 0x2a6   : > { %12576 = vmatpush1.bf16.xpose.msra.mxu0 %v12575_v12  ;;  %v1304_v12 = vld [vmem:[%s13655_s14 + $0x1c70] sm:$0xff] }
 0x2a7   : > { %12584 = vmatpush1.bf16.xpose.msra.mxu1 %v12583_v15  ;;  %12586 = vmatprep.subr.bf16.mxu0 %v12585_v16  ;;  %v12615_v24 = vpack.c.bf16 %v1304_v12, %v1048_v10  ;;  %v2125_v10 = vrot.slane %v2111_v0, %v13692_v28  ;;  %v553_v0 = vld [vmem:[%s13655_s14 + $0x4f8] sm:$0xff] }
 0x2a8   : > { %12594 = vmatprep.subr.bf16.mxu1 %v12593_v17 }
 0x2ad   : > { %7511 = vmatmul.mubr.f32.vlgmr.msra.gmra.mrb[66].mxu0 %v2050_v53  ;;  %v12601_v53 = vpack.c.bf16 %v791_v42, %v535_v41  ;;  %v12629_v42 = vpack.c.bf16 %v1309_v37, %v1053_v36 }
 0x2ae   : > { %12588 = vmatpush1.bf16.xpose.msra.mxu0 %v12587_v30  ;;  %7581 = vmatmul.mubr.f32.vlgmr.msra.gmra.mrb[66].mxu1 %v2057_v56  ;;  %v534_v56 = vld [vmem:[%s13655_s14 + $0x460] sm:$0xff] }
 0x2af   : > { %12596 = vmatpush1.bf16.xpose.msra.mxu1 %v12595_v31  ;;  %12590 = vmatprep.subr.bf16.mxu0 %v12589_v32  ;;  %v12603_v2 = vpack.c.bf16 %v790_v57, %v534_v56  ;;  %v794_v30 = vld [vmem:[%s13655_s14 + $0xc80] sm:$0xff]  ;;  %v540_v31 = vld [vmem:[%s13655_s14 + $0x490] sm:$0xff]  ;;  %v801_v56 = vld [vmem:[%s13655_s14 + $0xcb8] sm:$0xff] }
 0x2b0   : > { %v5692_v39 = vpop.f32.mrb[40].mxu0  ;;  %12598 = vmatprep.subr.bf16.mxu1 %v12597_v33  ;;  %7650 = vmatprep.mubr.f32.mxu0 %v2075_v34  ;;  %v796_v32 = vld [vmem:[%s13655_s14 + $0xc90] sm:$0xff]  ;;  %v1051_v33 = vld [vmem:[%s13655_s14 + $0x1488] sm:$0xff]  ;;  %v12641_v63 = vpack.c.bf16 %v801_v56, %v545_v55  ;;  %v1314_v55 = vld [vmem:[%s13655_s14 + $0x1cc0] sm:$0xff] }
 0x2b1   : > { %v5693_v43 = vadd.f32 %v5692_v39, %v5623_v14  ;;  %v5694_v44 = vpop.f32.mrb[41].mxu0  ;;  %v5762_v45 = vpop.f32.mrb[40].mxu1  ;;  %7720 = vmatprep.mubr.f32.mxu1 %v2076_v35  ;;  %v795_v14 = vld [vmem:[%s13655_s14 + $0xc88] sm:$0xff]  ;;  %v2101_v35 = vrot.slane %v366_v22, %v13692_v28  ;;  %v12627_v40 = vpack.c.bf16 %v796_v32, %v540_v31  ;;  %v1060_v56 = vld [vmem:[%s13655_s14 + $0x14d0] sm:$0xff] }
 0x2b2   : > { %v5764_v48 = vpop.f32.mrb[41].mxu1  ;;  %v1307_v34 = vld [vmem:[%s13655_s14 + $0x1c88] sm:$0xff]  ;;  %v2110_v44 = vcombine.high %v2108_v38, %v2108_v38 }
 0x2b3   : > { %v5763_v51 = vadd.f32 %v5762_v45, %v5693_v43  ;;  %v12621_v41 = vpack.c.bf16 %v1307_v34, %v1051_v33  ;;  %v2109_v43 = vcombine.high %v2101_v35, %v2101_v35  ;;  %v1050_v45 = vld [vmem:[%s13655_s14 + $0x1480] sm:$0xff]  ;;  %v547_v22 = vld [vmem:[%s13655_s14 + $0x4c8] sm:$0xff] }
 0x2b4   : > { %v12623_v58 = vpack.c.bf16 %v1306_v46, %v1050_v45  ;;  %v368_v32 = vld [vmem:[%s13673_s17 + $0x130] sm:$0xff]  ;;  %v1061_v45 = vld [vmem:[%s13655_s14 + $0x14d8] sm:$0xff] }
 0x2b5   : > { %v2128_v37 = vcombine.high %v368_v32, %v368_v32  ;;  %v1317_v46 = vld [vmem:[%s13655_s14 + $0x1cd8] sm:$0xff] }
 0x2b6   : > { %12592 = vmatpush1.bf16.xpose.msra.mxu0 %v12591_v49  ;;  %v1308_v49 = vld [vmem:[%s13655_s14 + $0x1c90] sm:$0xff] }
 0x2b7   : > { %12600 = vmatpush1.bf16.xpose.msra.mxu1 %v12599_v52  ;;  %12602 = vmatprep.subr.bf16.mxu0 %v12601_v53  ;;  %v12631_v61 = vpack.c.bf16 %v1308_v49, %v1052_v47  ;;  %v2142_v47 = vrot.slane %v2128_v37, %v13692_v28  ;;  %v557_v37 = vld [vmem:[%s13655_s14 + $0x518] sm:$0xff] }
 0x2b8   : > { %12610 = vmatprep.subr.bf16.mxu1 %v12609_v54 }
 0x2bd   : > { %7651 = vmatmul.mubr.f32.vlgmr.msra.gmra.mrb[68].mxu0 %v2067_v25  ;;  %v12617_v25 = vpack.c.bf16 %v795_v14, %v539_v13  ;;  %v12645_v14 = vpack.c.bf16 %v1313_v9, %v1057_v8 }
 0x2be   : > { %12604 = vmatpush1.bf16.xpose.msra.mxu0 %v12603_v2  ;;  %7721 = vmatmul.mubr.f32.vlgmr.msra.gmra.mrb[68].mxu1 %v2074_v29  ;;  %v538_v29 = vld [vmem:[%s13655_s14 + $0x480] sm:$0xff] }
 0x2bf   : > { %12612 = vmatpush1.bf16.xpose.msra.mxu1 %v12611_v3  ;;  %12606 = vmatprep.subr.bf16.mxu0 %v12605_v4  ;;  %v12619_v39 = vpack.c.bf16 %v794_v30, %v538_v29  ;;  %v798_v2 = vld [vmem:[%s13655_s14 + $0xca0] sm:$0xff]  ;;  %v544_v3 = vld [vmem:[%s13655_s14 + $0x4b0] sm:$0xff]  ;;  %v805_v29 = vld [vmem:[%s13655_s14 + $0xcd8] sm:$0xff] }
 0x2c0   : > { %v5832_v11 = vpop.f32.mrb[42].mxu0  ;;  %12614 = vmatprep.subr.bf16.mxu1 %v12613_v5  ;;  %7790 = vmatprep.mubr.f32.mxu0 %v2092_v6  ;;  %v800_v4 = vld [vmem:[%s13655_s14 + $0xcb0] sm:$0xff]  ;;  %v1055_v5 = vld [vmem:[%s13655_s14 + $0x14a8] sm:$0xff]  ;;  %v12657_v36 = vpack.c.bf16 %v805_v29, %v549_v27  ;;  %v1318_v27 = vld [vmem:[%s13655_s14 + $0x1ce0] sm:$0xff] }
 0x2c1   : > { %v5833_v15 = vadd.f32 %v5832_v11, %v5763_v51  ;;  %v5834_v16 = vpop.f32.mrb[43].mxu0  ;;  %v5902_v17 = vpop.f32.mrb[42].mxu1  ;;  %7860 = vmatprep.mubr.f32.mxu1 %v2093_v7  ;;  %v799_v51 = vld [vmem:[%s13655_s14 + $0xca8] sm:$0xff]  ;;  %v2118_v7 = vrot.slane %v367_v59, %v13692_v28  ;;  %v12643_v12 = vpack.c.bf16 %v800_v4, %v544_v3  ;;  %v369_v4 = vld [vmem:[%s13673_s17 + $0x138] sm:$0xff] }
 0x2c2   : > { %v5904_v20 = vpop.f32.mrb[43].mxu1  ;;  %v1311_v6 = vld [vmem:[%s13655_s14 + $0x1ca8] sm:$0xff]  ;;  %v2127_v16 = vcombine.high %v2125_v10, %v2125_v10  ;;  %v2145_v9 = vcombine.high %v369_v4, %v369_v4  ;;  %v1064_v29 = vld [vmem:[%s13655_s14 + $0x14f0] sm:$0xff] }
 0x2c3   : > { %v5903_v23 = vadd.f32 %v5902_v17, %v5833_v15  ;;  %v12637_v13 = vpack.c.bf16 %v1311_v6, %v1055_v5  ;;  %v2126_v15 = vcombine.high %v2118_v7, %v2118_v7  ;;  %v1054_v17 = vld [vmem:[%s13655_s14 + $0x14a0] sm:$0xff]  ;;  %v551_v59 = vld [vmem:[%s13655_s14 + $0x4e8] sm:$0xff] }
 0x2c4   : > { %v12639_v31 = vpack.c.bf16 %v1310_v18, %v1054_v17  ;;  %v1065_v17 = vld [vmem:[%s13655_s14 + $0x14f8] sm:$0xff] }
 0x2c5   : > { %v1321_v18 = vld [vmem:[%s13655_s14 + $0x1cf8] sm:$0xff] }
 0x2c6   : > { %12608 = vmatpush1.bf16.xpose.msra.mxu0 %v12607_v21  ;;  %v1312_v21 = vld [vmem:[%s13655_s14 + $0x1cb0] sm:$0xff] }
 0x2c7   : > { %12616 = vmatpush1.bf16.xpose.msra.mxu1 %v12615_v24  ;;  %12618 = vmatprep.subr.bf16.mxu0 %v12617_v25  ;;  %v12647_v34 = vpack.c.bf16 %v1312_v21, %v1056_v19  ;;  %v2159_v19 = vrot.slane %v2145_v9, %v13692_v28  ;;  %v561_v9 = vld [vmem:[%s13655_s14 + $0x538] sm:$0xff] }
 0x2c8   : > { %12626 = vmatprep.subr.bf16.mxu1 %v12625_v26 }
 0x2cd   : > { %7791 = vmatmul.mubr.f32.vlgmr.msra.gmra.mrb[70].mxu0 %v2084_v62  ;;  %v12633_v62 = vpack.c.bf16 %v799_v51, %v543_v50  ;;  %v12661_v51 = vpack.c.bf16 %v1317_v46, %v1061_v45 }
 0x2ce   : > { %12620 = vmatpush1.bf16.xpose.msra.mxu0 %v12619_v39  ;;  %7861 = vmatmul.mubr.f32.vlgmr.msra.gmra.mrb[70].mxu1 %v2091_v1  ;;  %v542_v1 = vld [vmem:[%s13655_s14 + $0x4a0] sm:$0xff] }
 0x2cf   : > { %12628 = vmatpush1.bf16.xpose.msra.mxu1 %v12627_v40  ;;  %12622 = vmatprep.subr.bf16.mxu0 %v12621_v41  ;;  %v12635_v11 = vpack.c.bf16 %v798_v2, %v542_v1  ;;  %v802_v39 = vld [vmem:[%s13655_s14 + $0xcc0] sm:$0xff]  ;;  %v548_v40 = vld [vmem:[%s13655_s14 + $0x4d0] sm:$0xff]  ;;  %v809_v1 = vld [vmem:[%s13655_s14 + $0xcf8] sm:$0xff] }
 0x2d0   : > { %v5972_v48 = vpop.f32.mrb[44].mxu0  ;;  %12630 = vmatprep.subr.bf16.mxu1 %v12629_v42  ;;  %7930 = vmatprep.mubr.f32.mxu0 %v2109_v43  ;;  %v804_v41 = vld [vmem:[%s13655_s14 + $0xcd0] sm:$0xff]  ;;  %v1059_v42 = vld [vmem:[%s13655_s14 + $0x14c8] sm:$0xff]  ;;  %v12673_v8 = vpack.c.bf16 %v809_v1, %v553_v0  ;;  %v1322_v0 = vld [vmem:[%s13655_s14 + $0x1d00] sm:$0xff] }
 0x2d1   : > { %v5973_v52 = vadd.f32 %v5972_v48, %v5903_v23  ;;  %v5974_v53 = vpop.f32.mrb[45].mxu0  ;;  %v6042_v54 = vpop.f32.mrb[44].mxu1  ;;  %8000 = vmatprep.mubr.f32.mxu1 %v2110_v44  ;;  %v803_v23 = vld [vmem:[%s13655_s14 + $0xcc8] sm:$0xff]  ;;  %v2135_v44 = vrot.slane %v368_v32, %v13692_v28  ;;  %v12659_v49 = vpack.c.bf16 %v804_v41, %v548_v40  ;;  %v370_v41 = vld [vmem:[%s13673_s17 + $0x140] sm:$0xff]  ;;  %v1068_v1 = vld [vmem:[%s13655_s14 + $0x1510] sm:$0xff] }
 0x2d2   : > { %v6044_v57 = vpop.f32.mrb[45].mxu1  ;;  %v1315_v43 = vld [vmem:[%s13655_s14 + $0x1cc8] sm:$0xff]  ;;  %v2144_v53 = vcombine.high %v2142_v47, %v2142_v47  ;;  %v2162_v46 = vcombine.high %v370_v41, %v370_v41 }
 0x2d3   : > { %v6043_v60 = vadd.f32 %v6042_v54, %v5973_v52  ;;  %v12653_v50 = vpack.c.bf16 %v1315_v43, %v1059_v42  ;;  %v2143_v52 = vcombine.high %v2135_v44, %v2135_v44  ;;  %v1058_v54 = vld [vmem:[%s13655_s14 + $0x14c0] sm:$0xff]  ;;  %v555_v32 = vld [vmem:[%s13655_s14 + $0x508] sm:$0xff] }
 0x2d4   : > { %v12655_v3 = vpack.c.bf16 %v1314_v55, %v1058_v54  ;;  %v1069_v54 = vld [vmem:[%s13655_s14 + $0x1518] sm:$0xff] }
 0x2d5   : > { %v1325_v55 = vld [vmem:[%s13655_s14 + $0x1d18] sm:$0xff] }
 0x2d6   : > { %12624 = vmatpush1.bf16.xpose.msra.mxu0 %v12623_v58  ;;  %v1316_v58 = vld [vmem:[%s13655_s14 + $0x1cd0] sm:$0xff] }
 0x2d7   : > { %12632 = vmatpush1.bf16.xpose.msra.mxu1 %v12631_v61  ;;  %12634 = vmatprep.subr.bf16.mxu0 %v12633_v62  ;;  %v12663_v6 = vpack.c.bf16 %v1316_v58, %v1060_v56  ;;  %v2176_v56 = vrot.slane %v2162_v46, %v13692_v28  ;;  %v565_v46 = vld [vmem:[%s13655_s14 + $0x558] sm:$0xff] }
 0x2d8   : > { %12642 = vmatprep.subr.bf16.mxu1 %v12641_v63 }
 0x2dd   : > { %7931 = vmatmul.mubr.f32.vlgmr.msra.gmra.mrb[72].mxu0 %v2101_v35  ;;  %v12649_v35 = vpack.c.bf16 %v803_v23, %v547_v22  ;;  %v12677_v23 = vpack.c.bf16 %v1321_v18, %v1065_v17 }
 0x2de   : > { %12636 = vmatpush1.bf16.xpose.msra.mxu0 %v12635_v11  ;;  %8001 = vmatmul.mubr.f32.vlgmr.msra.gmra.mrb[72].mxu1 %v2108_v38  ;;  %v546_v38 = vld [vmem:[%s13655_s14 + $0x4c0] sm:$0xff] }
 0x2df   : > { %12644 = vmatpush1.bf16.xpose.msra.mxu1 %v12643_v12  ;;  %12638 = vmatprep.subr.bf16.mxu0 %v12637_v13  ;;  %v12651_v48 = vpack.c.bf16 %v802_v39, %v546_v38  ;;  %v806_v11 = vld [vmem:[%s13655_s14 + $0xce0] sm:$0xff]  ;;  %v552_v12 = vld [vmem:[%s13655_s14 + $0x4f0] sm:$0xff]  ;;  %v813_v38 = vld [vmem:[%s13655_s14 + $0xd18] sm:$0xff] }
 0x2e0   : > { %v6112_v20 = vpop.f32.mrb[46].mxu0  ;;  %12646 = vmatprep.subr.bf16.mxu1 %v12645_v14  ;;  %8070 = vmatprep.mubr.f32.mxu0 %v2126_v15  ;;  %v808_v13 = vld [vmem:[%s13655_s14 + $0xcf0] sm:$0xff]  ;;  %v1063_v14 = vld [vmem:[%s13655_s14 + $0x14e8] sm:$0xff]  ;;  %v12689_v45 = vpack.c.bf16 %v813_v38, %v557_v37  ;;  %v1326_v37 = vld [vmem:[%s13655_s14 + $0x1d20] sm:$0xff] }
 0x2e1   : > { %v6113_v24 = vadd.f32 %v6112_v20, %v6043_v60  ;;  %v6114_v25 = vpop.f32.mrb[47].mxu0  ;;  %v6182_v26 = vpop.f32.mrb[46].mxu1  ;;  %8140 = vmatprep.mubr.f32.mxu1 %v2127_v16  ;;  %v807_v60 = vld [vmem:[%s13655_s14 + $0xce8] sm:$0xff]  ;;  %v2152_v16 = vrot.slane %v369_v4, %v13692_v28  ;;  %v12675_v21 = vpack.c.bf16 %v808_v13, %v552_v12  ;;  %v1072_v38 = vld [vmem:[%s13655_s14 + $0x1530] sm:$0xff] }
 0x2e2   : > { %v6184_v30 = vpop.f32.mrb[47].mxu1  ;;  %v1319_v15 = vld [vmem:[%s13655_s14 + $0x1ce8] sm:$0xff]  ;;  %v2161_v25 = vcombine.high %v2159_v19, %v2159_v19 }
 0x2e3   : > { %v6183_v33 = vadd.f32 %v6182_v26, %v6113_v24  ;;  %v12669_v22 = vpack.c.bf16 %v1319_v15, %v1063_v14  ;;  %v2160_v24 = vcombine.high %v2152_v16, %v2152_v16  ;;  %v1062_v26 = vld [vmem:[%s13655_s14 + $0x14e0] sm:$0xff]  ;;  %v559_v4 = vld [vmem:[%s13655_s14 + $0x528] sm:$0xff] }
 0x2e4   : > { %v12671_v40 = vpack.c.bf16 %v1318_v27, %v1062_v26  ;;  %v371_v13 = vld [vmem:[%s13673_s17 + $0x148] sm:$0xff]  ;;  %v1073_v26 = vld [vmem:[%s13655_s14 + $0x1538] sm:$0xff] }
 0x2e5   : > { %v2179_v18 = vcombine.high %v371_v13, %v371_v13  ;;  %v1329_v27 = vld [vmem:[%s13655_s14 + $0x1d38] sm:$0xff] }
 0x2e6   : > { %12640 = vmatpush1.bf16.xpose.msra.mxu0 %v12639_v31  ;;  %v1320_v31 = vld [vmem:[%s13655_s14 + $0x1cf0] sm:$0xff] }
 0x2e7   : > { %12648 = vmatpush1.bf16.xpose.msra.mxu1 %v12647_v34  ;;  %12650 = vmatprep.subr.bf16.mxu0 %v12649_v35  ;;  %v12679_v43 = vpack.c.bf16 %v1320_v31, %v1064_v29  ;;  %v2193_v29 = vrot.slane %v2179_v18, %v13692_v28  ;;  %v569_v18 = vld [vmem:[%s13655_s14 + $0x578] sm:$0xff] }
 0x2e8   : > { %12658 = vmatprep.subr.bf16.mxu1 %v12657_v36 }
 0x2ed   : > { %8071 = vmatmul.mubr.f32.vlgmr.msra.gmra.mrb[74].mxu0 %v2118_v7  ;;  %v12665_v7 = vpack.c.bf16 %v807_v60, %v551_v59  ;;  %v12693_v60 = vpack.c.bf16 %v1325_v55, %v1069_v54 }
 0x2ee   : > { %12652 = vmatpush1.bf16.xpose.msra.mxu0 %v12651_v48  ;;  %8141 = vmatmul.mubr.f32.vlgmr.msra.gmra.mrb[74].mxu1 %v2125_v10  ;;  %v550_v10 = vld [vmem:[%s13655_s14 + $0x4e0] sm:$0xff] }
 0x2ef   : > { %12660 = vmatpush1.bf16.xpose.msra.mxu1 %v12659_v49  ;;  %12654 = vmatprep.subr.bf16.mxu0 %v12653_v50  ;;  %v12667_v20 = vpack.c.bf16 %v806_v11, %v550_v10  ;;  %v810_v48 = vld [vmem:[%s13655_s14 + $0xd00] sm:$0xff]  ;;  %v556_v49 = vld [vmem:[%s13655_s14 + $0x510] sm:$0xff]  ;;  %v817_v10 = vld [vmem:[%s13655_s14 + $0xd38] sm:$0xff] }
 0x2f0   : > { %v6252_v57 = vpop.f32.mrb[48].mxu0  ;;  %12662 = vmatprep.subr.bf16.mxu1 %v12661_v51  ;;  %8210 = vmatprep.mubr.f32.mxu0 %v2143_v52  ;;  %v812_v50 = vld [vmem:[%s13655_s14 + $0xd10] sm:$0xff]  ;;  %v1067_v51 = vld [vmem:[%s13655_s14 + $0x1508] sm:$0xff]  ;;  %v12705_v17 = vpack.c.bf16 %v817_v10, %v561_v9  ;;  %v1330_v9 = vld [vmem:[%s13655_s14 + $0x1d40] sm:$0xff] }
 0x2f1   : > { %v6253_v61 = vadd.f32 %v6252_v57, %v6183_v33  ;;  %v6254_v62 = vpop.f32.mrb[49].mxu0  ;;  %v6322_v63 = vpop.f32.mrb[48].mxu1  ;;  %8280 = vmatprep.mubr.f32.mxu1 %v2144_v53  ;;  %v811_v33 = vld [vmem:[%s13655_s14 + $0xd08] sm:$0xff]  ;;  %v2169_v53 = vrot.slane %v370_v41, %v13692_v28  ;;  %v12691_v58 = vpack.c.bf16 %v812_v50, %v556_v49  ;;  %v1076_v10 = vld [vmem:[%s13655_s14 + $0x1550] sm:$0xff] }
 0x2f2   : > { %v6324_v2 = vpop.f32.mrb[49].mxu1  ;;  %v1323_v52 = vld [vmem:[%s13655_s14 + $0x1d08] sm:$0xff]  ;;  %v2178_v62 = vcombine.high %v2176_v56, %v2176_v56 }
 0x2f3   : > { %v6323_v5 = vadd.f32 %v6322_v63, %v6253_v61  ;;  %v12685_v59 = vpack.c.bf16 %v1323_v52, %v1067_v51  ;;  %v2177_v61 = vcombine.high %v2169_v53, %v2169_v53  ;;  %v1066_v63 = vld [vmem:[%s13655_s14 + $0x1500] sm:$0xff]  ;;  %v563_v41 = vld [vmem:[%s13655_s14 + $0x548] sm:$0xff] }
 0x2f4   : > { %v12687_v12 = vpack.c.bf16 %v1322_v0, %v1066_v63  ;;  %v372_v50 = vld [vmem:[%s13673_s17 + $0x150] sm:$0xff]  ;;  %v1077_v63 = vld [vmem:[%s13655_s14 + $0x1558] sm:$0xff] }
 0x2f5   : > { %v2196_v55 = vcombine.high %v372_v50, %v372_v50  ;;  %v1333_v0 = vld [vmem:[%s13655_s14 + $0x1d58] sm:$0xff] }
 0x2f6   : > { %12656 = vmatpush1.bf16.xpose.msra.mxu0 %v12655_v3  ;;  %v1324_v3 = vld [vmem:[%s13655_s14 + $0x1d10] sm:$0xff] }
 0x2f7   : > { %12664 = vmatpush1.bf16.xpose.msra.mxu1 %v12663_v6  ;;  %12666 = vmatprep.subr.bf16.mxu0 %v12665_v7  ;;  %v12695_v15 = vpack.c.bf16 %v1324_v3, %v1068_v1  ;;  %v2210_v1 = vrot.slane %v2196_v55, %v13692_v28  ;;  %v573_v55 = vld [vmem:[%s13655_s14 + $0x598] sm:$0xff] }
 0x2f8   : > { %12674 = vmatprep.subr.bf16.mxu1 %v12673_v8 }
 0x2fd   : > { %8211 = vmatmul.mubr.f32.vlgmr.msra.gmra.mrb[76].mxu0 %v2135_v44  ;;  %v12681_v44 = vpack.c.bf16 %v811_v33, %v555_v32  ;;  %v12709_v33 = vpack.c.bf16 %v1329_v27, %v1073_v26 }
 0x2fe   : > { %12668 = vmatpush1.bf16.xpose.msra.mxu0 %v12667_v20  ;;  %8281 = vmatmul.mubr.f32.vlgmr.msra.gmra.mrb[76].mxu1 %v2142_v47  ;;  %v554_v47 = vld [vmem:[%s13655_s14 + $0x500] sm:$0xff] }
 0x2ff   : > { %12676 = vmatpush1.bf16.xpose.msra.mxu1 %v12675_v21  ;;  %12670 = vmatprep.subr.bf16.mxu0 %v12669_v22  ;;  %v12683_v57 = vpack.c.bf16 %v810_v48, %v554_v47  ;;  %v814_v20 = vld [vmem:[%s13655_s14 + $0xd20] sm:$0xff]  ;;  %v560_v21 = vld [vmem:[%s13655_s14 + $0x530] sm:$0xff]  ;;  %v821_v47 = vld [vmem:[%s13655_s14 + $0xd58] sm:$0xff] }
 0x300   : > { %v6392_v30 = vpop.f32.mrb[50].mxu0  ;;  %12678 = vmatprep.subr.bf16.mxu1 %v12677_v23  ;;  %8350 = vmatprep.mubr.f32.mxu0 %v2160_v24  ;;  %v816_v22 = vld [vmem:[%s13655_s14 + $0xd30] sm:$0xff]  ;;  %v1071_v23 = vld [vmem:[%s13655_s14 + $0x1528] sm:$0xff]  ;;  %v12721_v54 = vpack.c.bf16 %v821_v47, %v565_v46  ;;  %v1334_v46 = vld [vmem:[%s13655_s14 + $0x1d60] sm:$0xff] }
 0x301   : > { %v6393_v34 = vadd.f32 %v6392_v30, %v6323_v5  ;;  %v6394_v35 = vpop.f32.mrb[51].mxu0  ;;  %v6462_v36 = vpop.f32.mrb[50].mxu1  ;;  %8420 = vmatprep.mubr.f32.mxu1 %v2161_v25  ;;  %v815_v5 = vld [vmem:[%s13655_s14 + $0xd28] sm:$0xff]  ;;  %v2186_v25 = vrot.slane %v371_v13, %v13692_v28  ;;  %v12707_v31 = vpack.c.bf16 %v816_v22, %v560_v21  ;;  %v373_v22 = vld [vmem:[%s13673_s17 + $0x158] sm:$0xff] }
 0x302   : > { %v6464_v39 = vpop.f32.mrb[51].mxu1  ;;  %v1327_v24 = vld [vmem:[%s13655_s14 + $0x1d28] sm:$0xff]  ;;  %v2195_v35 = vcombine.high %v2193_v29, %v2193_v29  ;;  %v2213_v27 = vcombine.high %v373_v22, %v373_v22  ;;  %v1080_v47 = vld [vmem:[%s13655_s14 + $0x1570] sm:$0xff] }
 0x303   : > { %v6463_v42 = vadd.f32 %v6462_v36, %v6393_v34  ;;  %v12701_v32 = vpack.c.bf16 %v1327_v24, %v1071_v23  ;;  %v2194_v34 = vcombine.high %v2186_v25, %v2186_v25  ;;  %v1070_v36 = vld [vmem:[%s13655_s14 + $0x1520] sm:$0xff]  ;;  %v567_v13 = vld [vmem:[%s13655_s14 + $0x568] sm:$0xff] }
 0x304   : > { %v12703_v49 = vpack.c.bf16 %v1326_v37, %v1070_v36  ;;  %v1081_v36 = vld [vmem:[%s13655_s14 + $0x1578] sm:$0xff] }
 0x305   : > { %v1337_v37 = vld [vmem:[%s13655_s14 + $0x1d78] sm:$0xff] }
 0x306   : > { %12672 = vmatpush1.bf16.xpose.msra.mxu0 %v12671_v40  ;;  %v1328_v40 = vld [vmem:[%s13655_s14 + $0x1d30] sm:$0xff] }
 0x307   : > { %12680 = vmatpush1.bf16.xpose.msra.mxu1 %v12679_v43  ;;  %12682 = vmatprep.subr.bf16.mxu0 %v12681_v44  ;;  %v12711_v52 = vpack.c.bf16 %v1328_v40, %v1072_v38  ;;  %v2227_v38 = vrot.slane %v2213_v27, %v13692_v28  ;;  %v577_v27 = vld [vmem:[%s13655_s14 + $0x5b8] sm:$0xff] }
 0x308   : > { %12690 = vmatprep.subr.bf16.mxu1 %v12689_v45 }
 0x30d   : > { %8351 = vmatmul.mubr.f32.vlgmr.msra.gmra.mrb[78].mxu0 %v2152_v16  ;;  %v12697_v16 = vpack.c.bf16 %v815_v5, %v559_v4  ;;  %v12725_v5 = vpack.c.bf16 %v1333_v0, %v1077_v63 }
 0x30e   : > { %12684 = vmatpush1.bf16.xpose.msra.mxu0 %v12683_v57  ;;  %8421 = vmatmul.mubr.f32.vlgmr.msra.gmra.mrb[78].mxu1 %v2159_v19  ;;  %v558_v19 = vld [vmem:[%s13655_s14 + $0x520] sm:$0xff] }
 0x30f   : > { %12692 = vmatpush1.bf16.xpose.msra.mxu1 %v12691_v58  ;;  %12686 = vmatprep.subr.bf16.mxu0 %v12685_v59  ;;  %v12699_v30 = vpack.c.bf16 %v814_v20, %v558_v19  ;;  %v818_v57 = vld [vmem:[%s13655_s14 + $0xd40] sm:$0xff]  ;;  %v564_v58 = vld [vmem:[%s13655_s14 + $0x550] sm:$0xff]  ;;  %v825_v19 = vld [vmem:[%s13655_s14 + $0xd78] sm:$0xff] }
 0x310   : > { %v6532_v2 = vpop.f32.mrb[52].mxu0  ;;  %12694 = vmatprep.subr.bf16.mxu1 %v12693_v60  ;;  %8490 = vmatprep.mubr.f32.mxu0 %v2177_v61  ;;  %v820_v59 = vld [vmem:[%s13655_s14 + $0xd50] sm:$0xff]  ;;  %v1075_v60 = vld [vmem:[%s13655_s14 + $0x1548] sm:$0xff]  ;;  %v12737_v26 = vpack.c.bf16 %v825_v19, %v569_v18  ;;  %v1338_v18 = vld [vmem:[%s13655_s14 + $0x1d80] sm:$0xff] }
 0x311   : > { %v6533_v6 = vadd.f32 %v6532_v2, %v6463_v42  ;;  %v6534_v7 = vpop.f32.mrb[53].mxu0  ;;  %v6602_v8 = vpop.f32.mrb[52].mxu1  ;;  %8560 = vmatprep.mubr.f32.mxu1 %v2178_v62  ;;  %v819_v42 = vld [vmem:[%s13655_s14 + $0xd48] sm:$0xff]  ;;  %v2203_v62 = vrot.slane %v372_v50, %v13692_v28  ;;  %v12723_v3 = vpack.c.bf16 %v820_v59, %v564_v58  ;;  %v374_v59 = vld [vmem:[%s13673_s17 + $0x160] sm:$0xff]  ;;  %v1084_v19 = vld [vmem:[%s13655_s14 + $0x1590] sm:$0xff] }
 0x312   : > { %v6604_v11 = vpop.f32.mrb[53].mxu1  ;;  %v1331_v61 = vld [vmem:[%s13655_s14 + $0x1d48] sm:$0xff]  ;;  %v2212_v7 = vcombine.high %v2210_v1, %v2210_v1  ;;  %v2230_v0 = vcombine.high %v374_v59, %v374_v59 }
 0x313   : > { %v6603_v14 = vadd.f32 %v6602_v8, %v6533_v6  ;;  %v12717_v4 = vpack.c.bf16 %v1331_v61, %v1075_v60  ;;  %v2211_v6 = vcombine.high %v2203_v62, %v2203_v62  ;;  %v1074_v8 = vld [vmem:[%s13655_s14 + $0x1540] sm:$0xff]  ;;  %v571_v50 = vld [vmem:[%s13655_s14 + $0x588] sm:$0xff] }
 0x314   : > { %v12719_v21 = vpack.c.bf16 %v1330_v9, %v1074_v8  ;;  %v1085_v8 = vld [vmem:[%s13655_s14 + $0x1598] sm:$0xff] }
 0x315   : > { %v1341_v9 = vld [vmem:[%s13655_s14 + $0x1d98] sm:$0xff] }
 0x316   : > { %12688 = vmatpush1.bf16.xpose.msra.mxu0 %v12687_v12  ;;  %v1332_v12 = vld [vmem:[%s13655_s14 + $0x1d50] sm:$0xff] }
 0x317   : > { %12696 = vmatpush1.bf16.xpose.msra.mxu1 %v12695_v15  ;;  %12698 = vmatprep.subr.bf16.mxu0 %v12697_v16  ;;  %v12727_v24 = vpack.c.bf16 %v1332_v12, %v1076_v10  ;;  %v2244_v10 = vrot.slane %v2230_v0, %v13692_v28  ;;  %v581_v0 = vld [vmem:[%s13655_s14 + $0x5d8] sm:$0xff] }
 0x318   : > { %12706 = vmatprep.subr.bf16.mxu1 %v12705_v17 }
 0x31d   : > { %8491 = vmatmul.mubr.f32.vlgmr.msra.gmra.mrb[80].mxu0 %v2169_v53  ;;  %v12713_v53 = vpack.c.bf16 %v819_v42, %v563_v41  ;;  %v12741_v42 = vpack.c.bf16 %v1337_v37, %v1081_v36 }
 0x31e   : > { %12700 = vmatpush1.bf16.xpose.msra.mxu0 %v12699_v30  ;;  %8561 = vmatmul.mubr.f32.vlgmr.msra.gmra.mrb[80].mxu1 %v2176_v56  ;;  %v562_v56 = vld [vmem:[%s13655_s14 + $0x540] sm:$0xff] }
 0x31f   : > { %12708 = vmatpush1.bf16.xpose.msra.mxu1 %v12707_v31  ;;  %12702 = vmatprep.subr.bf16.mxu0 %v12701_v32  ;;  %v12715_v2 = vpack.c.bf16 %v818_v57, %v562_v56  ;;  %v822_v30 = vld [vmem:[%s13655_s14 + $0xd60] sm:$0xff]  ;;  %v568_v31 = vld [vmem:[%s13655_s14 + $0x570] sm:$0xff]  ;;  %v829_v56 = vld [vmem:[%s13655_s14 + $0xd98] sm:$0xff] }
 0x320   : > { %v6672_v39 = vpop.f32.mrb[54].mxu0  ;;  %12710 = vmatprep.subr.bf16.mxu1 %v12709_v33  ;;  %8630 = vmatprep.mubr.f32.mxu0 %v2194_v34  ;;  %v824_v32 = vld [vmem:[%s13655_s14 + $0xd70] sm:$0xff]  ;;  %v1079_v33 = vld [vmem:[%s13655_s14 + $0x1568] sm:$0xff]  ;;  %v12753_v63 = vpack.c.bf16 %v829_v56, %v573_v55  ;;  %v1342_v55 = vld [vmem:[%s13655_s14 + $0x1da0] sm:$0xff] }
 0x321   : > { %v6673_v43 = vadd.f32 %v6672_v39, %v6603_v14  ;;  %v6674_v44 = vpop.f32.mrb[55].mxu0  ;;  %v6742_v45 = vpop.f32.mrb[54].mxu1  ;;  %8700 = vmatprep.mubr.f32.mxu1 %v2195_v35  ;;  %v823_v14 = vld [vmem:[%s13655_s14 + $0xd68] sm:$0xff]  ;;  %v2220_v35 = vrot.slane %v373_v22, %v13692_v28  ;;  %v12739_v40 = vpack.c.bf16 %v824_v32, %v568_v31  ;;  %v1088_v56 = vld [vmem:[%s13655_s14 + $0x15b0] sm:$0xff] }
 0x322   : > { %v6744_v48 = vpop.f32.mrb[55].mxu1  ;;  %v1335_v34 = vld [vmem:[%s13655_s14 + $0x1d68] sm:$0xff]  ;;  %v2229_v44 = vcombine.high %v2227_v38, %v2227_v38 }
 0x323   : > { %v6743_v51 = vadd.f32 %v6742_v45, %v6673_v43  ;;  %v12733_v41 = vpack.c.bf16 %v1335_v34, %v1079_v33  ;;  %v2228_v43 = vcombine.high %v2220_v35, %v2220_v35  ;;  %v1078_v45 = vld [vmem:[%s13655_s14 + $0x1560] sm:$0xff]  ;;  %v575_v22 = vld [vmem:[%s13655_s14 + $0x5a8] sm:$0xff] }
 0x324   : > { %v12735_v58 = vpack.c.bf16 %v1334_v46, %v1078_v45  ;;  %v375_v32 = vld [vmem:[%s13673_s17 + $0x168] sm:$0xff]  ;;  %v1089_v45 = vld [vmem:[%s13655_s14 + $0x15b8] sm:$0xff] }
 0x325   : > { %v2247_v37 = vcombine.high %v375_v32, %v375_v32  ;;  %v1345_v46 = vld [vmem:[%s13655_s14 + $0x1db8] sm:$0xff] }
 0x326   : > { %12704 = vmatpush1.bf16.xpose.msra.mxu0 %v12703_v49  ;;  %v1336_v49 = vld [vmem:[%s13655_s14 + $0x1d70] sm:$0xff] }
 0x327   : > { %12712 = vmatpush1.bf16.xpose.msra.mxu1 %v12711_v52  ;;  %12714 = vmatprep.subr.bf16.mxu0 %v12713_v53  ;;  %v12743_v61 = vpack.c.bf16 %v1336_v49, %v1080_v47  ;;  %v2261_v47 = vrot.slane %v2247_v37, %v13692_v28  ;;  %v585_v37 = vld [vmem:[%s13655_s14 + $0x5f8] sm:$0xff] }
 0x328   : > { %12722 = vmatprep.subr.bf16.mxu1 %v12721_v54 }
 0x32d   : > { %8631 = vmatmul.mubr.f32.vlgmr.msra.gmra.mrb[82].mxu0 %v2186_v25  ;;  %v12729_v25 = vpack.c.bf16 %v823_v14, %v567_v13  ;;  %v12757_v14 = vpack.c.bf16 %v1341_v9, %v1085_v8 }
 0x32e   : > { %12716 = vmatpush1.bf16.xpose.msra.mxu0 %v12715_v2  ;;  %8701 = vmatmul.mubr.f32.vlgmr.msra.gmra.mrb[82].mxu1 %v2193_v29  ;;  %v566_v29 = vld [vmem:[%s13655_s14 + $0x560] sm:$0xff] }
 0x32f   : > { %12724 = vmatpush1.bf16.xpose.msra.mxu1 %v12723_v3  ;;  %12718 = vmatprep.subr.bf16.mxu0 %v12717_v4  ;;  %v12731_v39 = vpack.c.bf16 %v822_v30, %v566_v29  ;;  %v826_v2 = vld [vmem:[%s13655_s14 + $0xd80] sm:$0xff]  ;;  %v572_v3 = vld [vmem:[%s13655_s14 + $0x590] sm:$0xff]  ;;  %v833_v29 = vld [vmem:[%s13655_s14 + $0xdb8] sm:$0xff] }
 0x330   : > { %v6812_v11 = vpop.f32.mrb[56].mxu0  ;;  %12726 = vmatprep.subr.bf16.mxu1 %v12725_v5  ;;  %8770 = vmatprep.mubr.f32.mxu0 %v2211_v6  ;;  %v828_v4 = vld [vmem:[%s13655_s14 + $0xd90] sm:$0xff]  ;;  %v1083_v5 = vld [vmem:[%s13655_s14 + $0x1588] sm:$0xff]  ;;  %v12769_v36 = vpack.c.bf16 %v833_v29, %v577_v27  ;;  %v1346_v27 = vld [vmem:[%s13655_s14 + $0x1dc0] sm:$0xff] }
 0x331   : > { %v6813_v15 = vadd.f32 %v6812_v11, %v6743_v51  ;;  %v6814_v16 = vpop.f32.mrb[57].mxu0  ;;  %v6882_v17 = vpop.f32.mrb[56].mxu1  ;;  %8840 = vmatprep.mubr.f32.mxu1 %v2212_v7  ;;  %v827_v51 = vld [vmem:[%s13655_s14 + $0xd88] sm:$0xff]  ;;  %v2237_v7 = vrot.slane %v374_v59, %v13692_v28  ;;  %v12755_v12 = vpack.c.bf16 %v828_v4, %v572_v3  ;;  %v1092_v29 = vld [vmem:[%s13655_s14 + $0x15d0] sm:$0xff] }
 0x332   : > { %v6884_v20 = vpop.f32.mrb[57].mxu1  ;;  %v1339_v6 = vld [vmem:[%s13655_s14 + $0x1d88] sm:$0xff]  ;;  %v2246_v16 = vcombine.high %v2244_v10, %v2244_v10 }
 0x333   : > { %v6883_v23 = vadd.f32 %v6882_v17, %v6813_v15  ;;  %v12749_v13 = vpack.c.bf16 %v1339_v6, %v1083_v5  ;;  %v2245_v15 = vcombine.high %v2237_v7, %v2237_v7  ;;  %v1082_v17 = vld [vmem:[%s13655_s14 + $0x1580] sm:$0xff]  ;;  %v579_v59 = vld [vmem:[%s13655_s14 + $0x5c8] sm:$0xff] }
 0x334   : > { %v12751_v31 = vpack.c.bf16 %v1338_v18, %v1082_v17  ;;  %v376_v4 = vld [vmem:[%s13673_s17 + $0x170] sm:$0xff]  ;;  %v1093_v17 = vld [vmem:[%s13655_s14 + $0x15d8] sm:$0xff] }
 0x335   : > { %v2264_v9 = vcombine.high %v376_v4, %v376_v4  ;;  %v1349_v18 = vld [vmem:[%s13655_s14 + $0x1dd8] sm:$0xff] }
 0x336   : > { %12720 = vmatpush1.bf16.xpose.msra.mxu0 %v12719_v21  ;;  %v1340_v21 = vld [vmem:[%s13655_s14 + $0x1d90] sm:$0xff] }
 0x337   : > { %12728 = vmatpush1.bf16.xpose.msra.mxu1 %v12727_v24  ;;  %12730 = vmatprep.subr.bf16.mxu0 %v12729_v25  ;;  %v12759_v34 = vpack.c.bf16 %v1340_v21, %v1084_v19  ;;  %v2278_v19 = vrot.slane %v2264_v9, %v13692_v28  ;;  %v589_v9 = vld [vmem:[%s13655_s14 + $0x618] sm:$0xff] }
 0x338   : > { %12738 = vmatprep.subr.bf16.mxu1 %v12737_v26 }
 0x33d   : > { %8771 = vmatmul.mubr.f32.vlgmr.msra.gmra.mrb[84].mxu0 %v2203_v62  ;;  %v12745_v62 = vpack.c.bf16 %v827_v51, %v571_v50  ;;  %v12773_v51 = vpack.c.bf16 %v1345_v46, %v1089_v45 }
 0x33e   : > { %12732 = vmatpush1.bf16.xpose.msra.mxu0 %v12731_v39  ;;  %8841 = vmatmul.mubr.f32.vlgmr.msra.gmra.mrb[84].mxu1 %v2210_v1  ;;  %v570_v1 = vld [vmem:[%s13655_s14 + $0x580] sm:$0xff] }
 0x33f   : > { %12740 = vmatpush1.bf16.xpose.msra.mxu1 %v12739_v40  ;;  %12734 = vmatprep.subr.bf16.mxu0 %v12733_v41  ;;  %v12747_v11 = vpack.c.bf16 %v826_v2, %v570_v1  ;;  %v830_v39 = vld [vmem:[%s13655_s14 + $0xda0] sm:$0xff]  ;;  %v576_v40 = vld [vmem:[%s13655_s14 + $0x5b0] sm:$0xff]  ;;  %v837_v1 = vld [vmem:[%s13655_s14 + $0xdd8] sm:$0xff] }
 0x340   : > { %v6952_v48 = vpop.f32.mrb[58].mxu0  ;;  %12742 = vmatprep.subr.bf16.mxu1 %v12741_v42  ;;  %8910 = vmatprep.mubr.f32.mxu0 %v2228_v43  ;;  %v832_v41 = vld [vmem:[%s13655_s14 + $0xdb0] sm:$0xff]  ;;  %v1087_v42 = vld [vmem:[%s13655_s14 + $0x15a8] sm:$0xff]  ;;  %v12785_v8 = vpack.c.bf16 %v837_v1, %v581_v0  ;;  %v1350_v0 = vld [vmem:[%s13655_s14 + $0x1de0] sm:$0xff] }
 0x341   : > { %v6953_v52 = vadd.f32 %v6952_v48, %v6883_v23  ;;  %v6954_v53 = vpop.f32.mrb[59].mxu0  ;;  %v7022_v54 = vpop.f32.mrb[58].mxu1  ;;  %8980 = vmatprep.mubr.f32.mxu1 %v2229_v44  ;;  %v831_v23 = vld [vmem:[%s13655_s14 + $0xda8] sm:$0xff]  ;;  %v2254_v44 = vrot.slane %v375_v32, %v13692_v28  ;;  %v12771_v49 = vpack.c.bf16 %v832_v41, %v576_v40  ;;  %v377_v41 = vld [vmem:[%s13673_s17 + $0x178] sm:$0xff] }
 0x342   : > { %v7024_v57 = vpop.f32.mrb[59].mxu1  ;;  %v1343_v43 = vld [vmem:[%s13655_s14 + $0x1da8] sm:$0xff]  ;;  %v2263_v53 = vcombine.high %v2261_v47, %v2261_v47  ;;  %v2281_v46 = vcombine.high %v377_v41, %v377_v41  ;;  %v1096_v1 = vld [vmem:[%s13655_s14 + $0x15f0] sm:$0xff] }
 0x343   : > { %v7023_v60 = vadd.f32 %v7022_v54, %v6953_v52  ;;  %v12765_v50 = vpack.c.bf16 %v1343_v43, %v1087_v42  ;;  %v2262_v52 = vcombine.high %v2254_v44, %v2254_v44  ;;  %v1086_v54 = vld [vmem:[%s13655_s14 + $0x15a0] sm:$0xff]  ;;  %v583_v32 = vld [vmem:[%s13655_s14 + $0x5e8] sm:$0xff] }
 0x344   : > { %v12767_v3 = vpack.c.bf16 %v1342_v55, %v1086_v54  ;;  %v1097_v54 = vld [vmem:[%s13655_s14 + $0x15f8] sm:$0xff] }
 0x345   : > { %v1353_v55 = vld [vmem:[%s13655_s14 + $0x1df8] sm:$0xff] }
 0x346   : > { %12736 = vmatpush1.bf16.xpose.msra.mxu0 %v12735_v58  ;;  %v1344_v58 = vld [vmem:[%s13655_s14 + $0x1db0] sm:$0xff] }
 0x347   : > { %12744 = vmatpush1.bf16.xpose.msra.mxu1 %v12743_v61  ;;  %12746 = vmatprep.subr.bf16.mxu0 %v12745_v62  ;;  %v12775_v6 = vpack.c.bf16 %v1344_v58, %v1088_v56  ;;  %v2295_v56 = vrot.slane %v2281_v46, %v13692_v28  ;;  %v593_v46 = vld [vmem:[%s13655_s14 + $0x638] sm:$0xff] }
 0x348   : > { %12754 = vmatprep.subr.bf16.mxu1 %v12753_v63 }
 0x34d   : > { %8911 = vmatmul.mubr.f32.vlgmr.msra.gmra.mrb[86].mxu0 %v2220_v35  ;;  %v12761_v35 = vpack.c.bf16 %v831_v23, %v575_v22  ;;  %v12789_v23 = vpack.c.bf16 %v1349_v18, %v1093_v17 }
 0x34e   : > { %12748 = vmatpush1.bf16.xpose.msra.mxu0 %v12747_v11  ;;  %8981 = vmatmul.mubr.f32.vlgmr.msra.gmra.mrb[86].mxu1 %v2227_v38  ;;  %v574_v38 = vld [vmem:[%s13655_s14 + $0x5a0] sm:$0xff] }
 0x34f   : > { %12756 = vmatpush1.bf16.xpose.msra.mxu1 %v12755_v12  ;;  %12750 = vmatprep.subr.bf16.mxu0 %v12749_v13  ;;  %v12763_v48 = vpack.c.bf16 %v830_v39, %v574_v38  ;;  %v834_v11 = vld [vmem:[%s13655_s14 + $0xdc0] sm:$0xff]  ;;  %v580_v12 = vld [vmem:[%s13655_s14 + $0x5d0] sm:$0xff]  ;;  %v841_v38 = vld [vmem:[%s13655_s14 + $0xdf8] sm:$0xff] }
 0x350   : > { %v7092_v20 = vpop.f32.mrb[60].mxu0  ;;  %12758 = vmatprep.subr.bf16.mxu1 %v12757_v14  ;;  %9050 = vmatprep.mubr.f32.mxu0 %v2245_v15  ;;  %v836_v13 = vld [vmem:[%s13655_s14 + $0xdd0] sm:$0xff]  ;;  %v1091_v14 = vld [vmem:[%s13655_s14 + $0x15c8] sm:$0xff]  ;;  %v12801_v45 = vpack.c.bf16 %v841_v38, %v585_v37  ;;  %v1354_v37 = vld [vmem:[%s13655_s14 + $0x1e00] sm:$0xff] }
 0x351   : > { %v7093_v24 = vadd.f32 %v7092_v20, %v7023_v60  ;;  %v7094_v25 = vpop.f32.mrb[61].mxu0  ;;  %v7162_v26 = vpop.f32.mrb[60].mxu1  ;;  %9120 = vmatprep.mubr.f32.mxu1 %v2246_v16  ;;  %v835_v60 = vld [vmem:[%s13655_s14 + $0xdc8] sm:$0xff]  ;;  %v2271_v16 = vrot.slane %v376_v4, %v13692_v28  ;;  %v12787_v21 = vpack.c.bf16 %v836_v13, %v580_v12  ;;  %v378_v13 = vld [vmem:[%s13673_s17 + $0x180] sm:$0xff]  ;;  %v1100_v38 = vld [vmem:[%s13655_s14 + $0x1610] sm:$0xff] }
 0x352   : > { %v7164_v30 = vpop.f32.mrb[61].mxu1  ;;  %v1347_v15 = vld [vmem:[%s13655_s14 + $0x1dc8] sm:$0xff]  ;;  %v2280_v25 = vcombine.high %v2278_v19, %v2278_v19  ;;  %v2298_v18 = vcombine.high %v378_v13, %v378_v13 }
 0x353   : > { %v7163_v33 = vadd.f32 %v7162_v26, %v7093_v24  ;;  %v12781_v22 = vpack.c.bf16 %v1347_v15, %v1091_v14  ;;  %v2279_v24 = vcombine.high %v2271_v16, %v2271_v16  ;;  %v1090_v26 = vld [vmem:[%s13655_s14 + $0x15c0] sm:$0xff]  ;;  %v587_v4 = vld [vmem:[%s13655_s14 + $0x608] sm:$0xff] }
 0x354   : > { %v12783_v40 = vpack.c.bf16 %v1346_v27, %v1090_v26  ;;  %v1101_v26 = vld [vmem:[%s13655_s14 + $0x1618] sm:$0xff] }
 0x355   : > { %v1357_v27 = vld [vmem:[%s13655_s14 + $0x1e18] sm:$0xff] }
 0x356   : > { %12752 = vmatpush1.bf16.xpose.msra.mxu0 %v12751_v31  ;;  %v1348_v31 = vld [vmem:[%s13655_s14 + $0x1dd0] sm:$0xff] }
 0x357   : > { %12760 = vmatpush1.bf16.xpose.msra.mxu1 %v12759_v34  ;;  %12762 = vmatprep.subr.bf16.mxu0 %v12761_v35  ;;  %v12791_v43 = vpack.c.bf16 %v1348_v31, %v1092_v29  ;;  %v2312_v29 = vrot.slane %v2298_v18, %v13692_v28  ;;  %v597_v18 = vld [vmem:[%s13655_s14 + $0x658] sm:$0xff] }
 0x358   : > { %12770 = vmatprep.subr.bf16.mxu1 %v12769_v36 }
 0x35d   : > { %9051 = vmatmul.mubr.f32.vlgmr.msra.gmra.mrb[88].mxu0 %v2237_v7  ;;  %v12777_v7 = vpack.c.bf16 %v835_v60, %v579_v59  ;;  %v12805_v60 = vpack.c.bf16 %v1353_v55, %v1097_v54 }
 0x35e   : > { %12764 = vmatpush1.bf16.xpose.msra.mxu0 %v12763_v48  ;;  %9121 = vmatmul.mubr.f32.vlgmr.msra.gmra.mrb[88].mxu1 %v2244_v10  ;;  %v578_v10 = vld [vmem:[%s13655_s14 + $0x5c0] sm:$0xff] }
 0x35f   : > { %12772 = vmatpush1.bf16.xpose.msra.mxu1 %v12771_v49  ;;  %12766 = vmatprep.subr.bf16.mxu0 %v12765_v50  ;;  %v12779_v20 = vpack.c.bf16 %v834_v11, %v578_v10  ;;  %v838_v48 = vld [vmem:[%s13655_s14 + $0xde0] sm:$0xff]  ;;  %v584_v49 = vld [vmem:[%s13655_s14 + $0x5f0] sm:$0xff]  ;;  %v845_v10 = vld [vmem:[%s13655_s14 + $0xe18] sm:$0xff] }
 0x360   : > { %v7232_v57 = vpop.f32.mrb[62].mxu0  ;;  %12774 = vmatprep.subr.bf16.mxu1 %v12773_v51  ;;  %9190 = vmatprep.mubr.f32.mxu0 %v2262_v52  ;;  %v840_v50 = vld [vmem:[%s13655_s14 + $0xdf0] sm:$0xff]  ;;  %v1095_v51 = vld [vmem:[%s13655_s14 + $0x15e8] sm:$0xff]  ;;  %v12817_v17 = vpack.c.bf16 %v845_v10, %v589_v9  ;;  %v1358_v9 = vld [vmem:[%s13655_s14 + $0x1e20] sm:$0xff] }
 0x361   : > { %v7233_v61 = vadd.f32 %v7232_v57, %v7163_v33  ;;  %v7234_v62 = vpop.f32.mrb[63].mxu0  ;;  %v7302_v63 = vpop.f32.mrb[62].mxu1  ;;  %9260 = vmatprep.mubr.f32.mxu1 %v2263_v53  ;;  %v839_v33 = vld [vmem:[%s13655_s14 + $0xde8] sm:$0xff]  ;;  %v2288_v53 = vrot.slane %v377_v41, %v13692_v28  ;;  %v12803_v58 = vpack.c.bf16 %v840_v50, %v584_v49  ;;  %v1104_v10 = vld [vmem:[%s13655_s14 + $0x1630] sm:$0xff] }
 0x362   : > { %v7304_v2 = vpop.f32.mrb[63].mxu1  ;;  %v1351_v52 = vld [vmem:[%s13655_s14 + $0x1de8] sm:$0xff]  ;;  %v2297_v62 = vcombine.high %v2295_v56, %v2295_v56 }
 0x363   : > { %v7303_v5 = vadd.f32 %v7302_v63, %v7233_v61  ;;  %v12797_v59 = vpack.c.bf16 %v1351_v52, %v1095_v51  ;;  %v2296_v61 = vcombine.high %v2288_v53, %v2288_v53  ;;  %v1094_v63 = vld [vmem:[%s13655_s14 + $0x15e0] sm:$0xff]  ;;  %v591_v41 = vld [vmem:[%s13655_s14 + $0x628] sm:$0xff] }
 0x364   : > { %v12799_v12 = vpack.c.bf16 %v1350_v0, %v1094_v63  ;;  %v379_v50 = vld [vmem:[%s13673_s17 + $0x188] sm:$0xff]  ;;  %v1105_v63 = vld [vmem:[%s13655_s14 + $0x1638] sm:$0xff] }
 0x365   : > { %v2315_v55 = vcombine.high %v379_v50, %v379_v50  ;;  %v1361_v0 = vld [vmem:[%s13655_s14 + $0x1e38] sm:$0xff] }
 0x366   : > { %12768 = vmatpush1.bf16.xpose.msra.mxu0 %v12767_v3  ;;  %v1352_v3 = vld [vmem:[%s13655_s14 + $0x1df0] sm:$0xff] }
 0x367   : > { %12776 = vmatpush1.bf16.xpose.msra.mxu1 %v12775_v6  ;;  %12778 = vmatprep.subr.bf16.mxu0 %v12777_v7  ;;  %v12807_v15 = vpack.c.bf16 %v1352_v3, %v1096_v1  ;;  %v2329_v1 = vrot.slane %v2315_v55, %v13692_v28  ;;  %v601_v55 = vld [vmem:[%s13655_s14 + $0x678] sm:$0xff] }
 0x368   : > { %12786 = vmatprep.subr.bf16.mxu1 %v12785_v8 }
 0x36d   : > { %9191 = vmatmul.mubr.f32.vlgmr.msra.gmra.mrb[90].mxu0 %v2254_v44  ;;  %v12793_v44 = vpack.c.bf16 %v839_v33, %v583_v32  ;;  %v12821_v33 = vpack.c.bf16 %v1357_v27, %v1101_v26 }
 0x36e   : > { %12780 = vmatpush1.bf16.xpose.msra.mxu0 %v12779_v20  ;;  %9261 = vmatmul.mubr.f32.vlgmr.msra.gmra.mrb[90].mxu1 %v2261_v47  ;;  %v582_v47 = vld [vmem:[%s13655_s14 + $0x5e0] sm:$0xff] }
 0x36f   : > { %12788 = vmatpush1.bf16.xpose.msra.mxu1 %v12787_v21  ;;  %12782 = vmatprep.subr.bf16.mxu0 %v12781_v22  ;;  %v12795_v57 = vpack.c.bf16 %v838_v48, %v582_v47  ;;  %v842_v20 = vld [vmem:[%s13655_s14 + $0xe00] sm:$0xff]  ;;  %v588_v21 = vld [vmem:[%s13655_s14 + $0x610] sm:$0xff]  ;;  %v849_v47 = vld [vmem:[%s13655_s14 + $0xe38] sm:$0xff] }
 0x370   : > { %v7372_v30 = vpop.f32.mrb[64].mxu0  ;;  %12790 = vmatprep.subr.bf16.mxu1 %v12789_v23  ;;  %9330 = vmatprep.mubr.f32.mxu0 %v2279_v24  ;;  %v844_v22 = vld [vmem:[%s13655_s14 + $0xe10] sm:$0xff]  ;;  %v1099_v23 = vld [vmem:[%s13655_s14 + $0x1608] sm:$0xff]  ;;  %v12833_v54 = vpack.c.bf16 %v849_v47, %v593_v46  ;;  %v1362_v46 = vld [vmem:[%s13655_s14 + $0x1e40] sm:$0xff] }
 0x371   : > { %v7373_v34 = vadd.f32 %v7372_v30, %v7303_v5  ;;  %v7374_v35 = vpop.f32.mrb[65].mxu0  ;;  %v7442_v36 = vpop.f32.mrb[64].mxu1  ;;  %9400 = vmatprep.mubr.f32.mxu1 %v2280_v25  ;;  %v843_v5 = vld [vmem:[%s13655_s14 + $0xe08] sm:$0xff]  ;;  %v2305_v25 = vrot.slane %v378_v13, %v13692_v28  ;;  %v12819_v31 = vpack.c.bf16 %v844_v22, %v588_v21  ;;  %v1108_v47 = vld [vmem:[%s13655_s14 + $0x1650] sm:$0xff] }
 0x372   : > { %v7444_v39 = vpop.f32.mrb[65].mxu1  ;;  %v1355_v24 = vld [vmem:[%s13655_s14 + $0x1e08] sm:$0xff]  ;;  %v2314_v35 = vcombine.high %v2312_v29, %v2312_v29 }
 0x373   : > { %v7443_v42 = vadd.f32 %v7442_v36, %v7373_v34  ;;  %v12813_v32 = vpack.c.bf16 %v1355_v24, %v1099_v23  ;;  %v2313_v34 = vcombine.high %v2305_v25, %v2305_v25  ;;  %v1098_v36 = vld [vmem:[%s13655_s14 + $0x1600] sm:$0xff]  ;;  %v595_v13 = vld [vmem:[%s13655_s14 + $0x648] sm:$0xff] }
 0x374   : > { %v12815_v49 = vpack.c.bf16 %v1354_v37, %v1098_v36  ;;  %v380_v22 = vld [vmem:[%s13673_s17 + $0x190] sm:$0xff]  ;;  %v1109_v36 = vld [vmem:[%s13655_s14 + $0x1658] sm:$0xff] }
 0x375   : > { %v2332_v27 = vcombine.high %v380_v22, %v380_v22  ;;  %v1365_v37 = vld [vmem:[%s13655_s14 + $0x1e58] sm:$0xff] }
 0x376   : > { %12784 = vmatpush1.bf16.xpose.msra.mxu0 %v12783_v40  ;;  %v1356_v40 = vld [vmem:[%s13655_s14 + $0x1e10] sm:$0xff] }
 0x377   : > { %12792 = vmatpush1.bf16.xpose.msra.mxu1 %v12791_v43  ;;  %12794 = vmatprep.subr.bf16.mxu0 %v12793_v44  ;;  %v12823_v52 = vpack.c.bf16 %v1356_v40, %v1100_v38  ;;  %v2346_v38 = vrot.slane %v2332_v27, %v13692_v28  ;;  %v605_v27 = vld [vmem:[%s13655_s14 + $0x698] sm:$0xff] }
 0x378   : > { %12802 = vmatprep.subr.bf16.mxu1 %v12801_v45 }
 0x37d   : > { %9331 = vmatmul.mubr.f32.vlgmr.msra.gmra.mrb[92].mxu0 %v2271_v16  ;;  %v12809_v16 = vpack.c.bf16 %v843_v5, %v587_v4  ;;  %v12837_v5 = vpack.c.bf16 %v1361_v0, %v1105_v63 }
 0x37e   : > { %12796 = vmatpush1.bf16.xpose.msra.mxu0 %v12795_v57  ;;  %9401 = vmatmul.mubr.f32.vlgmr.msra.gmra.mrb[92].mxu1 %v2278_v19  ;;  %v586_v19 = vld [vmem:[%s13655_s14 + $0x600] sm:$0xff] }
 0x37f   : > { %12804 = vmatpush1.bf16.xpose.msra.mxu1 %v12803_v58  ;;  %12798 = vmatprep.subr.bf16.mxu0 %v12797_v59  ;;  %v12811_v30 = vpack.c.bf16 %v842_v20, %v586_v19  ;;  %v846_v57 = vld [vmem:[%s13655_s14 + $0xe20] sm:$0xff]  ;;  %v592_v58 = vld [vmem:[%s13655_s14 + $0x630] sm:$0xff]  ;;  %v853_v19 = vld [vmem:[%s13655_s14 + $0xe58] sm:$0xff] }
 0x380   : > { %v7512_v2 = vpop.f32.mrb[66].mxu0  ;;  %12806 = vmatprep.subr.bf16.mxu1 %v12805_v60  ;;  %9470 = vmatprep.mubr.f32.mxu0 %v2296_v61  ;;  %v848_v59 = vld [vmem:[%s13655_s14 + $0xe30] sm:$0xff]  ;;  %v1103_v60 = vld [vmem:[%s13655_s14 + $0x1628] sm:$0xff]  ;;  %v12849_v26 = vpack.c.bf16 %v853_v19, %v597_v18  ;;  %v1366_v18 = vld [vmem:[%s13655_s14 + $0x1e60] sm:$0xff] }
 0x381   : > { %v7513_v6 = vadd.f32 %v7512_v2, %v7443_v42  ;;  %v7514_v7 = vpop.f32.mrb[67].mxu0  ;;  %v7582_v8 = vpop.f32.mrb[66].mxu1  ;;  %9540 = vmatprep.mubr.f32.mxu1 %v2297_v62  ;;  %v847_v42 = vld [vmem:[%s13655_s14 + $0xe28] sm:$0xff]  ;;  %v2322_v62 = vrot.slane %v379_v50, %v13692_v28  ;;  %v12835_v3 = vpack.c.bf16 %v848_v59, %v592_v58  ;;  %v381_v59 = vld [vmem:[%s13673_s17 + $0x198] sm:$0xff] }
 0x382   : > { %v7584_v11 = vpop.f32.mrb[67].mxu1  ;;  %v1359_v61 = vld [vmem:[%s13655_s14 + $0x1e28] sm:$0xff]  ;;  %v2331_v7 = vcombine.high %v2329_v1, %v2329_v1  ;;  %v2349_v0 = vcombine.high %v381_v59, %v381_v59  ;;  %v1112_v19 = vld [vmem:[%s13655_s14 + $0x1670] sm:$0xff] }
 0x383   : > { %v7583_v14 = vadd.f32 %v7582_v8, %v7513_v6  ;;  %v12829_v4 = vpack.c.bf16 %v1359_v61, %v1103_v60  ;;  %v2330_v6 = vcombine.high %v2322_v62, %v2322_v62  ;;  %v1102_v8 = vld [vmem:[%s13655_s14 + $0x1620] sm:$0xff]  ;;  %v599_v50 = vld [vmem:[%s13655_s14 + $0x668] sm:$0xff] }
 0x384   : > { %v12831_v21 = vpack.c.bf16 %v1358_v9, %v1102_v8  ;;  %v1113_v8 = vld [vmem:[%s13655_s14 + $0x1678] sm:$0xff] }
 0x385   : > { %v1369_v9 = vld [vmem:[%s13655_s14 + $0x1e78] sm:$0xff] }
 0x386   : > { %12800 = vmatpush1.bf16.xpose.msra.mxu0 %v12799_v12  ;;  %v1360_v12 = vld [vmem:[%s13655_s14 + $0x1e30] sm:$0xff] }
 0x387   : > { %12808 = vmatpush1.bf16.xpose.msra.mxu1 %v12807_v15  ;;  %12810 = vmatprep.subr.bf16.mxu0 %v12809_v16  ;;  %v12839_v24 = vpack.c.bf16 %v1360_v12, %v1104_v10  ;;  %v2363_v10 = vrot.slane %v2349_v0, %v13692_v28  ;;  %v609_v0 = vld [vmem:[%s13655_s14 + $0x6b8] sm:$0xff] }
 0x388   : > { %12818 = vmatprep.subr.bf16.mxu1 %v12817_v17 }
 0x38d   : > { %9471 = vmatmul.mubr.f32.vlgmr.msra.gmra.mrb[94].mxu0 %v2288_v53  ;;  %v12825_v53 = vpack.c.bf16 %v847_v42, %v591_v41  ;;  %v12853_v42 = vpack.c.bf16 %v1365_v37, %v1109_v36 }
 0x38e   : > { %12812 = vmatpush1.bf16.xpose.msra.mxu0 %v12811_v30  ;;  %9541 = vmatmul.mubr.f32.vlgmr.msra.gmra.mrb[94].mxu1 %v2295_v56  ;;  %v590_v56 = vld [vmem:[%s13655_s14 + $0x620] sm:$0xff] }
 0x38f   : > { %12820 = vmatpush1.bf16.xpose.msra.mxu1 %v12819_v31  ;;  %12814 = vmatprep.subr.bf16.mxu0 %v12813_v32  ;;  %v12827_v2 = vpack.c.bf16 %v846_v57, %v590_v56  ;;  %v850_v30 = vld [vmem:[%s13655_s14 + $0xe40] sm:$0xff]  ;;  %v596_v31 = vld [vmem:[%s13655_s14 + $0x650] sm:$0xff]  ;;  %v857_v56 = vld [vmem:[%s13655_s14 + $0xe78] sm:$0xff] }
 0x390   : > { %v7652_v39 = vpop.f32.mrb[68].mxu0  ;;  %12822 = vmatprep.subr.bf16.mxu1 %v12821_v33  ;;  %9610 = vmatprep.mubr.f32.mxu0 %v2313_v34  ;;  %v852_v32 = vld [vmem:[%s13655_s14 + $0xe50] sm:$0xff]  ;;  %v1107_v33 = vld [vmem:[%s13655_s14 + $0x1648] sm:$0xff]  ;;  %v12865_v63 = vpack.c.bf16 %v857_v56, %v601_v55  ;;  %v1370_v55 = vld [vmem:[%s13655_s14 + $0x1e80] sm:$0xff] }
 0x391   : > { %v7653_v43 = vadd.f32 %v7652_v39, %v7583_v14  ;;  %v7654_v44 = vpop.f32.mrb[69].mxu0  ;;  %v7722_v45 = vpop.f32.mrb[68].mxu1  ;;  %9680 = vmatprep.mubr.f32.mxu1 %v2314_v35  ;;  %v851_v14 = vld [vmem:[%s13655_s14 + $0xe48] sm:$0xff]  ;;  %v2339_v35 = vrot.slane %v380_v22, %v13692_v28  ;;  %v12851_v40 = vpack.c.bf16 %v852_v32, %v596_v31  ;;  %v382_v32 = vld [vmem:[%s13673_s17 + $0x1a0] sm:$0xff]  ;;  %v1116_v56 = vld [vmem:[%s13655_s14 + $0x1690] sm:$0xff] }
 0x392   : > { %v7724_v48 = vpop.f32.mrb[69].mxu1  ;;  %v1363_v34 = vld [vmem:[%s13655_s14 + $0x1e48] sm:$0xff]  ;;  %v2348_v44 = vcombine.high %v2346_v38, %v2346_v38  ;;  %v2366_v37 = vcombine.high %v382_v32, %v382_v32 }
 0x393   : > { %v7723_v51 = vadd.f32 %v7722_v45, %v7653_v43  ;;  %v12845_v41 = vpack.c.bf16 %v1363_v34, %v1107_v33  ;;  %v2347_v43 = vcombine.high %v2339_v35, %v2339_v35  ;;  %v1106_v45 = vld [vmem:[%s13655_s14 + $0x1640] sm:$0xff]  ;;  %v603_v22 = vld [vmem:[%s13655_s14 + $0x688] sm:$0xff] }
 0x394   : > { %v12847_v58 = vpack.c.bf16 %v1362_v46, %v1106_v45  ;;  %v1117_v45 = vld [vmem:[%s13655_s14 + $0x1698] sm:$0xff] }
 0x395   : > { %v1373_v46 = vld [vmem:[%s13655_s14 + $0x1e98] sm:$0xff] }
 0x396   : > { %12816 = vmatpush1.bf16.xpose.msra.mxu0 %v12815_v49  ;;  %v1364_v49 = vld [vmem:[%s13655_s14 + $0x1e50] sm:$0xff] }
 0x397   : > { %12824 = vmatpush1.bf16.xpose.msra.mxu1 %v12823_v52  ;;  %12826 = vmatprep.subr.bf16.mxu0 %v12825_v53  ;;  %v12855_v61 = vpack.c.bf16 %v1364_v49, %v1108_v47  ;;  %v2380_v47 = vrot.slane %v2366_v37, %v13692_v28  ;;  %v613_v37 = vld [vmem:[%s13655_s14 + $0x6d8] sm:$0xff] }
 0x398   : > { %12834 = vmatprep.subr.bf16.mxu1 %v12833_v54 }
 0x39d   : > { %9611 = vmatmul.mubr.f32.vlgmr.msra.gmra.mrb[96].mxu0 %v2305_v25  ;;  %v12841_v25 = vpack.c.bf16 %v851_v14, %v595_v13  ;;  %v12869_v14 = vpack.c.bf16 %v1369_v9, %v1113_v8 }
 0x39e   : > { %12828 = vmatpush1.bf16.xpose.msra.mxu0 %v12827_v2  ;;  %9681 = vmatmul.mubr.f32.vlgmr.msra.gmra.mrb[96].mxu1 %v2312_v29  ;;  %v594_v29 = vld [vmem:[%s13655_s14 + $0x640] sm:$0xff] }
 0x39f   : > { %12836 = vmatpush1.bf16.xpose.msra.mxu1 %v12835_v3  ;;  %12830 = vmatprep.subr.bf16.mxu0 %v12829_v4  ;;  %v12843_v39 = vpack.c.bf16 %v850_v30, %v594_v29  ;;  %v854_v2 = vld [vmem:[%s13655_s14 + $0xe60] sm:$0xff]  ;;  %v600_v3 = vld [vmem:[%s13655_s14 + $0x670] sm:$0xff]  ;;  %v861_v29 = vld [vmem:[%s13655_s14 + $0xe98] sm:$0xff] }
 0x3a0   : > { %v7792_v11 = vpop.f32.mrb[70].mxu0  ;;  %12838 = vmatprep.subr.bf16.mxu1 %v12837_v5  ;;  %9750 = vmatprep.mubr.f32.mxu0 %v2330_v6  ;;  %v856_v4 = vld [vmem:[%s13655_s14 + $0xe70] sm:$0xff]  ;;  %v1111_v5 = vld [vmem:[%s13655_s14 + $0x1668] sm:$0xff]  ;;  %v12881_v36 = vpack.c.bf16 %v861_v29, %v605_v27  ;;  %v1374_v27 = vld [vmem:[%s13655_s14 + $0x1ea0] sm:$0xff] }
 0x3a1   : > { %v7793_v15 = vadd.f32 %v7792_v11, %v7723_v51  ;;  %v7794_v16 = vpop.f32.mrb[71].mxu0  ;;  %v7862_v17 = vpop.f32.mrb[70].mxu1  ;;  %9820 = vmatprep.mubr.f32.mxu1 %v2331_v7  ;;  %v855_v51 = vld [vmem:[%s13655_s14 + $0xe68] sm:$0xff]  ;;  %v2356_v7 = vrot.slane %v381_v59, %v13692_v28  ;;  %v12867_v12 = vpack.c.bf16 %v856_v4, %v600_v3  ;;  %v1120_v29 = vld [vmem:[%s13655_s14 + $0x16b0] sm:$0xff] }
 0x3a2   : > { %v7864_v20 = vpop.f32.mrb[71].mxu1  ;;  %v1367_v6 = vld [vmem:[%s13655_s14 + $0x1e68] sm:$0xff]  ;;  %v2365_v16 = vcombine.high %v2363_v10, %v2363_v10 }
 0x3a3   : > { %v7863_v23 = vadd.f32 %v7862_v17, %v7793_v15  ;;  %v12861_v13 = vpack.c.bf16 %v1367_v6, %v1111_v5  ;;  %v2364_v15 = vcombine.high %v2356_v7, %v2356_v7  ;;  %v1110_v17 = vld [vmem:[%s13655_s14 + $0x1660] sm:$0xff]  ;;  %v607_v59 = vld [vmem:[%s13655_s14 + $0x6a8] sm:$0xff] }
 0x3a4   : > { %v12863_v31 = vpack.c.bf16 %v1366_v18, %v1110_v17  ;;  %v383_v4 = vld [vmem:[%s13673_s17 + $0x1a8] sm:$0xff]  ;;  %v1121_v17 = vld [vmem:[%s13655_s14 + $0x16b8] sm:$0xff] }
 0x3a5   : > { %v2383_v9 = vcombine.high %v383_v4, %v383_v4  ;;  %v1377_v18 = vld [vmem:[%s13655_s14 + $0x1eb8] sm:$0xff] }
 0x3a6   : > { %12832 = vmatpush1.bf16.xpose.msra.mxu0 %v12831_v21  ;;  %v1368_v21 = vld [vmem:[%s13655_s14 + $0x1e70] sm:$0xff] }
 0x3a7   : > { %12840 = vmatpush1.bf16.xpose.msra.mxu1 %v12839_v24  ;;  %12842 = vmatprep.subr.bf16.mxu0 %v12841_v25  ;;  %v12871_v34 = vpack.c.bf16 %v1368_v21, %v1112_v19  ;;  %v2397_v19 = vrot.slane %v2383_v9, %v13692_v28  ;;  %v617_v9 = vld [vmem:[%s13655_s14 + $0x6f8] sm:$0xff] }
 0x3a8   : > { %12850 = vmatprep.subr.bf16.mxu1 %v12849_v26 }
 0x3ad   : > { %9751 = vmatmul.mubr.f32.vlgmr.msra.gmra.mrb[98].mxu0 %v2322_v62  ;;  %v12857_v62 = vpack.c.bf16 %v855_v51, %v599_v50  ;;  %v12885_v51 = vpack.c.bf16 %v1373_v46, %v1117_v45 }
 0x3ae   : > { %12844 = vmatpush1.bf16.xpose.msra.mxu0 %v12843_v39  ;;  %9821 = vmatmul.mubr.f32.vlgmr.msra.gmra.mrb[98].mxu1 %v2329_v1  ;;  %v598_v1 = vld [vmem:[%s13655_s14 + $0x660] sm:$0xff] }
 0x3af   : > { %12852 = vmatpush1.bf16.xpose.msra.mxu1 %v12851_v40  ;;  %12846 = vmatprep.subr.bf16.mxu0 %v12845_v41  ;;  %v12859_v11 = vpack.c.bf16 %v854_v2, %v598_v1  ;;  %v858_v39 = vld [vmem:[%s13655_s14 + $0xe80] sm:$0xff]  ;;  %v604_v40 = vld [vmem:[%s13655_s14 + $0x690] sm:$0xff]  ;;  %v865_v1 = vld [vmem:[%s13655_s14 + $0xeb8] sm:$0xff] }
 0x3b0   : > { %v7932_v48 = vpop.f32.mrb[72].mxu0  ;;  %12854 = vmatprep.subr.bf16.mxu1 %v12853_v42  ;;  %9890 = vmatprep.mubr.f32.mxu0 %v2347_v43  ;;  %v860_v41 = vld [vmem:[%s13655_s14 + $0xe90] sm:$0xff]  ;;  %v1115_v42 = vld [vmem:[%s13655_s14 + $0x1688] sm:$0xff]  ;;  %v12897_v8 = vpack.c.bf16 %v865_v1, %v609_v0  ;;  %v1378_v0 = vld [vmem:[%s13655_s14 + $0x1ec0] sm:$0xff] }
 0x3b1   : > { %v7933_v52 = vadd.f32 %v7932_v48, %v7863_v23  ;;  %v7934_v53 = vpop.f32.mrb[73].mxu0  ;;  %v8002_v54 = vpop.f32.mrb[72].mxu1  ;;  %9960 = vmatprep.mubr.f32.mxu1 %v2348_v44  ;;  %v859_v23 = vld [vmem:[%s13655_s14 + $0xe88] sm:$0xff]  ;;  %v2373_v44 = vrot.slane %v382_v32, %v13692_v28  ;;  %v12883_v49 = vpack.c.bf16 %v860_v41, %v604_v40  ;;  %v1124_v1 = vld [vmem:[%s13655_s14 + $0x16d0] sm:$0xff] }
 0x3b2   : > { %v8004_v57 = vpop.f32.mrb[73].mxu1  ;;  %v1371_v43 = vld [vmem:[%s13655_s14 + $0x1e88] sm:$0xff]  ;;  %v2382_v53 = vcombine.high %v2380_v47, %v2380_v47 }
 0x3b3   : > { %v8003_v60 = vadd.f32 %v8002_v54, %v7933_v52  ;;  %v12877_v50 = vpack.c.bf16 %v1371_v43, %v1115_v42  ;;  %v2381_v52 = vcombine.high %v2373_v44, %v2373_v44  ;;  %v1114_v54 = vld [vmem:[%s13655_s14 + $0x1680] sm:$0xff]  ;;  %v611_v32 = vld [vmem:[%s13655_s14 + $0x6c8] sm:$0xff] }
 0x3b4   : > { %v12879_v3 = vpack.c.bf16 %v1370_v55, %v1114_v54  ;;  %v384_v41 = vld [vmem:[%s13673_s17 + $0x1b0] sm:$0xff]  ;;  %v1125_v54 = vld [vmem:[%s13655_s14 + $0x16d8] sm:$0xff] }
 0x3b5   : > { %v2400_v46 = vcombine.high %v384_v41, %v384_v41  ;;  %v1381_v55 = vld [vmem:[%s13655_s14 + $0x1ed8] sm:$0xff] }
 0x3b6   : > { %12848 = vmatpush1.bf16.xpose.msra.mxu0 %v12847_v58  ;;  %v1372_v58 = vld [vmem:[%s13655_s14 + $0x1e90] sm:$0xff] }
 0x3b7   : > { %12856 = vmatpush1.bf16.xpose.msra.mxu1 %v12855_v61  ;;  %12858 = vmatprep.subr.bf16.mxu0 %v12857_v62  ;;  %v12887_v6 = vpack.c.bf16 %v1372_v58, %v1116_v56  ;;  %v2414_v56 = vrot.slane %v2400_v46, %v13692_v28  ;;  %v621_v46 = vld [vmem:[%s13655_s14 + $0x718] sm:$0xff] }
 0x3b8   : > { %12866 = vmatprep.subr.bf16.mxu1 %v12865_v63 }
 0x3bd   : > { %9891 = vmatmul.mubr.f32.vlgmr.msra.gmra.mrb[100].mxu0 %v2339_v35  ;;  %v12873_v35 = vpack.c.bf16 %v859_v23, %v603_v22  ;;  %v12901_v23 = vpack.c.bf16 %v1377_v18, %v1121_v17 }
 0x3be   : > { %12860 = vmatpush1.bf16.xpose.msra.mxu0 %v12859_v11  ;;  %9961 = vmatmul.mubr.f32.vlgmr.msra.gmra.mrb[100].mxu1 %v2346_v38  ;;  %v602_v38 = vld [vmem:[%s13655_s14 + $0x680] sm:$0xff] }
 0x3bf   : > { %12868 = vmatpush1.bf16.xpose.msra.mxu1 %v12867_v12  ;;  %12862 = vmatprep.subr.bf16.mxu0 %v12861_v13  ;;  %v12875_v48 = vpack.c.bf16 %v858_v39, %v602_v38  ;;  %v862_v11 = vld [vmem:[%s13655_s14 + $0xea0] sm:$0xff]  ;;  %v608_v12 = vld [vmem:[%s13655_s14 + $0x6b0] sm:$0xff]  ;;  %v869_v38 = vld [vmem:[%s13655_s14 + $0xed8] sm:$0xff] }
 0x3c0   : > { %v8072_v20 = vpop.f32.mrb[74].mxu0  ;;  %12870 = vmatprep.subr.bf16.mxu1 %v12869_v14  ;;  %10030 = vmatprep.mubr.f32.mxu0 %v2364_v15  ;;  %v864_v13 = vld [vmem:[%s13655_s14 + $0xeb0] sm:$0xff]  ;;  %v1119_v14 = vld [vmem:[%s13655_s14 + $0x16a8] sm:$0xff]  ;;  %v12913_v45 = vpack.c.bf16 %v869_v38, %v613_v37  ;;  %v1382_v37 = vld [vmem:[%s13655_s14 + $0x1ee0] sm:$0xff] }
 0x3c1   : > { %v8073_v24 = vadd.f32 %v8072_v20, %v8003_v60  ;;  %v8074_v25 = vpop.f32.mrb[75].mxu0  ;;  %v8142_v26 = vpop.f32.mrb[74].mxu1  ;;  %10100 = vmatprep.mubr.f32.mxu1 %v2365_v16  ;;  %v863_v60 = vld [vmem:[%s13655_s14 + $0xea8] sm:$0xff]  ;;  %v2390_v16 = vrot.slane %v383_v4, %v13692_v28  ;;  %v12899_v21 = vpack.c.bf16 %v864_v13, %v608_v12  ;;  %v385_v13 = vld [vmem:[%s13673_s17 + $0x1b8] sm:$0xff] }
 0x3c2   : > { %v8144_v30 = vpop.f32.mrb[75].mxu1  ;;  %v1375_v15 = vld [vmem:[%s13655_s14 + $0x1ea8] sm:$0xff]  ;;  %v2399_v25 = vcombine.high %v2397_v19, %v2397_v19  ;;  %v2417_v18 = vcombine.high %v385_v13, %v385_v13  ;;  %v1128_v38 = vld [vmem:[%s13655_s14 + $0x16f0] sm:$0xff] }
 0x3c3   : > { %v8143_v33 = vadd.f32 %v8142_v26, %v8073_v24  ;;  %v12893_v22 = vpack.c.bf16 %v1375_v15, %v1119_v14  ;;  %v2398_v24 = vcombine.high %v2390_v16, %v2390_v16  ;;  %v1118_v26 = vld [vmem:[%s13655_s14 + $0x16a0] sm:$0xff]  ;;  %v615_v4 = vld [vmem:[%s13655_s14 + $0x6e8] sm:$0xff] }
 0x3c4   : > { %v12895_v40 = vpack.c.bf16 %v1374_v27, %v1118_v26  ;;  %v1129_v26 = vld [vmem:[%s13655_s14 + $0x16f8] sm:$0xff] }
 0x3c5   : > { %v1385_v27 = vld [vmem:[%s13655_s14 + $0x1ef8] sm:$0xff] }
 0x3c6   : > { %12864 = vmatpush1.bf16.xpose.msra.mxu0 %v12863_v31  ;;  %v1376_v31 = vld [vmem:[%s13655_s14 + $0x1eb0] sm:$0xff] }
 0x3c7   : > { %12872 = vmatpush1.bf16.xpose.msra.mxu1 %v12871_v34  ;;  %12874 = vmatprep.subr.bf16.mxu0 %v12873_v35  ;;  %v12903_v43 = vpack.c.bf16 %v1376_v31, %v1120_v29  ;;  %v2431_v29 = vrot.slane %v2417_v18, %v13692_v28  ;;  %v625_v18 = vld [vmem:[%s13655_s14 + $0x738] sm:$0xff] }
 0x3c8   : > { %12882 = vmatprep.subr.bf16.mxu1 %v12881_v36 }
 0x3cd   : > { %10031 = vmatmul.mubr.f32.vlgmr.msra.gmra.mrb[102].mxu0 %v2356_v7  ;;  %v12889_v7 = vpack.c.bf16 %v863_v60, %v607_v59  ;;  %v12917_v60 = vpack.c.bf16 %v1381_v55, %v1125_v54 }
 0x3ce   : > { %12876 = vmatpush1.bf16.xpose.msra.mxu0 %v12875_v48  ;;  %10101 = vmatmul.mubr.f32.vlgmr.msra.gmra.mrb[102].mxu1 %v2363_v10  ;;  %v606_v10 = vld [vmem:[%s13655_s14 + $0x6a0] sm:$0xff] }
 0x3cf   : > { %12884 = vmatpush1.bf16.xpose.msra.mxu1 %v12883_v49  ;;  %12878 = vmatprep.subr.bf16.mxu0 %v12877_v50  ;;  %v12891_v20 = vpack.c.bf16 %v862_v11, %v606_v10  ;;  %v866_v48 = vld [vmem:[%s13655_s14 + $0xec0] sm:$0xff]  ;;  %v612_v49 = vld [vmem:[%s13655_s14 + $0x6d0] sm:$0xff]  ;;  %v873_v10 = vld [vmem:[%s13655_s14 + $0xef8] sm:$0xff] }
 0x3d0   : > { %v8212_v57 = vpop.f32.mrb[76].mxu0  ;;  %12886 = vmatprep.subr.bf16.mxu1 %v12885_v51  ;;  %10170 = vmatprep.mubr.f32.mxu0 %v2381_v52  ;;  %v868_v50 = vld [vmem:[%s13655_s14 + $0xed0] sm:$0xff]  ;;  %v1123_v51 = vld [vmem:[%s13655_s14 + $0x16c8] sm:$0xff]  ;;  %v12929_v17 = vpack.c.bf16 %v873_v10, %v617_v9  ;;  %v1386_v9 = vld [vmem:[%s13655_s14 + $0x1f00] sm:$0xff] }
 0x3d1   : > { %v8213_v61 = vadd.f32 %v8212_v57, %v8143_v33  ;;  %v8214_v62 = vpop.f32.mrb[77].mxu0  ;;  %v8282_v63 = vpop.f32.mrb[76].mxu1  ;;  %10240 = vmatprep.mubr.f32.mxu1 %v2382_v53  ;;  %v867_v33 = vld [vmem:[%s13655_s14 + $0xec8] sm:$0xff]  ;;  %v2407_v53 = vrot.slane %v384_v41, %v13692_v28  ;;  %v12915_v58 = vpack.c.bf16 %v868_v50, %v612_v49  ;;  %v386_v50 = vld [vmem:[%s13673_s17 + $0x1c0] sm:$0xff]  ;;  %v1132_v10 = vld [vmem:[%s13655_s14 + $0x1710] sm:$0xff] }
 0x3d2   : > { %v8284_v2 = vpop.f32.mrb[77].mxu1  ;;  %v1379_v52 = vld [vmem:[%s13655_s14 + $0x1ec8] sm:$0xff]  ;;  %v2416_v62 = vcombine.high %v2414_v56, %v2414_v56  ;;  %v2434_v55 = vcombine.high %v386_v50, %v386_v50 }
 0x3d3   : > { %v8283_v5 = vadd.f32 %v8282_v63, %v8213_v61  ;;  %v12909_v59 = vpack.c.bf16 %v1379_v52, %v1123_v51  ;;  %v2415_v61 = vcombine.high %v2407_v53, %v2407_v53  ;;  %v1122_v63 = vld [vmem:[%s13655_s14 + $0x16c0] sm:$0xff]  ;;  %v619_v41 = vld [vmem:[%s13655_s14 + $0x708] sm:$0xff] }
 0x3d4   : > { %v12911_v12 = vpack.c.bf16 %v1378_v0, %v1122_v63  ;;  %v1133_v63 = vld [vmem:[%s13655_s14 + $0x1718] sm:$0xff] }
 0x3d5   : > { %v1389_v0 = vld [vmem:[%s13655_s14 + $0x1f18] sm:$0xff] }
 0x3d6   : > { %12880 = vmatpush1.bf16.xpose.msra.mxu0 %v12879_v3  ;;  %v1380_v3 = vld [vmem:[%s13655_s14 + $0x1ed0] sm:$0xff] }
 0x3d7   : > { %12888 = vmatpush1.bf16.xpose.msra.mxu1 %v12887_v6  ;;  %12890 = vmatprep.subr.bf16.mxu0 %v12889_v7  ;;  %v12919_v15 = vpack.c.bf16 %v1380_v3, %v1124_v1  ;;  %v2448_v1 = vrot.slane %v2434_v55, %v13692_v28  ;;  %v629_v55 = vld [vmem:[%s13655_s14 + $0x758] sm:$0xff] }
 0x3d8   : > { %12898 = vmatprep.subr.bf16.mxu1 %v12897_v8 }
 0x3dd   : > { %10171 = vmatmul.mubr.f32.vlgmr.msra.gmra.mrb[104].mxu0 %v2373_v44  ;;  %v12905_v44 = vpack.c.bf16 %v867_v33, %v611_v32  ;;  %v12933_v33 = vpack.c.bf16 %v1385_v27, %v1129_v26 }
 0x3de   : > { %12892 = vmatpush1.bf16.xpose.msra.mxu0 %v12891_v20  ;;  %10241 = vmatmul.mubr.f32.vlgmr.msra.gmra.mrb[104].mxu1 %v2380_v47  ;;  %v610_v47 = vld [vmem:[%s13655_s14 + $0x6c0] sm:$0xff] }
 0x3df   : > { %12900 = vmatpush1.bf16.xpose.msra.mxu1 %v12899_v21  ;;  %12894 = vmatprep.subr.bf16.mxu0 %v12893_v22  ;;  %v12907_v57 = vpack.c.bf16 %v866_v48, %v610_v47  ;;  %v870_v20 = vld [vmem:[%s13655_s14 + $0xee0] sm:$0xff]  ;;  %v616_v21 = vld [vmem:[%s13655_s14 + $0x6f0] sm:$0xff]  ;;  %v877_v47 = vld [vmem:[%s13655_s14 + $0xf18] sm:$0xff] }
 0x3e0   : > { %v8352_v30 = vpop.f32.mrb[78].mxu0  ;;  %12902 = vmatprep.subr.bf16.mxu1 %v12901_v23  ;;  %10310 = vmatprep.mubr.f32.mxu0 %v2398_v24  ;;  %v872_v22 = vld [vmem:[%s13655_s14 + $0xef0] sm:$0xff]  ;;  %v1127_v23 = vld [vmem:[%s13655_s14 + $0x16e8] sm:$0xff]  ;;  %v12945_v54 = vpack.c.bf16 %v877_v47, %v621_v46  ;;  %v1390_v46 = vld [vmem:[%s13655_s14 + $0x1f20] sm:$0xff] }
 0x3e1   : > { %v8353_v34 = vadd.f32 %v8352_v30, %v8283_v5  ;;  %v8354_v35 = vpop.f32.mrb[79].mxu0  ;;  %v8422_v36 = vpop.f32.mrb[78].mxu1  ;;  %10380 = vmatprep.mubr.f32.mxu1 %v2399_v25  ;;  %v871_v5 = vld [vmem:[%s13655_s14 + $0xee8] sm:$0xff]  ;;  %v2424_v25 = vrot.slane %v385_v13, %v13692_v28  ;;  %v12931_v31 = vpack.c.bf16 %v872_v22, %v616_v21  ;;  %v1136_v47 = vld [vmem:[%s13655_s14 + $0x1730] sm:$0xff] }
 0x3e2   : > { %v8424_v39 = vpop.f32.mrb[79].mxu1  ;;  %v1383_v24 = vld [vmem:[%s13655_s14 + $0x1ee8] sm:$0xff]  ;;  %v2433_v35 = vcombine.high %v2431_v29, %v2431_v29 }
 0x3e3   : > { %v8423_v42 = vadd.f32 %v8422_v36, %v8353_v34  ;;  %v12925_v32 = vpack.c.bf16 %v1383_v24, %v1127_v23  ;;  %v2432_v34 = vcombine.high %v2424_v25, %v2424_v25  ;;  %v1126_v36 = vld [vmem:[%s13655_s14 + $0x16e0] sm:$0xff]  ;;  %v623_v13 = vld [vmem:[%s13655_s14 + $0x728] sm:$0xff] }
 0x3e4   : > { %v12927_v49 = vpack.c.bf16 %v1382_v37, %v1126_v36  ;;  %v387_v22 = vld [vmem:[%s13673_s17 + $0x1c8] sm:$0xff]  ;;  %v1137_v36 = vld [vmem:[%s13655_s14 + $0x1738] sm:$0xff] }
 0x3e5   : > { %v2451_v27 = vcombine.high %v387_v22, %v387_v22  ;;  %v1393_v37 = vld [vmem:[%s13655_s14 + $0x1f38] sm:$0xff] }
 0x3e6   : > { %12896 = vmatpush1.bf16.xpose.msra.mxu0 %v12895_v40  ;;  %v1384_v40 = vld [vmem:[%s13655_s14 + $0x1ef0] sm:$0xff] }
 0x3e7   : > { %12904 = vmatpush1.bf16.xpose.msra.mxu1 %v12903_v43  ;;  %12906 = vmatprep.subr.bf16.mxu0 %v12905_v44  ;;  %v12935_v52 = vpack.c.bf16 %v1384_v40, %v1128_v38  ;;  %v2465_v38 = vrot.slane %v2451_v27, %v13692_v28  ;;  %v633_v27 = vld [vmem:[%s13655_s14 + $0x778] sm:$0xff] }
 0x3e8   : > { %12914 = vmatprep.subr.bf16.mxu1 %v12913_v45 }
 0x3ed   : > { %10311 = vmatmul.mubr.f32.vlgmr.msra.gmra.mrb[106].mxu0 %v2390_v16  ;;  %v12921_v16 = vpack.c.bf16 %v871_v5, %v615_v4  ;;  %v12949_v5 = vpack.c.bf16 %v1389_v0, %v1133_v63 }
 0x3ee   : > { %12908 = vmatpush1.bf16.xpose.msra.mxu0 %v12907_v57  ;;  %10381 = vmatmul.mubr.f32.vlgmr.msra.gmra.mrb[106].mxu1 %v2397_v19  ;;  %v614_v19 = vld [vmem:[%s13655_s14 + $0x6e0] sm:$0xff] }
 0x3ef   : > { %12916 = vmatpush1.bf16.xpose.msra.mxu1 %v12915_v58  ;;  %12910 = vmatprep.subr.bf16.mxu0 %v12909_v59  ;;  %v12923_v30 = vpack.c.bf16 %v870_v20, %v614_v19  ;;  %v874_v57 = vld [vmem:[%s13655_s14 + $0xf00] sm:$0xff]  ;;  %v620_v58 = vld [vmem:[%s13655_s14 + $0x710] sm:$0xff]  ;;  %v881_v19 = vld [vmem:[%s13655_s14 + $0xf38] sm:$0xff] }
 0x3f0   : > { %v8492_v2 = vpop.f32.mrb[80].mxu0  ;;  %12918 = vmatprep.subr.bf16.mxu1 %v12917_v60  ;;  %10450 = vmatprep.mubr.f32.mxu0 %v2415_v61  ;;  %v876_v59 = vld [vmem:[%s13655_s14 + $0xf10] sm:$0xff]  ;;  %v1131_v60 = vld [vmem:[%s13655_s14 + $0x1708] sm:$0xff]  ;;  %v12961_v26 = vpack.c.bf16 %v881_v19, %v625_v18  ;;  %v1394_v18 = vld [vmem:[%s13655_s14 + $0x1f40] sm:$0xff] }
 0x3f1   : > { %v8493_v6 = vadd.f32 %v8492_v2, %v8423_v42  ;;  %v8494_v7 = vpop.f32.mrb[81].mxu0  ;;  %v8562_v8 = vpop.f32.mrb[80].mxu1  ;;  %10520 = vmatprep.mubr.f32.mxu1 %v2416_v62  ;;  %v875_v42 = vld [vmem:[%s13655_s14 + $0xf08] sm:$0xff]  ;;  %v2441_v62 = vrot.slane %v386_v50, %v13692_v28  ;;  %v12947_v3 = vpack.c.bf16 %v876_v59, %v620_v58  ;;  %v1140_v19 = vld [vmem:[%s13655_s14 + $0x1750] sm:$0xff] }
 0x3f2   : > { %v8564_v11 = vpop.f32.mrb[81].mxu1  ;;  %v1387_v61 = vld [vmem:[%s13655_s14 + $0x1f08] sm:$0xff]  ;;  %v2450_v7 = vcombine.high %v2448_v1, %v2448_v1 }
 0x3f3   : > { %v8563_v14 = vadd.f32 %v8562_v8, %v8493_v6  ;;  %v12941_v4 = vpack.c.bf16 %v1387_v61, %v1131_v60  ;;  %v2449_v6 = vcombine.high %v2441_v62, %v2441_v62  ;;  %v1130_v8 = vld [vmem:[%s13655_s14 + $0x1700] sm:$0xff]  ;;  %v627_v50 = vld [vmem:[%s13655_s14 + $0x748] sm:$0xff] }
 0x3f4   : > { %v12943_v21 = vpack.c.bf16 %v1386_v9, %v1130_v8  ;;  %v388_v59 = vld [vmem:[%s13673_s17 + $0x1d0] sm:$0xff]  ;;  %v1141_v8 = vld [vmem:[%s13655_s14 + $0x1758] sm:$0xff] }
 0x3f5   : > { %v2468_v0 = vcombine.high %v388_v59, %v388_v59  ;;  %v1397_v9 = vld [vmem:[%s13655_s14 + $0x1f58] sm:$0xff] }
 0x3f6   : > { %12912 = vmatpush1.bf16.xpose.msra.mxu0 %v12911_v12  ;;  %v1388_v12 = vld [vmem:[%s13655_s14 + $0x1f10] sm:$0xff] }
 0x3f7   : > { %12920 = vmatpush1.bf16.xpose.msra.mxu1 %v12919_v15  ;;  %12922 = vmatprep.subr.bf16.mxu0 %v12921_v16  ;;  %v12951_v24 = vpack.c.bf16 %v1388_v12, %v1132_v10  ;;  %v2482_v10 = vrot.slane %v2468_v0, %v13692_v28  ;;  %v637_v0 = vld [vmem:[%s13655_s14 + $0x798] sm:$0xff] }
 0x3f8   : > { %12930 = vmatprep.subr.bf16.mxu1 %v12929_v17 }
 0x3fd   : > { %10451 = vmatmul.mubr.f32.vlgmr.msra.gmra.mrb[108].mxu0 %v2407_v53  ;;  %v12937_v53 = vpack.c.bf16 %v875_v42, %v619_v41  ;;  %v12965_v42 = vpack.c.bf16 %v1393_v37, %v1137_v36 }
 0x3fe   : > { %12924 = vmatpush1.bf16.xpose.msra.mxu0 %v12923_v30  ;;  %10521 = vmatmul.mubr.f32.vlgmr.msra.gmra.mrb[108].mxu1 %v2414_v56  ;;  %v618_v56 = vld [vmem:[%s13655_s14 + $0x700] sm:$0xff] }
 0x3ff   : > { %12932 = vmatpush1.bf16.xpose.msra.mxu1 %v12931_v31  ;;  %12926 = vmatprep.subr.bf16.mxu0 %v12925_v32  ;;  %v12939_v2 = vpack.c.bf16 %v874_v57, %v618_v56  ;;  %v878_v30 = vld [vmem:[%s13655_s14 + $0xf20] sm:$0xff]  ;;  %v624_v31 = vld [vmem:[%s13655_s14 + $0x730] sm:$0xff]  ;;  %v885_v56 = vld [vmem:[%s13655_s14 + $0xf58] sm:$0xff] }
 0x400   : > { %v8632_v39 = vpop.f32.mrb[82].mxu0  ;;  %12934 = vmatprep.subr.bf16.mxu1 %v12933_v33  ;;  %10590 = vmatprep.mubr.f32.mxu0 %v2432_v34  ;;  %v880_v32 = vld [vmem:[%s13655_s14 + $0xf30] sm:$0xff]  ;;  %v1135_v33 = vld [vmem:[%s13655_s14 + $0x1728] sm:$0xff]  ;;  %v12977_v63 = vpack.c.bf16 %v885_v56, %v629_v55  ;;  %v1398_v55 = vld [vmem:[%s13655_s14 + $0x1f60] sm:$0xff] }
 0x401   : > { %v8633_v43 = vadd.f32 %v8632_v39, %v8563_v14  ;;  %v8634_v44 = vpop.f32.mrb[83].mxu0  ;;  %v8702_v45 = vpop.f32.mrb[82].mxu1  ;;  %10660 = vmatprep.mubr.f32.mxu1 %v2433_v35  ;;  %v879_v14 = vld [vmem:[%s13655_s14 + $0xf28] sm:$0xff]  ;;  %v2458_v35 = vrot.slane %v387_v22, %v13692_v28  ;;  %v12963_v40 = vpack.c.bf16 %v880_v32, %v624_v31  ;;  %v389_v32 = vld [vmem:[%s13673_s17 + $0x1d8] sm:$0xff] }
 0x402   : > { %v8704_v48 = vpop.f32.mrb[83].mxu1  ;;  %v1391_v34 = vld [vmem:[%s13655_s14 + $0x1f28] sm:$0xff]  ;;  %v2467_v44 = vcombine.high %v2465_v38, %v2465_v38  ;;  %v2485_v37 = vcombine.high %v389_v32, %v389_v32  ;;  %v1144_v56 = vld [vmem:[%s13655_s14 + $0x1770] sm:$0xff] }
 0x403   : > { %v8703_v51 = vadd.f32 %v8702_v45, %v8633_v43  ;;  %v12957_v41 = vpack.c.bf16 %v1391_v34, %v1135_v33  ;;  %v2466_v43 = vcombine.high %v2458_v35, %v2458_v35  ;;  %v1134_v45 = vld [vmem:[%s13655_s14 + $0x1720] sm:$0xff]  ;;  %v631_v22 = vld [vmem:[%s13655_s14 + $0x768] sm:$0xff] }
 0x404   : > { %v12959_v58 = vpack.c.bf16 %v1390_v46, %v1134_v45  ;;  %v1145_v45 = vld [vmem:[%s13655_s14 + $0x1778] sm:$0xff] }
 0x405   : > { %v1401_v46 = vld [vmem:[%s13655_s14 + $0x1f78] sm:$0xff] }
 0x406   : > { %12928 = vmatpush1.bf16.xpose.msra.mxu0 %v12927_v49  ;;  %v1392_v49 = vld [vmem:[%s13655_s14 + $0x1f30] sm:$0xff] }
 0x407   : > { %12936 = vmatpush1.bf16.xpose.msra.mxu1 %v12935_v52  ;;  %12938 = vmatprep.subr.bf16.mxu0 %v12937_v53  ;;  %v12967_v61 = vpack.c.bf16 %v1392_v49, %v1136_v47  ;;  %v2499_v47 = vrot.slane %v2485_v37, %v13692_v28  ;;  %v641_v37 = vld [vmem:[%s13655_s14 + $0x7b8] sm:$0xff] }
 0x408   : > { %12946 = vmatprep.subr.bf16.mxu1 %v12945_v54 }
 0x40d   : > { %10591 = vmatmul.mubr.f32.vlgmr.msra.gmra.mrb[110].mxu0 %v2424_v25  ;;  %v12953_v25 = vpack.c.bf16 %v879_v14, %v623_v13  ;;  %v12981_v14 = vpack.c.bf16 %v1397_v9, %v1141_v8 }
 0x40e   : > { %12940 = vmatpush1.bf16.xpose.msra.mxu0 %v12939_v2  ;;  %10661 = vmatmul.mubr.f32.vlgmr.msra.gmra.mrb[110].mxu1 %v2431_v29  ;;  %v622_v29 = vld [vmem:[%s13655_s14 + $0x720] sm:$0xff] }
 0x40f   : > { %12948 = vmatpush1.bf16.xpose.msra.mxu1 %v12947_v3  ;;  %12942 = vmatprep.subr.bf16.mxu0 %v12941_v4  ;;  %v12955_v39 = vpack.c.bf16 %v878_v30, %v622_v29  ;;  %v882_v2 = vld [vmem:[%s13655_s14 + $0xf40] sm:$0xff]  ;;  %v628_v3 = vld [vmem:[%s13655_s14 + $0x750] sm:$0xff]  ;;  %v889_v29 = vld [vmem:[%s13655_s14 + $0xf78] sm:$0xff] }
 0x410   : > { %v8772_v11 = vpop.f32.mrb[84].mxu0  ;;  %12950 = vmatprep.subr.bf16.mxu1 %v12949_v5  ;;  %10730 = vmatprep.mubr.f32.mxu0 %v2449_v6  ;;  %v884_v4 = vld [vmem:[%s13655_s14 + $0xf50] sm:$0xff]  ;;  %v1139_v5 = vld [vmem:[%s13655_s14 + $0x1748] sm:$0xff]  ;;  %v12993_v36 = vpack.c.bf16 %v889_v29, %v633_v27  ;;  %v1402_v27 = vld [vmem:[%s13655_s14 + $0x1f80] sm:$0xff] }
 0x411   : > { %v8773_v15 = vadd.f32 %v8772_v11, %v8703_v51  ;;  %v8774_v16 = vpop.f32.mrb[85].mxu0  ;;  %v8842_v17 = vpop.f32.mrb[84].mxu1  ;;  %10800 = vmatprep.mubr.f32.mxu1 %v2450_v7  ;;  %v883_v51 = vld [vmem:[%s13655_s14 + $0xf48] sm:$0xff]  ;;  %v2475_v7 = vrot.slane %v388_v59, %v13692_v28  ;;  %v12979_v12 = vpack.c.bf16 %v884_v4, %v628_v3  ;;  %v390_v4 = vld [vmem:[%s13673_s17 + $0x1e0] sm:$0xff]  ;;  %v1148_v29 = vld [vmem:[%s13655_s14 + $0x1790] sm:$0xff] }
 0x412   : > { %v8844_v20 = vpop.f32.mrb[85].mxu1  ;;  %v1395_v6 = vld [vmem:[%s13655_s14 + $0x1f48] sm:$0xff]  ;;  %v2484_v16 = vcombine.high %v2482_v10, %v2482_v10  ;;  %v2502_v9 = vcombine.high %v390_v4, %v390_v4 }
 0x413   : > { %v8843_v23 = vadd.f32 %v8842_v17, %v8773_v15  ;;  %v12973_v13 = vpack.c.bf16 %v1395_v6, %v1139_v5  ;;  %v2483_v15 = vcombine.high %v2475_v7, %v2475_v7  ;;  %v1138_v17 = vld [vmem:[%s13655_s14 + $0x1740] sm:$0xff]  ;;  %v635_v59 = vld [vmem:[%s13655_s14 + $0x788] sm:$0xff] }
 0x414   : > { %v12975_v31 = vpack.c.bf16 %v1394_v18, %v1138_v17  ;;  %v1149_v17 = vld [vmem:[%s13655_s14 + $0x1798] sm:$0xff] }
 0x415   : > { %v1405_v18 = vld [vmem:[%s13655_s14 + $0x1f98] sm:$0xff] }
 0x416   : > { %12944 = vmatpush1.bf16.xpose.msra.mxu0 %v12943_v21  ;;  %v1396_v21 = vld [vmem:[%s13655_s14 + $0x1f50] sm:$0xff] }
 0x417   : > { %12952 = vmatpush1.bf16.xpose.msra.mxu1 %v12951_v24  ;;  %12954 = vmatprep.subr.bf16.mxu0 %v12953_v25  ;;  %v12983_v34 = vpack.c.bf16 %v1396_v21, %v1140_v19  ;;  %v2516_v19 = vrot.slane %v2502_v9, %v13692_v28  ;;  %v645_v9 = vld [vmem:[%s13655_s14 + $0x7d8] sm:$0xff] }
 0x418   : > { %12962 = vmatprep.subr.bf16.mxu1 %v12961_v26 }
 0x41d   : > { %10731 = vmatmul.mubr.f32.vlgmr.msra.gmra.mrb[112].mxu0 %v2441_v62  ;;  %v12969_v62 = vpack.c.bf16 %v883_v51, %v627_v50  ;;  %v12997_v51 = vpack.c.bf16 %v1401_v46, %v1145_v45 }
 0x41e   : > { %12956 = vmatpush1.bf16.xpose.msra.mxu0 %v12955_v39  ;;  %10801 = vmatmul.mubr.f32.vlgmr.msra.gmra.mrb[112].mxu1 %v2448_v1  ;;  %v626_v1 = vld [vmem:[%s13655_s14 + $0x740] sm:$0xff] }
 0x41f   : > { %12964 = vmatpush1.bf16.xpose.msra.mxu1 %v12963_v40  ;;  %12958 = vmatprep.subr.bf16.mxu0 %v12957_v41  ;;  %v12971_v11 = vpack.c.bf16 %v882_v2, %v626_v1  ;;  %v886_v39 = vld [vmem:[%s13655_s14 + $0xf60] sm:$0xff]  ;;  %v632_v40 = vld [vmem:[%s13655_s14 + $0x770] sm:$0xff]  ;;  %v893_v1 = vld [vmem:[%s13655_s14 + $0xf98] sm:$0xff] }
 0x420   : > { %v8912_v48 = vpop.f32.mrb[86].mxu0  ;;  %12966 = vmatprep.subr.bf16.mxu1 %v12965_v42  ;;  %10870 = vmatprep.mubr.f32.mxu0 %v2466_v43  ;;  %v888_v41 = vld [vmem:[%s13655_s14 + $0xf70] sm:$0xff]  ;;  %v1143_v42 = vld [vmem:[%s13655_s14 + $0x1768] sm:$0xff]  ;;  %v13009_v8 = vpack.c.bf16 %v893_v1, %v637_v0  ;;  %v1406_v0 = vld [vmem:[%s13655_s14 + $0x1fa0] sm:$0xff] }
 0x421   : > { %v8913_v52 = vadd.f32 %v8912_v48, %v8843_v23  ;;  %v8914_v53 = vpop.f32.mrb[87].mxu0  ;;  %v8982_v54 = vpop.f32.mrb[86].mxu1  ;;  %10940 = vmatprep.mubr.f32.mxu1 %v2467_v44  ;;  %v887_v23 = vld [vmem:[%s13655_s14 + $0xf68] sm:$0xff]  ;;  %v2492_v44 = vrot.slane %v389_v32, %v13692_v28  ;;  %v12995_v49 = vpack.c.bf16 %v888_v41, %v632_v40  ;;  %v1152_v1 = vld [vmem:[%s13655_s14 + $0x17b0] sm:$0xff] }
 0x422   : > { %v8984_v57 = vpop.f32.mrb[87].mxu1  ;;  %v1399_v43 = vld [vmem:[%s13655_s14 + $0x1f68] sm:$0xff]  ;;  %v2501_v53 = vcombine.high %v2499_v47, %v2499_v47 }
 0x423   : > { %v8983_v60 = vadd.f32 %v8982_v54, %v8913_v52  ;;  %v12989_v50 = vpack.c.bf16 %v1399_v43, %v1143_v42  ;;  %v2500_v52 = vcombine.high %v2492_v44, %v2492_v44  ;;  %v1142_v54 = vld [vmem:[%s13655_s14 + $0x1760] sm:$0xff]  ;;  %v639_v32 = vld [vmem:[%s13655_s14 + $0x7a8] sm:$0xff] }
 0x424   : > { %v12991_v3 = vpack.c.bf16 %v1398_v55, %v1142_v54  ;;  %v391_v41 = vld [vmem:[%s13673_s17 + $0x1e8] sm:$0xff]  ;;  %v1153_v54 = vld [vmem:[%s13655_s14 + $0x17b8] sm:$0xff] }
 0x425   : > { %v2519_v46 = vcombine.high %v391_v41, %v391_v41  ;;  %v1409_v55 = vld [vmem:[%s13655_s14 + $0x1fb8] sm:$0xff] }
 0x426   : > { %12960 = vmatpush1.bf16.xpose.msra.mxu0 %v12959_v58  ;;  %v1400_v58 = vld [vmem:[%s13655_s14 + $0x1f70] sm:$0xff] }
 0x427   : > { %12968 = vmatpush1.bf16.xpose.msra.mxu1 %v12967_v61  ;;  %12970 = vmatprep.subr.bf16.mxu0 %v12969_v62  ;;  %v12999_v6 = vpack.c.bf16 %v1400_v58, %v1144_v56  ;;  %v2533_v56 = vrot.slane %v2519_v46, %v13692_v28  ;;  %v649_v46 = vld [vmem:[%s13655_s14 + $0x7f8] sm:$0xff] }
 0x428   : > { %12978 = vmatprep.subr.bf16.mxu1 %v12977_v63 }
 0x42d   : > { %10871 = vmatmul.mubr.f32.vlgmr.msra.gmra.mrb[114].mxu0 %v2458_v35  ;;  %v12985_v35 = vpack.c.bf16 %v887_v23, %v631_v22  ;;  %v13013_v23 = vpack.c.bf16 %v1405_v18, %v1149_v17 }
 0x42e   : > { %12972 = vmatpush1.bf16.xpose.msra.mxu0 %v12971_v11  ;;  %10941 = vmatmul.mubr.f32.vlgmr.msra.gmra.mrb[114].mxu1 %v2465_v38  ;;  %v630_v38 = vld [vmem:[%s13655_s14 + $0x760] sm:$0xff] }
 0x42f   : > { %12980 = vmatpush1.bf16.xpose.msra.mxu1 %v12979_v12  ;;  %12974 = vmatprep.subr.bf16.mxu0 %v12973_v13  ;;  %v12987_v48 = vpack.c.bf16 %v886_v39, %v630_v38  ;;  %v890_v11 = vld [vmem:[%s13655_s14 + $0xf80] sm:$0xff]  ;;  %v636_v12 = vld [vmem:[%s13655_s14 + $0x790] sm:$0xff]  ;;  %v897_v38 = vld [vmem:[%s13655_s14 + $0xfb8] sm:$0xff] }
 0x430   : > { %v9052_v20 = vpop.f32.mrb[88].mxu0  ;;  %12982 = vmatprep.subr.bf16.mxu1 %v12981_v14  ;;  %11010 = vmatprep.mubr.f32.mxu0 %v2483_v15  ;;  %v892_v13 = vld [vmem:[%s13655_s14 + $0xf90] sm:$0xff]  ;;  %v1147_v14 = vld [vmem:[%s13655_s14 + $0x1788] sm:$0xff]  ;;  %v13025_v45 = vpack.c.bf16 %v897_v38, %v641_v37  ;;  %v1410_v37 = vld [vmem:[%s13655_s14 + $0x1fc0] sm:$0xff] }
 0x431   : > { %v9053_v24 = vadd.f32 %v9052_v20, %v8983_v60  ;;  %v9054_v25 = vpop.f32.mrb[89].mxu0  ;;  %v9122_v26 = vpop.f32.mrb[88].mxu1  ;;  %11080 = vmatprep.mubr.f32.mxu1 %v2484_v16  ;;  %v891_v60 = vld [vmem:[%s13655_s14 + $0xf88] sm:$0xff]  ;;  %v2509_v16 = vrot.slane %v390_v4, %v13692_v28  ;;  %v13011_v21 = vpack.c.bf16 %v892_v13, %v636_v12  ;;  %v1156_v38 = vld [vmem:[%s13655_s14 + $0x17d0] sm:$0xff] }
 0x432   : > { %v9124_v30 = vpop.f32.mrb[89].mxu1  ;;  %v1403_v15 = vld [vmem:[%s13655_s14 + $0x1f88] sm:$0xff]  ;;  %v2518_v25 = vcombine.high %v2516_v19, %v2516_v19 }
 0x433   : > { %v9123_v33 = vadd.f32 %v9122_v26, %v9053_v24  ;;  %v13005_v22 = vpack.c.bf16 %v1403_v15, %v1147_v14  ;;  %v2517_v24 = vcombine.high %v2509_v16, %v2509_v16  ;;  %v1146_v26 = vld [vmem:[%s13655_s14 + $0x1780] sm:$0xff]  ;;  %v643_v4 = vld [vmem:[%s13655_s14 + $0x7c8] sm:$0xff] }
 0x434   : > { %v13007_v40 = vpack.c.bf16 %v1402_v27, %v1146_v26  ;;  %v392_v13 = vld [vmem:[%s13673_s17 + $0x1f0] sm:$0xff]  ;;  %v1157_v26 = vld [vmem:[%s13655_s14 + $0x17d8] sm:$0xff] }
 0x435   : > { %v2536_v18 = vcombine.high %v392_v13, %v392_v13  ;;  %v1413_v27 = vld [vmem:[%s13655_s14 + $0x1fd8] sm:$0xff] }
 0x436   : > { %12976 = vmatpush1.bf16.xpose.msra.mxu0 %v12975_v31  ;;  %v1404_v31 = vld [vmem:[%s13655_s14 + $0x1f90] sm:$0xff] }
 0x437   : > { %12984 = vmatpush1.bf16.xpose.msra.mxu1 %v12983_v34  ;;  %12986 = vmatprep.subr.bf16.mxu0 %v12985_v35  ;;  %v13015_v43 = vpack.c.bf16 %v1404_v31, %v1148_v29  ;;  %v2550_v29 = vrot.slane %v2536_v18, %v13692_v28 }
 0x438   : > { %12994 = vmatprep.subr.bf16.mxu1 %v12993_v36 }
 0x43d   : > { %11011 = vmatmul.mubr.f32.vlgmr.msra.gmra.mrb[116].mxu0 %v2475_v7  ;;  %v13001_v7 = vpack.c.bf16 %v891_v60, %v635_v59  ;;  %v13029_v60 = vpack.c.bf16 %v1409_v55, %v1153_v54 }
 0x43e   : > { %12988 = vmatpush1.bf16.xpose.msra.mxu0 %v12987_v48  ;;  %11081 = vmatmul.mubr.f32.vlgmr.msra.gmra.mrb[116].mxu1 %v2482_v10  ;;  %v634_v10 = vld [vmem:[%s13655_s14 + $0x780] sm:$0xff] }
 0x43f   : > { %12996 = vmatpush1.bf16.xpose.msra.mxu1 %v12995_v49  ;;  %12990 = vmatprep.subr.bf16.mxu0 %v12989_v50  ;;  %v13003_v20 = vpack.c.bf16 %v890_v11, %v634_v10  ;;  %v894_v48 = vld [vmem:[%s13655_s14 + $0xfa0] sm:$0xff]  ;;  %v640_v49 = vld [vmem:[%s13655_s14 + $0x7b0] sm:$0xff]  ;;  %v901_v10 = vld [vmem:[%s13655_s14 + $0xfd8] sm:$0xff] }
 0x440   : > { %v9192_v57 = vpop.f32.mrb[90].mxu0  ;;  %12998 = vmatprep.subr.bf16.mxu1 %v12997_v51  ;;  %11150 = vmatprep.mubr.f32.mxu0 %v2500_v52  ;;  %v896_v50 = vld [vmem:[%s13655_s14 + $0xfb0] sm:$0xff]  ;;  %v1151_v51 = vld [vmem:[%s13655_s14 + $0x17a8] sm:$0xff]  ;;  %v13041_v17 = vpack.c.bf16 %v901_v10, %v645_v9  ;;  %v1414_v9 = vld [vmem:[%s13655_s14 + $0x1fe0] sm:$0xff] }
 0x441   : > { %v9193_v61 = vadd.f32 %v9192_v57, %v9123_v33  ;;  %v9194_v62 = vpop.f32.mrb[91].mxu0  ;;  %v9262_v63 = vpop.f32.mrb[90].mxu1  ;;  %11220 = vmatprep.mubr.f32.mxu1 %v2501_v53  ;;  %v895_v33 = vld [vmem:[%s13655_s14 + $0xfa8] sm:$0xff]  ;;  %v2526_v53 = vrot.slane %v391_v41, %v13692_v28  ;;  %v13027_v58 = vpack.c.bf16 %v896_v50, %v640_v49  ;;  %v393_v50 = vld [vmem:[%s13673_s17 + $0x1f8] sm:$0xff] }
 0x442   : > { %v9264_v2 = vpop.f32.mrb[91].mxu1  ;;  %v1407_v52 = vld [vmem:[%s13655_s14 + $0x1fa8] sm:$0xff]  ;;  %v2535_v62 = vcombine.high %v2533_v56, %v2533_v56  ;;  %v2553_v55 = vcombine.high %v393_v50, %v393_v50 }
 0x443   : > { %v9263_v5 = vadd.f32 %v9262_v63, %v9193_v61  ;;  %v13021_v59 = vpack.c.bf16 %v1407_v52, %v1151_v51  ;;  %v2534_v61 = vcombine.high %v2526_v53, %v2526_v53  ;;  %v1150_v63 = vld [vmem:[%s13655_s14 + $0x17a0] sm:$0xff]  ;;  %v647_v41 = vld [vmem:[%s13655_s14 + $0x7e8] sm:$0xff] }
 0x444   : > { %v13023_v12 = vpack.c.bf16 %v1406_v0, %v1150_v63  ;;  %v1161_v63 = vld [vmem:[%s13655_s14 + $0x17f8] sm:$0xff] }
 0x445   : > { %v1417_v0 = vld [vmem:[%s13655_s14 + $0x1ff8] sm:$0xff] }
 0x446   : > { %12992 = vmatpush1.bf16.xpose.msra.mxu0 %v12991_v3  ;;  %v1408_v3 = vld [vmem:[%s13655_s14 + $0x1fb0] sm:$0xff] }
 0x447   : > { %13000 = vmatpush1.bf16.xpose.msra.mxu1 %v12999_v6  ;;  %13002 = vmatprep.subr.bf16.mxu0 %v13001_v7  ;;  %v13031_v15 = vpack.c.bf16 %v1408_v3, %v1152_v1  ;;  %v2567_v1 = vrot.slane %v2553_v55, %v13692_v28 }
 0x448   : > { %13010 = vmatprep.subr.bf16.mxu1 %v13009_v8 }
 0x44d   : > { %11151 = vmatmul.mubr.f32.vlgmr.msra.gmra.mrb[118].mxu0 %v2492_v44  ;;  %v13017_v44 = vpack.c.bf16 %v895_v33, %v639_v32  ;;  %v13045_v33 = vpack.c.bf16 %v1413_v27, %v1157_v26 }
 0x44e   : > { %13004 = vmatpush1.bf16.xpose.msra.mxu0 %v13003_v20  ;;  %11221 = vmatmul.mubr.f32.vlgmr.msra.gmra.mrb[118].mxu1 %v2499_v47  ;;  %v638_v47 = vld [vmem:[%s13655_s14 + $0x7a0] sm:$0xff] }
 0x44f   : > { %13012 = vmatpush1.bf16.xpose.msra.mxu1 %v13011_v21  ;;  %13006 = vmatprep.subr.bf16.mxu0 %v13005_v22  ;;  %v13019_v57 = vpack.c.bf16 %v894_v48, %v638_v47  ;;  %v898_v20 = vld [vmem:[%s13655_s14 + $0xfc0] sm:$0xff]  ;;  %v644_v21 = vld [vmem:[%s13655_s14 + $0x7d0] sm:$0xff]  ;;  %v905_v47 = vld [vmem:[%s13655_s14 + $0xff8] sm:$0xff] }
 0x450   : > { %v9332_v30 = vpop.f32.mrb[92].mxu0  ;;  %13014 = vmatprep.subr.bf16.mxu1 %v13013_v23  ;;  %11290 = vmatprep.mubr.f32.mxu0 %v2517_v24  ;;  %v900_v22 = vld [vmem:[%s13655_s14 + $0xfd0] sm:$0xff]  ;;  %v1155_v23 = vld [vmem:[%s13655_s14 + $0x17c8] sm:$0xff]  ;;  %v13057_v54 = vpack.c.bf16 %v905_v47, %v649_v46 }
 0x451   : > { %v9333_v34 = vadd.f32 %v9332_v30, %v9263_v5  ;;  %v9334_v35 = vpop.f32.mrb[93].mxu0  ;;  %v9402_v36 = vpop.f32.mrb[92].mxu1  ;;  %11360 = vmatprep.mubr.f32.mxu1 %v2518_v25  ;;  %v899_v5 = vld [vmem:[%s13655_s14 + $0xfc8] sm:$0xff]  ;;  %v2543_v25 = vrot.slane %v392_v13, %v13692_v28  ;;  %v13043_v31 = vpack.c.bf16 %v900_v22, %v644_v21 }
 0x452   : > { %v9404_v39 = vpop.f32.mrb[93].mxu1  ;;  %v1411_v24 = vld [vmem:[%s13655_s14 + $0x1fc8] sm:$0xff]  ;;  %v2552_v35 = vcombine.high %v2550_v29, %v2550_v29 }
 0x453   : > { %v9403_v42 = vadd.f32 %v9402_v36, %v9333_v34  ;;  %v13037_v32 = vpack.c.bf16 %v1411_v24, %v1155_v23  ;;  %v2551_v34 = vcombine.high %v2543_v25, %v2543_v25  ;;  %v1154_v36 = vld [vmem:[%s13655_s14 + $0x17c0] sm:$0xff] }
 0x454   : > { %v13039_v49 = vpack.c.bf16 %v1410_v37, %v1154_v36 }
 0x456   : > { %13008 = vmatpush1.bf16.xpose.msra.mxu0 %v13007_v40  ;;  %v1412_v40 = vld [vmem:[%s13655_s14 + $0x1fd0] sm:$0xff] }
 0x457   : > { %13016 = vmatpush1.bf16.xpose.msra.mxu1 %v13015_v43  ;;  %13018 = vmatprep.subr.bf16.mxu0 %v13017_v44  ;;  %v13047_v52 = vpack.c.bf16 %v1412_v40, %v1156_v38 }
 0x458   : > { %13026 = vmatprep.subr.bf16.mxu1 %v13025_v45 }
 0x45d   : > { %11291 = vmatmul.mubr.f32.vlgmr.msra.gmra.mrb[120].mxu0 %v2509_v16  ;;  %v13033_v16 = vpack.c.bf16 %v899_v5, %v643_v4  ;;  %v13061_v5 = vpack.c.bf16 %v1417_v0, %v1161_v63 }
 0x45e   : > { %13020 = vmatpush1.bf16.xpose.msra.mxu0 %v13019_v57  ;;  %11361 = vmatmul.mubr.f32.vlgmr.msra.gmra.mrb[120].mxu1 %v2516_v19  ;;  %v642_v19 = vld [vmem:[%s13655_s14 + $0x7c0] sm:$0xff] }
 0x45f   : > { %13028 = vmatpush1.bf16.xpose.msra.mxu1 %v13027_v58  ;;  %13022 = vmatprep.subr.bf16.mxu0 %v13021_v59  ;;  %v13035_v30 = vpack.c.bf16 %v898_v20, %v642_v19  ;;  %v902_v57 = vld [vmem:[%s13655_s14 + $0xfe0] sm:$0xff]  ;;  %v648_v58 = vld [vmem:[%s13655_s14 + $0x7f0] sm:$0xff] }
 0x460   : > { %v9472_v2 = vpop.f32.mrb[94].mxu0  ;;  %13030 = vmatprep.subr.bf16.mxu1 %v13029_v60  ;;  %11430 = vmatprep.mubr.f32.mxu0 %v2534_v61  ;;  %v904_v59 = vld [vmem:[%s13655_s14 + $0xff0] sm:$0xff]  ;;  %v1159_v60 = vld [vmem:[%s13655_s14 + $0x17e8] sm:$0xff] }
 0x461   : > { %v9473_v6 = vadd.f32 %v9472_v2, %v9403_v42  ;;  %v9474_v7 = vpop.f32.mrb[95].mxu0  ;;  %v9542_v8 = vpop.f32.mrb[94].mxu1  ;;  %11500 = vmatprep.mubr.f32.mxu1 %v2535_v62  ;;  %v903_v42 = vld [vmem:[%s13655_s14 + $0xfe8] sm:$0xff]  ;;  %v2560_v62 = vrot.slane %v393_v50, %v13692_v28  ;;  %v13059_v3 = vpack.c.bf16 %v904_v59, %v648_v58 }
 0x462   : > { %v9544_v11 = vpop.f32.mrb[95].mxu1  ;;  %v1415_v61 = vld [vmem:[%s13655_s14 + $0x1fe8] sm:$0xff]  ;;  %v2569_v7 = vcombine.high %v2567_v1, %v2567_v1 }
 0x463   : > { %v9543_v14 = vadd.f32 %v9542_v8, %v9473_v6  ;;  %v13053_v4 = vpack.c.bf16 %v1415_v61, %v1159_v60  ;;  %v2568_v6 = vcombine.high %v2560_v62, %v2560_v62  ;;  %v1158_v8 = vld [vmem:[%s13655_s14 + $0x17e0] sm:$0xff]  ;;  %v1160_v11 = vld [vmem:[%s13655_s14 + $0x17f0] sm:$0xff] }
 0x466   : > { %13024 = vmatpush1.bf16.xpose.msra.mxu0 %v13023_v12  ;;  %v1416_v12 = vld [vmem:[%s13655_s14 + $0x1ff0] sm:$0xff] }
 0x467   : > { %13032 = vmatpush1.bf16.xpose.msra.mxu1 %v13031_v15  ;;  %13034 = vmatprep.subr.bf16.mxu0 %v13033_v16  ;;  %v13055_v16 = vpack.c.bf16 %v1414_v9, %v1158_v8  ;;  %v13063_v18 = vpack.c.bf16 %v1416_v12, %v1160_v11 }
 0x468   : > { %13042 = vmatprep.subr.bf16.mxu1 %v13041_v17 }
 0x46d   : > { %11431 = vmatmul.mubr.f32.vlgmr.msra.gmra.mrb[122].mxu0 %v2526_v53  ;;  %v13049_v53 = vpack.c.bf16 %v903_v42, %v647_v41 }
 0x46e   : > { %13036 = vmatpush1.bf16.xpose.msra.mxu0 %v13035_v30  ;;  %11501 = vmatmul.mubr.f32.vlgmr.msra.gmra.mrb[122].mxu1 %v2533_v56  ;;  %v646_v56 = vld [vmem:[%s13655_s14 + $0x7e0] sm:$0xff] }
 0x46f   : > { %13044 = vmatpush1.bf16.xpose.msra.mxu1 %v13043_v31  ;;  %13038 = vmatprep.subr.bf16.mxu0 %v13037_v32  ;;  %v13051_v2 = vpack.c.bf16 %v902_v57, %v646_v56 }
 0x470   : > { %v9612_v39 = vpop.f32.mrb[96].mxu0  ;;  %13046 = vmatprep.subr.bf16.mxu1 %v13045_v33  ;;  %11570 = vmatprep.mubr.f32.mxu0 %v2551_v34 }
 0x471   : > { %v9613_v43 = vadd.f32 %v9612_v39, %v9543_v14  ;;  %v9614_v44 = vpop.f32.mrb[97].mxu0  ;;  %v9682_v45 = vpop.f32.mrb[96].mxu1  ;;  %11640 = vmatprep.mubr.f32.mxu1 %v2552_v35 }
 0x472   : > { %v9684_v48 = vpop.f32.mrb[97].mxu1 }
 0x473   : > { %v9683_v51 = vadd.f32 %v9682_v45, %v9613_v43 }
 0x476   : > { %13040 = vmatpush1.bf16.xpose.msra.mxu0 %v13039_v49 }
 0x477   : > { %13048 = vmatpush1.bf16.xpose.msra.mxu1 %v13047_v52  ;;  %13050 = vmatprep.subr.bf16.mxu0 %v13049_v53 }
 0x478   : > { %13058 = vmatprep.subr.bf16.mxu1 %v13057_v54 }
 0x47d   : > { %11571 = vmatmul.mubr.f32.vlgmr.msra.gmra.mrb[124].mxu0 %v2543_v25 }
 0x47e   : > { %13052 = vmatpush1.bf16.xpose.msra.mxu0 %v13051_v2  ;;  %11641 = vmatmul.mubr.f32.vlgmr.msra.gmra.mrb[124].mxu1 %v2550_v29 }
 0x47f   : > { %13060 = vmatpush1.bf16.xpose.msra.mxu1 %v13059_v3  ;;  %13054 = vmatprep.subr.bf16.mxu0 %v13053_v4 }
 0x480   : > { %v9752_v10 = vpop.f32.mrb[98].mxu0  ;;  %13062 = vmatprep.subr.bf16.mxu1 %v13061_v5  ;;  %11710 = vmatprep.mubr.f32.mxu0 %v2568_v6 }
 0x481   : > { %v9753_v28 = vadd.f32 %v9752_v10, %v9683_v51  ;;  %v9754_v13 = vpop.f32.mrb[99].mxu0  ;;  %v9822_v14 = vpop.f32.mrb[98].mxu1  ;;  %11780 = vmatprep.mubr.f32.mxu1 %v2569_v7 }
 0x482   : > { %v9824_v15 = vpop.f32.mrb[99].mxu1 }
 0x483   : > { %v9823_v17 = vadd.f32 %v9822_v14, %v9753_v28 }
 0x486   : > { %13056 = vmatpush1.bf16.xpose.msra.mxu0 %v13055_v16 }
 0x487   : > { %13064 = vmatpush1.bf16.xpose.msra.mxu1 %v13063_v18 }
 0x48d   : > { %11711 = vmatmul.mubr.f32.vlgmr.msra.gmra.mrb[126].mxu0 %v2560_v62 }
 0x48e   : > { %11781 = vmatmul.mubr.f32.vlgmr.msra.gmra.mrb[126].mxu1 %v2567_v1 }
 0x490   : > { %v9892_v19 = vpop.f32.mrb[100].mxu0 }
 0x491   : > { %v9893_v20 = vadd.f32 %v9892_v19, %v9823_v17  ;;  %v9894_v21 = vpop.f32.mrb[101].mxu0  ;;  %v9962_v22 = vpop.f32.mrb[100].mxu1 }
 0x492   : > { %v9964_v23 = vpop.f32.mrb[101].mxu1 }
 0x493   : > { %v9963_v24 = vadd.f32 %v9962_v22, %v9893_v20 }
 0x4a0   : > { %v10032_v25 = vpop.f32.mrb[102].mxu0 }
 0x4a1   : > { %v10033_v26 = vadd.f32 %v10032_v25, %v9963_v24  ;;  %v10034_v27 = vpop.f32.mrb[103].mxu0  ;;  %v10102_v29 = vpop.f32.mrb[102].mxu1 }
 0x4a2   : > { %v10104_v30 = vpop.f32.mrb[103].mxu1 }
 0x4a3   : > { %v10103_v31 = vadd.f32 %v10102_v29, %v10033_v26 }
 0x4b0   : > { %v10172_v32 = vpop.f32.mrb[104].mxu0 }
 0x4b1   : > { %v10173_v33 = vadd.f32 %v10172_v32, %v10103_v31  ;;  %v10174_v34 = vpop.f32.mrb[105].mxu0  ;;  %v10242_v35 = vpop.f32.mrb[104].mxu1 }
 0x4b2   : > { %v10244_v36 = vpop.f32.mrb[105].mxu1 }
 0x4b3   : > { %v10243_v37 = vadd.f32 %v10242_v35, %v10173_v33 }
 0x4c0   : > { %v10312_v38 = vpop.f32.mrb[106].mxu0 }
 0x4c1   : > { %v10313_v39 = vadd.f32 %v10312_v38, %v10243_v37  ;;  %v10314_v40 = vpop.f32.mrb[107].mxu0  ;;  %v10382_v41 = vpop.f32.mrb[106].mxu1  ;;  %v329_v38 = vld [vmem:[#allocation2] sm:$0x3] }
 0x4c2   : > { %v10384_v42 = vpop.f32.mrb[107].mxu1 }
 0x4c3   : > { %v10383_v43 = vadd.f32 %v10382_v41, %v10313_v39  ;;  %v11803_v42 = vld [vmem:[#allocation8] sm:$0x1f] (!%p12024_p6) }
 0x4d0   : > { %v10452_v44 = vpop.f32.mrb[108].mxu0 }
 0x4d1   : > { %v10453_v45 = vadd.f32 %v10452_v44, %v10383_v43  ;;  %v10454_v46 = vpop.f32.mrb[109].mxu0  ;;  %v10522_v47 = vpop.f32.mrb[108].mxu1  ;;  %v13442_v43 = vmov (!%p12024_p6), 0.0  }
 0x4d2   : > { %v10524_v48 = vpop.f32.mrb[109].mxu1  ;;  %12036 = vmatprep.subr.mxu0 (!%p12024_p6), %v13442_v43  ;;  %12038 = vmatprep.mubr.msk.f32.mxu0 (!%p12024_p6), %vm13443_vm3, %v13442_v43 }
 0x4d3   : > { %v10523_v49 = vadd.f32 %v10522_v47, %v10453_v45  ;;  %v12025_v45 = vld [vmem:[#allocation6] ss:$0 sm:$0xff] (!%p12024_p6)  ;;  %12037 = vmatpush3.xpose.msk.msra.mxu0 (!%p12024_p6), %vm11811_vm2, %v11803_v42  ;;  %v12026_v48 = vld [vmem:[#allocation9] ss:$0 sm:$0xff] (!%p12024_p6) }
 0x4e0   : > { %v10592_v50 = vpop.f32.mrb[110].mxu0 }
 0x4e1   : > { %v10593_v51 = vadd.f32 %v10592_v50, %v10523_v49  ;;  %v10594_v52 = vpop.f32.mrb[111].mxu0  ;;  %v10662_v53 = vpop.f32.mrb[110].mxu1 }
 0x4e2   : > { %v10664_v54 = vpop.f32.mrb[111].mxu1 }
 0x4e3   : > { %v10663_v55 = vadd.f32 %v10662_v53, %v10593_v51 }
 0x4f0   : > { %v10732_v56 = vpop.f32.mrb[112].mxu0 }
 0x4f1   : > { %v10733_v57 = vadd.f32 %v10732_v56, %v10663_v55  ;;  %v10734_v58 = vpop.f32.mrb[113].mxu0  ;;  %v10802_v59 = vpop.f32.mrb[112].mxu1 }
 0x4f2   : > { %v10804_v60 = vpop.f32.mrb[113].mxu1 }
 0x4f3   : > { %v10803_v61 = vadd.f32 %v10802_v59, %v10733_v57 }
 0x500   : > { %v10872_v62 = vpop.f32.mrb[114].mxu0 }
 0x501   : > { %v10873_v63 = vadd.f32 %v10872_v62, %v10803_v61  ;;  %v10874_v0 = vpop.f32.mrb[115].mxu0  ;;  %v10942_v1 = vpop.f32.mrb[114].mxu1 }
 0x502   : > { %v10944_v2 = vpop.f32.mrb[115].mxu1 }
 0x503   : > { %v10943_v3 = vadd.f32 %v10942_v1, %v10873_v63 }
 0x510   : > { %v11012_v4 = vpop.f32.mrb[116].mxu0 }
 0x511   : > { %v11013_v5 = vadd.f32 %v11012_v4, %v10943_v3  ;;  %v11014_v6 = vpop.f32.mrb[117].mxu0  ;;  %v11082_v7 = vpop.f32.mrb[116].mxu1 }
 0x512   : > { %v11084_v8 = vpop.f32.mrb[117].mxu1 }
 0x513   : > { %v11083_v9 = vadd.f32 %v11082_v7, %v11013_v5 }
 0x520   : > { %v11152_v10 = vpop.f32.mrb[118].mxu0 }
 0x521   : > { %v11153_v11 = vadd.f32 %v11152_v10, %v11083_v9  ;;  %v11154_v12 = vpop.f32.mrb[119].mxu0  ;;  %v11222_v28 = vpop.f32.mrb[118].mxu1 }
 0x522   : > { %v11224_v13 = vpop.f32.mrb[119].mxu1 }
 0x523   : > { %v11223_v14 = vadd.f32 %v11222_v28, %v11153_v11 }
 0x530   : > { %v11292_v15 = vpop.f32.mrb[120].mxu0 }
 0x531   : > { %v11293_v16 = vadd.f32 %v11292_v15, %v11223_v14  ;;  %v11294_v17 = vpop.f32.mrb[121].mxu0  ;;  %v11362_v18 = vpop.f32.mrb[120].mxu1 }
 0x532   : > { %v11364_v19 = vpop.f32.mrb[121].mxu1 }
 0x533   : > { %v11363_v20 = vadd.f32 %v11362_v18, %v11293_v16 }
 0x540   : > { %v11432_v21 = vpop.f32.mrb[122].mxu0 }
 0x541   : > { %v11433_v22 = vadd.f32 %v11432_v21, %v11363_v20  ;;  %v11434_v23 = vpop.f32.mrb[123].mxu0  ;;  %v11502_v24 = vpop.f32.mrb[122].mxu1 }
 0x542   : > { %v11504_v25 = vpop.f32.mrb[123].mxu1 }
 0x543   : > { %v11503_v26 = vadd.f32 %v11502_v24, %v11433_v22 }
 0x550   : > { %v11572_v27 = vpop.f32.mrb[124].mxu0 }
 0x551   : > { %v11573_v29 = vadd.f32 %v11572_v27, %v11503_v26  ;;  %v11574_v30 = vpop.f32.mrb[125].mxu0  ;;  %v11642_v31 = vpop.f32.mrb[124].mxu1 }
 0x552   : > { %v11644_v32 = vpop.f32.mrb[125].mxu1 }
 0x553   : > { %v11643_v33 = vadd.f32 %v11642_v31, %v11573_v29 }
 0x560   : > { %v11712_v34 = vpop.f32.mrb[126].mxu0 }
 0x561   : > { %v11713_v35 = vadd.f32 %v11712_v34, %v11643_v33  ;;  %v11714_v36 = vpop.f32.mrb[127].mxu0  ;;  %v11782_v37 = vpop.f32.mrb[126].mxu1  ;;  %11792 = sbr.rel (%p12024_p6) target bundleno = 1610 (0x64a), region = 64 }
 0x562   : > { %v11784_v39 = vpop.f32.mrb[127].mxu1 }
 0x563   : > { %v11783_v40 = vadd.f32 %v11782_v37, %v11713_v35 }
 0x565   : > { %v11786_v41 = vadd.f32 %v11783_v40, %v329_v38 }
 0x567   : > { %11788 = vst.msk [vmem:[#allocation2] sm:$0x3] %vm11787_vm1, %v11786_v41 }
 0x56e   : > { %v11793_v44 = vld [vmem:[#allocation2] sm:$0x3] }
 0x56f   : > { %v11801_v46 = vadd.f32 %v12025_v45, %v11793_v44 }
 0x571   : > { %v11802_v47 = vmax.f32 %v11801_v46, 0.0 }
 0x573   : > { %12039 = vmatmul.mubr.msk.f32.vlgmr.msra.gmra.mrb[0].mxu0 %vm11811_vm2, %v11802_v47 }
 0x646   : > { %v11884_v49 = vpop.f32.mrb[0].mxu0 }
 0x647   : > { %v11885_v50 = vadd.f32 %v12026_v48, %v11884_v49  ;;  %v12040_v51 = vpop.f32.mrb[1].mxu0 }
 0x649   : > { %11889 = vst.msk [vmem:[#allocation11] sm:$0x3] %vm11888_vm4, %v11885_v50 }
 0x64a PF: > { %p14897_p9 = scmp.eq.s32.totalorder %s12007_s24, 1  ;;  %s13444_s25 = smov [#allocation11]  }
 0x64b   : > { %s11899_s7 = sshll.u32 %s13444_s25, 4  ;;  %s11900_s7 = int_to_ptr.vmem [resolvable:$true] %s11899_s7 }
 0x64c   : > { %s13343_s9 = scalar_lea.vmem %s11900_s7, 32  ;;  %p13350_p13 = scmp.lt.s32.totalorder %s11900_s7, %s11900_s7 }
 0x64d   : > { %p13344_p10 = scmp.ne.s32.totalorder %s11900_s7, %s13343_s9  ;;  %p13351_p8 = scmp.lt.s32.totalorder %s13343_s9, %s13343_s9 }
 0x64f   : > { %p13345_p0 = pnand %p13344_p10, %p14897_p9  ;;  %p13352_p1 = por %p13351_p8, %p13350_p13 }
 0x651   : > { %p13346_p11 = pneg %p13345_p0 }
 0x653   : > { %p13353_p2 = pnand %p13352_p1, %p13346_p11 }
 0x655   : > { %13356 = shalt.err (!%p13353_p2)
}
 0x656   : > { %s13357_s24 = scalar_lea.hbm %s14946_s5, 32 }
 0x657   : > { %p13358_p7 = scmp.ne.s32.totalorder %s14946_s5, %s13357_s24  ;;  %p13363_p3 = scmp.lt.u32.totalorder %s13357_s24, %s14946_s5 }
 0x659   : > { %p13359_p12 = pnand %p13358_p7, %p14897_p9 }
 0x65b   : > { %p13360_p4 = pneg %p13359_p12 }
 0x65d   : > { %p13365_p5 = pnand %p13363_p3, %p13360_p4 }
 0x65f   : > { %13368 = shalt.err (!%p13365_p5)
}
 0x660   : > { %13080 = dma.vmem_to_hbm [thread:$0]  (%p14897_p9), %s11900_s7, 32, %s14946_s5, [#allocation5]  }
 0x661   : > { %13406 = dma.done.wait (%p14897_p9), [#allocation5], 32  }
 0x662   : > { %13408 = vsyncadd (%p14897_p9), [#allocation5], 4294967264 }
 0x663 PF: > { %s21_s23 = sadd.s32 1, %s13431_s23   ;;  %s14963_s14 = smov %s13622_s18 }
 0x664   : > { %p18_p6 = scmp.ge.s32.totalorder %s21_s23, 4   ;;  %s14964_s18 = smov %s13415_s19 }
 0x665   : > { %s14965_s19 = smov %s13419_s20  ;;  %s14966_s20 = smov %s14963_s14 }
 0x666   : > { %s14967_s21 = smov %s13427_s22  ;;  %s14968_s22 = smov %s14970_s6 }
 0x667   :  { %20 = sbr.rel (!%p18_p6) target bundleno = 7 (0x7), region = 101 }
 0x66e   :  { %11912 = vsyncpa [#allocation4], 1 }
 0x66f   :  { %11914 = vsyncpa [#allocation4 + $0x1], 1 }
 0x670   :  { %11915 = vsyncpa [#allocation7], 1 }
 0x671   :  { %11916 = vsyncpa [#allocation10], 1 }
 0x672   :  { %11917 = vsyncpa [#allocation5], 1 }
 0x673   :  { %11919 = vsyncpa [#allocation5 + $0x1], 1 }

</bundles_post_ra>
